<compile_context>
chip_gen: v5e
topology: v5e:2x2
jax: 0.10.0
libtpu: 0.0.40
codegen_flags: <defaults>
</compile_context>

<pallas_src>
import functools

import jax
import jax.numpy as jnp
from jax.experimental import pallas as pl

# ---------------- model hyper-parameters (small, synthetic) ----------------
B, IN_CHANS, IMG_H, IMG_W = 2, 4, 16, 16
PATCH = 8
NUM_PATCHES = (IMG_H // PATCH) * (IMG_W // PATCH)   # 4
SEQ = NUM_PATCHES + 1                               # cls token -> 5
SEQ_PAD = 8                                         # pad to one sublane group
EMBED_DIM = 32
NUM_HEADS = 4
HEAD_DIM = EMBED_DIM // NUM_HEADS
DEPTH = 2
MLP_HIDDEN = 4 * EMBED_DIM
NUM_CLASSES = 8
CAMERA_NUM = 3
SIE_COE = 3.0
LN_EPS = 1e-6
BN_EPS = 1e-5


# ========================= fused forward kernel =============================

def _fused_forward_kernel(
    # inputs
    patches_ref, cls_ref, pos_ref, sie_ref,
    patch_w_ref, patch_b_ref,
    ln1_g_ref, ln1_b_ref, qkv_w_ref, qkv_b_ref, proj_w_ref, proj_b_ref,
    ln2_g_ref, ln2_b_ref, fc1_w_ref, fc1_b_ref, fc2_w_ref, fc2_b_ref,
    norm_g_ref, norm_b_ref, bn_g_ref, bn_b_ref, cls_w_ref,
    # outputs
    cls_score_ref, global_feat_ref,
    *, batch,
):
    f32 = jnp.float32
    D, H, Dh = EMBED_DIM, NUM_HEADS, HEAD_DIM
    S, SP, Np = SEQ, SEQ_PAD, NUM_PATCHES
    Bk = batch
    scale = float(Dh) ** -0.5

    def ln(v, g, b):
        mu = jnp.mean(v, axis=-1, keepdims=True)
        var = jnp.mean(jnp.square(v - mu), axis=-1, keepdims=True)
        return (v - mu) * jax.lax.rsqrt(var + LN_EPS) * g + b

    def gelu_exact(x):
        # nn.GELU default = exact-erf GELU.  erf via Abramowitz-Stegun 7.1.26
        # (|abs err| <= 1.5e-7) using only exp / where / div (safe lowerings).
        z = x * 0.7071067811865476
        az = jnp.abs(z)
        t = 1.0 / (1.0 + 0.3275911 * az)
        poly = ((((1.061405429 * t - 1.453152027) * t + 1.421413741) * t
                 - 0.284496736) * t + 0.254829592) * t
        erf_abs = 1.0 - poly * jnp.exp(-az * az)
        erf_z = jnp.where(z >= 0.0, erf_abs, -erf_abs)
        return 0.5 * x * (1.0 + erf_z)

    # ---- patch embedding over the padded (B*SP, C*P*P) slab -----------------
    # cls-slot and pad rows of the input slab are zero, so one matmul covers
    # every token position; masks below add the conv bias / cls token only
    # where they belong.  Everything stays in registers (no scratch, no
    # masked row stores).
    tok = jnp.dot(patches_ref[...], patch_w_ref[...],
                  preferred_element_type=f32)                           # (B*SP, D)

    rid = jax.lax.broadcasted_iota(jnp.int32, (Bk * SP, 1), 0) & (SP - 1)
    tok = (tok
           + jnp.where((rid >= 1) & (rid <= Np), 1.0, 0.0) * patch_b_ref[...]
           + jnp.where(rid == 0, 1.0, 0.0) * cls_ref[...])

    # pos embedding (padded rows zero) + SIE camera embedding: one vector add.
    h = (tok.reshape(Bk, SP, D)
         + pos_ref[...][None, :, :]
         + SIE_COE * sie_ref[...][:, None, :]).reshape(Bk * SP, D)      # (B*SP, D)

    # softmax mask for padded key rows (positions S..SP-1 of each batch block)
    kid = jax.lax.broadcasted_iota(jnp.int32, (1, 1, SP), 2)
    key_mask = jnp.where(kid < S, 0.0, -1e30)                           # (1,1,SP)

    # ---- transformer blocks (pre-norm attention + MLP), all in registers ----
    # TODO(synk): at real TransReID depth (12) switch this static unroll to a
    # lax.fori_loop with dynamic weight indexing to bound vreg live ranges.
    for l in range(DEPTH):
        # multi-head self-attention
        y = ln(h, ln1_g_ref[l], ln1_b_ref[l])
        qkv = jnp.dot(y, qkv_w_ref[l],
                      preferred_element_type=f32) + qkv_b_ref[l]        # (B*SP, 3D)
        heads = []
        for hh in range(H):
            c0 = hh * Dh
            q = (qkv[:, c0:c0 + Dh] * scale).reshape(Bk, SP, Dh)
            k = qkv[:, D + c0:D + c0 + Dh].reshape(Bk, SP, Dh)
            v = qkv[:, 2 * D + c0:2 * D + c0 + Dh].reshape(Bk, SP, Dh)
            s = jnp.einsum('bqd,bkd->bqk', q, k,
                           preferred_element_type=f32) + key_mask       # (B,SP,SP)
            s = s - jnp.max(s, axis=-1, keepdims=True)
            p = jnp.exp(s)
            p = p * pl.reciprocal(jnp.sum(p, axis=-1, keepdims=True), approx=True)
            heads.append(jnp.einsum('bqk,bkd->bqd', p, v,
                                    preferred_element_type=f32))        # (B,SP,Dh)
        a = jnp.concatenate(heads, axis=-1).reshape(Bk * SP, D)          # lane concat
        h = h + jnp.dot(a, proj_w_ref[l],
                        preferred_element_type=f32) + proj_b_ref[l]

        # MLP
        y = ln(h, ln2_g_ref[l], ln2_b_ref[l])
        y = jnp.dot(y, fc1_w_ref[l], preferred_element_type=f32) + fc1_b_ref[l]
        y = gelu_exact(y)
        h = h + jnp.dot(y, fc2_w_ref[l],
                        preferred_element_type=f32) + fc2_b_ref[l]

    # ---- final LayerNorm on the cls rows only (LN is per-token) -------------
    cls_rows = h.reshape(Bk, SP, D)[:, 0:1, :].reshape(Bk, D)
    gf = ln(cls_rows, norm_g_ref[...], norm_b_ref[...])                  # (B, D)
    global_feat_ref[...] = gf                                            # single store

    # ---- bottleneck BatchNorm1d (training-mode batch stats) + dropout(p=0)
    #      + bias-free classifier -------------------------------------------
    mu = jnp.mean(gf, axis=0, keepdims=True)
    var = jnp.mean(jnp.square(gf - mu), axis=0, keepdims=True)
    feat = (gf - mu) * jax.lax.rsqrt(var + BN_EPS) * bn_g_ref[...] + bn_b_ref[...]
    cls_score_ref[...] = jnp.dot(feat, cls_w_ref[...], preferred_element_type=f32)


# ============================ parameter init ================================

def _normal(key, shape, std):
    return std * jax.random.normal(key, shape, jnp.float32)


def init_params(key):
    keys = iter(jax.random.split(key, 64))
    D = EMBED_DIM
    p = {}
    # patch embed (Conv2d(kernel=stride=PATCH) lowered to matmul); weight transposed
    p["patch_w_t"] = _normal(next(keys), (IN_CHANS * PATCH * PATCH, D), 0.02)
    p["patch_b"] = jnp.zeros((1, D), jnp.float32)
    p["cls_token"] = _normal(next(keys), (1, D), 0.02)
    p["pos_embed"] = _normal(next(keys), (SEQ, D), 0.02)
    p["sie_embed"] = _normal(next(keys), (CAMERA_NUM, D), 0.02)   # SIE camera embedding
    # per-block weights stacked along a leading DEPTH axis
    p["ln1_g"] = jnp.ones((DEPTH, 1, D), jnp.float32)
    p["ln1_b"] = jnp.zeros((DEPTH, 1, D), jnp.float32)
    p["qkv_w"] = _normal(next(keys), (DEPTH, D, 3 * D), 0.02)
    p["qkv_b"] = jnp.zeros((DEPTH, 1, 3 * D), jnp.float32)
    p["proj_w"] = _normal(next(keys), (DEPTH, D, D), 0.02)
    p["proj_b"] = jnp.zeros((DEPTH, 1, D), jnp.float32)
    p["ln2_g"] = jnp.ones((DEPTH, 1, D), jnp.float32)
    p["ln2_b"] = jnp.zeros((DEPTH, 1, D), jnp.float32)
    p["fc1_w"] = _normal(next(keys), (DEPTH, D, MLP_HIDDEN), 0.02)
    p["fc1_b"] = jnp.zeros((DEPTH, 1, MLP_HIDDEN), jnp.float32)
    p["fc2_w"] = _normal(next(keys), (DEPTH, MLP_HIDDEN, D), 0.02)
    p["fc2_b"] = jnp.zeros((DEPTH, 1, D), jnp.float32)
    p["norm_g"] = jnp.ones((1, D), jnp.float32)
    p["norm_b"] = jnp.zeros((1, D), jnp.float32)
    # bottleneck BatchNorm1d: weights_init_kaiming -> weight=1, bias=0 (bias frozen)
    p["bn_g"] = jnp.ones((1, D), jnp.float32)
    p["bn_b"] = jnp.zeros((1, D), jnp.float32)
    # classifier: Linear(in_planes, num_classes, bias=False), normal std=0.001
    p["cls_w_t"] = _normal(next(keys), (D, NUM_CLASSES), 0.001)
    return p


# ============================== forward =====================================

def forward(x, cam_label, params):
    """build_transformer.forward (training mode): returns (cls_score, global_feat)."""
    Bx, C, Himg, Wimg = x.shape
    gh, gw = Himg // PATCH, Wimg // PATCH
    npatch = gh * gw
    cpp = C * PATCH * PATCH

    # im2col (pure layout, XLA): NCHW -> (B, Np, C*P*P) in (C, ph, pw) order,
    # matching torch conv_weight.reshape(D, C*P*P).T.  Pad each batch block to
    # SEQ_PAD rows: row 0 (cls slot) and rows 1+Np.. are zero -> sublane-aligned
    # token slabs inside the kernel.
    patches = x.reshape(Bx, C, gh, PATCH, gw, PATCH)
    patches = patches.transpose(0, 2, 4, 1, 3, 5).reshape(Bx, npatch, cpp)
    patches_pad = jnp.pad(patches, ((0, 0), (1, SEQ_PAD - 1 - npatch), (0, 0)))
    patches_pad = patches_pad.reshape(Bx * SEQ_PAD, cpp)

    # pos_embed padded to SEQ_PAD rows (layout-only prep, zero compute).
    pos_pad = jnp.pad(params["pos_embed"], ((0, SEQ_PAD - SEQ), (0, 0)))
    # SIE camera-embedding gather (trivial index) outside the kernel.
    sie = params["sie_embed"][cam_label]                                 # (B, D)

    kernel = functools.partial(_fused_forward_kernel, batch=Bx)
    cls_score, global_feat = pl.pallas_call(
        kernel,
        out_shape=(jax.ShapeDtypeStruct((Bx, NUM_CLASSES), jnp.float32),
                   jax.ShapeDtypeStruct((Bx, EMBED_DIM), jnp.float32)),
    )(patches_pad, params["cls_token"], pos_pad, sie,
      params["patch_w_t"], params["patch_b"],
      params["ln1_g"], params["ln1_b"], params["qkv_w"], params["qkv_b"],
      params["proj_w"], params["proj_b"],
      params["ln2_g"], params["ln2_b"], params["fc1_w"], params["fc1_b"],
      params["fc2_w"], params["fc2_b"],
      params["norm_g"], params["norm_b"], params["bn_g"], params["bn_b"],
      params["cls_w_t"])
    return cls_score, global_feat


# ================================ main ======================================

if __name__ == "__main__":
    key = jax.random.PRNGKey(0)
    kx, kc = jax.random.split(key)
    x = jax.random.normal(kx, (B, IN_CHANS, IMG_H, IMG_W), jnp.float32)
    cam_label = jnp.array([0, 2], dtype=jnp.int32)
    params = init_params(jax.random.PRNGKey(42))

    cls_score, global_feat = jax.jit(forward)(x, cam_label, params)
    jax.block_until_ready((cls_score, global_feat))

    assert cls_score.shape == (B, NUM_CLASSES)
    assert global_feat.shape == (B, EMBED_DIM)
    assert bool(jnp.all(jnp.isfinite(cls_score))) and bool(jnp.all(jnp.isfinite(global_feat)))
    print("KERNEL_OK")
</pallas_src>

<mosaic_0001>
module attributes {stable_mosaic.version = 11 : i64} {
  func.func @_fused_forward_kernel(%arg0: memref<16x256xf32, #tpu.memory_space<vmem>>, %arg1: memref<1x32xf32, #tpu.memory_space<vmem>>, %arg2: memref<8x32xf32, #tpu.memory_space<vmem>>, %arg3: memref<2x32xf32, #tpu.memory_space<vmem>>, %arg4: memref<256x32xf32, #tpu.memory_space<vmem>>, %arg5: memref<1x32xf32, #tpu.memory_space<vmem>>, %arg6: memref<2x1x32xf32, #tpu.memory_space<vmem>>, %arg7: memref<2x1x32xf32, #tpu.memory_space<vmem>>, %arg8: memref<2x32x96xf32, #tpu.memory_space<vmem>>, %arg9: memref<2x1x96xf32, #tpu.memory_space<vmem>>, %arg10: memref<2x32x32xf32, #tpu.memory_space<vmem>>, %arg11: memref<2x1x32xf32, #tpu.memory_space<vmem>>, %arg12: memref<2x1x32xf32, #tpu.memory_space<vmem>>, %arg13: memref<2x1x32xf32, #tpu.memory_space<vmem>>, %arg14: memref<2x32x128xf32, #tpu.memory_space<vmem>>, %arg15: memref<2x1x128xf32, #tpu.memory_space<vmem>>, %arg16: memref<2x128x32xf32, #tpu.memory_space<vmem>>, %arg17: memref<2x1x32xf32, #tpu.memory_space<vmem>>, %arg18: memref<1x32xf32, #tpu.memory_space<vmem>>, %arg19: memref<1x32xf32, #tpu.memory_space<vmem>>, %arg20: memref<1x32xf32, #tpu.memory_space<vmem>>, %arg21: memref<1x32xf32, #tpu.memory_space<vmem>>, %arg22: memref<32x8xf32, #tpu.memory_space<vmem>>, %arg23: memref<2x8xf32, #tpu.memory_space<vmem>>, %arg24: memref<2x32xf32, #tpu.memory_space<vmem>>) attributes {dimension_semantics = [], scalar_prefetch = 0 : i64, scratch_operands = 0 : i64, tpu.core_type = #tpu.core_type<tc>} {
    %c0 = arith.constant 0 : index
    %c0_0 = arith.constant 0 : index
    %0 = vector.load %arg0[%c0, %c0_0] : memref<16x256xf32, #tpu.memory_space<vmem>>, vector<16x256xf32>
    %c0_1 = arith.constant 0 : index
    %c0_2 = arith.constant 0 : index
    %1 = vector.load %arg4[%c0_1, %c0_2] : memref<256x32xf32, #tpu.memory_space<vmem>>, vector<256x32xf32>
    %cst = arith.constant dense<0.000000e+00> : vector<16x32xf32>
    %2 = tpu.matmul %0, %1, %cst {dimension_numbers = #tpu.dot_dimension_numbers<[1], [0], [0], [1], [0, 0, 1, 1], [], []>} : vector<16x256xf32>, vector<256x32xf32>, vector<16x32xf32> -> vector<16x32xf32>
    %3 = tpu.iota {dimensions = array<i32: 0>} : vector<16x1xi32>
    %c7_i32 = arith.constant 7 : i32
    %4 = vector.broadcast %c7_i32 : i32 to vector<16x1xi32>
    %5 = arith.andi %3, %4 : vector<16x1xi32>
    %c1_i32 = arith.constant 1 : i32
    %6 = vector.broadcast %c1_i32 : i32 to vector<16x1xi32>
    %7 = arith.cmpi sge, %5, %6 : vector<16x1xi32>
    %c4_i32 = arith.constant 4 : i32
    %8 = vector.broadcast %c4_i32 : i32 to vector<16x1xi32>
    %9 = arith.cmpi sle, %5, %8 : vector<16x1xi32>
    %10 = arith.andi %7, %9 : vector<16x1xi1>
    %cst_3 = arith.constant 1.000000e+00 : f32
    %cst_4 = arith.constant 0.000000e+00 : f32
    %11 = vector.broadcast %cst_3 : f32 to vector<16x1xf32>
    %12 = vector.broadcast %cst_4 : f32 to vector<16x1xf32>
    %13 = arith.select %10, %11, %12 : vector<16x1xi1>, vector<16x1xf32>
    %c0_5 = arith.constant 0 : index
    %c0_6 = arith.constant 0 : index
    %14 = vector.load %arg5[%c0_5, %c0_6] : memref<1x32xf32, #tpu.memory_space<vmem>>, vector<1x32xf32>
    %15 = vector.broadcast %13 : vector<16x1xf32> to vector<16x32xf32>
    %16 = vector.broadcast %14 : vector<1x32xf32> to vector<16x32xf32>
    %17 = arith.mulf %15, %16 : vector<16x32xf32>
    %18 = arith.addf %2, %17 : vector<16x32xf32>
    %c0_i32 = arith.constant 0 : i32
    %19 = vector.broadcast %c0_i32 : i32 to vector<16x1xi32>
    %20 = arith.cmpi eq, %5, %19 : vector<16x1xi32>
    %cst_7 = arith.constant 1.000000e+00 : f32
    %cst_8 = arith.constant 0.000000e+00 : f32
    %21 = vector.broadcast %cst_7 : f32 to vector<16x1xf32>
    %22 = vector.broadcast %cst_8 : f32 to vector<16x1xf32>
    %23 = arith.select %20, %21, %22 : vector<16x1xi1>, vector<16x1xf32>
    %c0_9 = arith.constant 0 : index
    %c0_10 = arith.constant 0 : index
    %24 = vector.load %arg1[%c0_9, %c0_10] : memref<1x32xf32, #tpu.memory_space<vmem>>, vector<1x32xf32>
    %25 = vector.broadcast %23 : vector<16x1xf32> to vector<16x32xf32>
    %26 = vector.broadcast %24 : vector<1x32xf32> to vector<16x32xf32>
    %27 = arith.mulf %25, %26 : vector<16x32xf32>
    %28 = arith.addf %18, %27 : vector<16x32xf32>
    %29 = vector.shape_cast %28 : vector<16x32xf32> to vector<2x8x32xf32>
    %c0_11 = arith.constant 0 : index
    %c0_12 = arith.constant 0 : index
    %30 = vector.load %arg2[%c0_11, %c0_12] : memref<8x32xf32, #tpu.memory_space<vmem>>, vector<8x32xf32>
    %31 = vector.shape_cast %30 : vector<8x32xf32> to vector<1x8x32xf32>
    %32 = vector.broadcast %31 : vector<1x8x32xf32> to vector<2x8x32xf32>
    %33 = arith.addf %29, %32 : vector<2x8x32xf32>
    %c0_13 = arith.constant 0 : index
    %c0_14 = arith.constant 0 : index
    %34 = vector.load %arg3[%c0_13, %c0_14] : memref<2x32xf32, #tpu.memory_space<vmem>>, vector<2x32xf32>
    %35 = vector.shape_cast %34 : vector<2x32xf32> to vector<2x1x32xf32>
    %cst_15 = arith.constant 3.000000e+00 : f32
    %36 = vector.broadcast %cst_15 : f32 to vector<2x1x32xf32>
    %37 = arith.mulf %36, %35 : vector<2x1x32xf32>
    %38 = vector.broadcast %37 : vector<2x1x32xf32> to vector<2x8x32xf32>
    %39 = arith.addf %33, %38 : vector<2x8x32xf32>
    %40 = vector.shape_cast %39 : vector<2x8x32xf32> to vector<16x32xf32>
    %41 = tpu.iota {dimensions = array<i32: 2>} : vector<1x1x8xi32>
    %c5_i32 = arith.constant 5 : i32
    %42 = vector.broadcast %c5_i32 : i32 to vector<1x1x8xi32>
    %43 = arith.cmpi slt, %41, %42 : vector<1x1x8xi32>
    %cst_16 = arith.constant 0.000000e+00 : f32
    %cst_17 = arith.constant -1.000000e+30 : f32
    %44 = vector.broadcast %cst_16 : f32 to vector<1x1x8xf32>
    %45 = vector.broadcast %cst_17 : f32 to vector<1x1x8xf32>
    %46 = arith.select %43, %44, %45 : vector<1x1x8xi1>, vector<1x1x8xf32>
    %c0_18 = arith.constant 0 : index
    %c0_19 = arith.constant 0 : index
    %c0_20 = arith.constant 0 : index
    %47 = vector.load %arg6[%c0_18, %c0_19, %c0_20] : memref<2x1x32xf32, #tpu.memory_space<vmem>>, vector<1x1x32xf32>
    %48 = vector.shape_cast %47 : vector<1x1x32xf32> to vector<1x32xf32>
    %c0_21 = arith.constant 0 : index
    %c0_22 = arith.constant 0 : index
    %c0_23 = arith.constant 0 : index
    %49 = vector.load %arg7[%c0_21, %c0_22, %c0_23] : memref<2x1x32xf32, #tpu.memory_space<vmem>>, vector<1x1x32xf32>
    %50 = vector.shape_cast %49 : vector<1x1x32xf32> to vector<1x32xf32>
    %cst_24 = arith.constant dense<0.000000e+00> : vector<16xf32>
    %51 = vector.multi_reduction <add>, %40, %cst_24 [1] : vector<16x32xf32> to vector<16xf32>
    %52 = vector.shape_cast %51 : vector<16xf32> to vector<16x1xf32>
    %cst_25 = arith.constant 3.200000e+01 : f32
    %53 = vector.broadcast %cst_25 : f32 to vector<16x1xf32>
    %54 = arith.divf %52, %53 : vector<16x1xf32>
    %55 = vector.broadcast %54 : vector<16x1xf32> to vector<16x32xf32>
    %56 = arith.subf %40, %55 : vector<16x32xf32>
    %57 = arith.mulf %56, %56 : vector<16x32xf32>
    %cst_26 = arith.constant dense<0.000000e+00> : vector<16xf32>
    %58 = vector.multi_reduction <add>, %57, %cst_26 [1] : vector<16x32xf32> to vector<16xf32>
    %59 = vector.shape_cast %58 : vector<16xf32> to vector<16x1xf32>
    %cst_27 = arith.constant 3.200000e+01 : f32
    %60 = vector.broadcast %cst_27 : f32 to vector<16x1xf32>
    %61 = arith.divf %59, %60 : vector<16x1xf32>
    %62 = vector.broadcast %54 : vector<16x1xf32> to vector<16x32xf32>
    %63 = arith.subf %40, %62 : vector<16x32xf32>
    %cst_28 = arith.constant 9.99999997E-7 : f32
    %64 = vector.broadcast %cst_28 : f32 to vector<16x1xf32>
    %65 = arith.addf %61, %64 : vector<16x1xf32>
    %66 = math.rsqrt %65 : vector<16x1xf32>
    %67 = vector.broadcast %66 : vector<16x1xf32> to vector<16x32xf32>
    %68 = arith.mulf %63, %67 : vector<16x32xf32>
    %69 = vector.broadcast %48 : vector<1x32xf32> to vector<16x32xf32>
    %70 = arith.mulf %68, %69 : vector<16x32xf32>
    %71 = vector.broadcast %50 : vector<1x32xf32> to vector<16x32xf32>
    %72 = arith.addf %70, %71 : vector<16x32xf32>
    %c0_29 = arith.constant 0 : index
    %c0_30 = arith.constant 0 : index
    %c0_31 = arith.constant 0 : index
    %73 = vector.load %arg8[%c0_29, %c0_30, %c0_31] : memref<2x32x96xf32, #tpu.memory_space<vmem>>, vector<1x32x96xf32>
    %74 = vector.shape_cast %73 : vector<1x32x96xf32> to vector<32x96xf32>
    %cst_32 = arith.constant dense<0.000000e+00> : vector<16x96xf32>
    %75 = tpu.matmul %72, %74, %cst_32 {dimension_numbers = #tpu.dot_dimension_numbers<[1], [0], [0], [1], [0, 0, 1, 1], [], []>} : vector<16x32xf32>, vector<32x96xf32>, vector<16x96xf32> -> vector<16x96xf32>
    %c0_33 = arith.constant 0 : index
    %c0_34 = arith.constant 0 : index
    %c0_35 = arith.constant 0 : index
    %76 = vector.load %arg9[%c0_33, %c0_34, %c0_35] : memref<2x1x96xf32, #tpu.memory_space<vmem>>, vector<1x1x96xf32>
    %77 = vector.shape_cast %76 : vector<1x1x96xf32> to vector<1x96xf32>
    %78 = vector.broadcast %77 : vector<1x96xf32> to vector<16x96xf32>
    %79 = arith.addf %75, %78 : vector<16x96xf32>
    %80 = vector.extract_strided_slice %79 {offsets = [0, 0], sizes = [16, 8], strides = [1, 1]} : vector<16x96xf32> to vector<16x8xf32>
    %cst_36 = arith.constant 0.353553385 : f32
    %81 = vector.broadcast %cst_36 : f32 to vector<16x8xf32>
    %82 = arith.mulf %80, %81 : vector<16x8xf32>
    %83 = vector.shape_cast %82 : vector<16x8xf32> to vector<2x8x8xf32>
    %84 = vector.extract_strided_slice %79 {offsets = [0, 32], sizes = [16, 8], strides = [1, 1]} : vector<16x96xf32> to vector<16x8xf32>
    %85 = vector.shape_cast %84 : vector<16x8xf32> to vector<2x8x8xf32>
    %86 = vector.extract_strided_slice %79 {offsets = [0, 64], sizes = [16, 8], strides = [1, 1]} : vector<16x96xf32> to vector<16x8xf32>
    %87 = vector.shape_cast %86 : vector<16x8xf32> to vector<2x8x8xf32>
    "tpu.trace_start"() <{level = 10 : i32, message = "bqd,bkd->bqk"}> : () -> ()
    %cst_37 = arith.constant dense<0.000000e+00> : vector<2x8x8xf32>
    %88 = tpu.matmul %83, %85, %cst_37 {dimension_numbers = #tpu.dot_dimension_numbers<[2], [2], [1], [1], [0, 0, 0, 1, 1, 1], [0], [0]>} : vector<2x8x8xf32>, vector<2x8x8xf32>, vector<2x8x8xf32> -> vector<2x8x8xf32>
    "tpu.trace_stop"() : () -> ()
    %89 = vector.broadcast %46 : vector<1x1x8xf32> to vector<2x8x8xf32>
    %90 = arith.addf %88, %89 : vector<2x8x8xf32>
    %cst_38 = arith.constant dense<0xFF800000> : vector<2x8xf32>
    %91 = vector.multi_reduction <maximumf>, %90, %cst_38 [2] : vector<2x8x8xf32> to vector<2x8xf32>
    %92 = vector.shape_cast %91 : vector<2x8xf32> to vector<2x8x1xf32>
    %93 = vector.broadcast %92 : vector<2x8x1xf32> to vector<2x8x8xf32>
    %94 = arith.subf %90, %93 : vector<2x8x8xf32>
    %95 = math.exp %94 : vector<2x8x8xf32>
    %cst_39 = arith.constant dense<0.000000e+00> : vector<2x8xf32>
    %96 = vector.multi_reduction <add>, %95, %cst_39 [2] : vector<2x8x8xf32> to vector<2x8xf32>
    %97 = vector.shape_cast %96 : vector<2x8xf32> to vector<2x8x1xf32>
    %98 = tpu.reciprocal %97 {approx = true} : vector<2x8x1xf32> -> vector<2x8x1xf32>
    %99 = vector.broadcast %98 : vector<2x8x1xf32> to vector<2x8x8xf32>
    %100 = arith.mulf %95, %99 : vector<2x8x8xf32>
    "tpu.trace_start"() <{level = 10 : i32, message = "bqk,bkd->bqd"}> : () -> ()
    %cst_40 = arith.constant dense<0.000000e+00> : vector<2x8x8xf32>
    %101 = tpu.matmul %100, %87, %cst_40 {dimension_numbers = #tpu.dot_dimension_numbers<[2], [1], [1], [2], [0, 0, 0, 1, 1, 2], [0], [0]>} : vector<2x8x8xf32>, vector<2x8x8xf32>, vector<2x8x8xf32> -> vector<2x8x8xf32>
    "tpu.trace_stop"() : () -> ()
    %102 = vector.extract_strided_slice %79 {offsets = [0, 8], sizes = [16, 8], strides = [1, 1]} : vector<16x96xf32> to vector<16x8xf32>
    %cst_41 = arith.constant 0.353553385 : f32
    %103 = vector.broadcast %cst_41 : f32 to vector<16x8xf32>
    %104 = arith.mulf %102, %103 : vector<16x8xf32>
    %105 = vector.shape_cast %104 : vector<16x8xf32> to vector<2x8x8xf32>
    %106 = vector.extract_strided_slice %79 {offsets = [0, 40], sizes = [16, 8], strides = [1, 1]} : vector<16x96xf32> to vector<16x8xf32>
    %107 = vector.shape_cast %106 : vector<16x8xf32> to vector<2x8x8xf32>
    %108 = vector.extract_strided_slice %79 {offsets = [0, 72], sizes = [16, 8], strides = [1, 1]} : vector<16x96xf32> to vector<16x8xf32>
    %109 = vector.shape_cast %108 : vector<16x8xf32> to vector<2x8x8xf32>
    "tpu.trace_start"() <{level = 10 : i32, message = "bqd,bkd->bqk"}> : () -> ()
    %cst_42 = arith.constant dense<0.000000e+00> : vector<2x8x8xf32>
    %110 = tpu.matmul %105, %107, %cst_42 {dimension_numbers = #tpu.dot_dimension_numbers<[2], [2], [1], [1], [0, 0, 0, 1, 1, 1], [0], [0]>} : vector<2x8x8xf32>, vector<2x8x8xf32>, vector<2x8x8xf32> -> vector<2x8x8xf32>
    "tpu.trace_stop"() : () -> ()
    %111 = vector.broadcast %46 : vector<1x1x8xf32> to vector<2x8x8xf32>
    %112 = arith.addf %110, %111 : vector<2x8x8xf32>
    %cst_43 = arith.constant dense<0xFF800000> : vector<2x8xf32>
    %113 = vector.multi_reduction <maximumf>, %112, %cst_43 [2] : vector<2x8x8xf32> to vector<2x8xf32>
    %114 = vector.shape_cast %113 : vector<2x8xf32> to vector<2x8x1xf32>
    %115 = vector.broadcast %114 : vector<2x8x1xf32> to vector<2x8x8xf32>
    %116 = arith.subf %112, %115 : vector<2x8x8xf32>
    %117 = math.exp %116 : vector<2x8x8xf32>
    %cst_44 = arith.constant dense<0.000000e+00> : vector<2x8xf32>
    %118 = vector.multi_reduction <add>, %117, %cst_44 [2] : vector<2x8x8xf32> to vector<2x8xf32>
    %119 = vector.shape_cast %118 : vector<2x8xf32> to vector<2x8x1xf32>
    %120 = tpu.reciprocal %119 {approx = true} : vector<2x8x1xf32> -> vector<2x8x1xf32>
    %121 = vector.broadcast %120 : vector<2x8x1xf32> to vector<2x8x8xf32>
    %122 = arith.mulf %117, %121 : vector<2x8x8xf32>
    "tpu.trace_start"() <{level = 10 : i32, message = "bqk,bkd->bqd"}> : () -> ()
    %cst_45 = arith.constant dense<0.000000e+00> : vector<2x8x8xf32>
    %123 = tpu.matmul %122, %109, %cst_45 {dimension_numbers = #tpu.dot_dimension_numbers<[2], [1], [1], [2], [0, 0, 0, 1, 1, 2], [0], [0]>} : vector<2x8x8xf32>, vector<2x8x8xf32>, vector<2x8x8xf32> -> vector<2x8x8xf32>
    "tpu.trace_stop"() : () -> ()
    %124 = vector.extract_strided_slice %79 {offsets = [0, 16], sizes = [16, 8], strides = [1, 1]} : vector<16x96xf32> to vector<16x8xf32>
    %cst_46 = arith.constant 0.353553385 : f32
    %125 = vector.broadcast %cst_46 : f32 to vector<16x8xf32>
    %126 = arith.mulf %124, %125 : vector<16x8xf32>
    %127 = vector.shape_cast %126 : vector<16x8xf32> to vector<2x8x8xf32>
    %128 = vector.extract_strided_slice %79 {offsets = [0, 48], sizes = [16, 8], strides = [1, 1]} : vector<16x96xf32> to vector<16x8xf32>
    %129 = vector.shape_cast %128 : vector<16x8xf32> to vector<2x8x8xf32>
    %130 = vector.extract_strided_slice %79 {offsets = [0, 80], sizes = [16, 8], strides = [1, 1]} : vector<16x96xf32> to vector<16x8xf32>
    %131 = vector.shape_cast %130 : vector<16x8xf32> to vector<2x8x8xf32>
    "tpu.trace_start"() <{level = 10 : i32, message = "bqd,bkd->bqk"}> : () -> ()
    %cst_47 = arith.constant dense<0.000000e+00> : vector<2x8x8xf32>
    %132 = tpu.matmul %127, %129, %cst_47 {dimension_numbers = #tpu.dot_dimension_numbers<[2], [2], [1], [1], [0, 0, 0, 1, 1, 1], [0], [0]>} : vector<2x8x8xf32>, vector<2x8x8xf32>, vector<2x8x8xf32> -> vector<2x8x8xf32>
    "tpu.trace_stop"() : () -> ()
    %133 = vector.broadcast %46 : vector<1x1x8xf32> to vector<2x8x8xf32>
    %134 = arith.addf %132, %133 : vector<2x8x8xf32>
    %cst_48 = arith.constant dense<0xFF800000> : vector<2x8xf32>
    %135 = vector.multi_reduction <maximumf>, %134, %cst_48 [2] : vector<2x8x8xf32> to vector<2x8xf32>
    %136 = vector.shape_cast %135 : vector<2x8xf32> to vector<2x8x1xf32>
    %137 = vector.broadcast %136 : vector<2x8x1xf32> to vector<2x8x8xf32>
    %138 = arith.subf %134, %137 : vector<2x8x8xf32>
    %139 = math.exp %138 : vector<2x8x8xf32>
    %cst_49 = arith.constant dense<0.000000e+00> : vector<2x8xf32>
    %140 = vector.multi_reduction <add>, %139, %cst_49 [2] : vector<2x8x8xf32> to vector<2x8xf32>
    %141 = vector.shape_cast %140 : vector<2x8xf32> to vector<2x8x1xf32>
    %142 = tpu.reciprocal %141 {approx = true} : vector<2x8x1xf32> -> vector<2x8x1xf32>
    %143 = vector.broadcast %142 : vector<2x8x1xf32> to vector<2x8x8xf32>
    %144 = arith.mulf %139, %143 : vector<2x8x8xf32>
    "tpu.trace_start"() <{level = 10 : i32, message = "bqk,bkd->bqd"}> : () -> ()
    %cst_50 = arith.constant dense<0.000000e+00> : vector<2x8x8xf32>
    %145 = tpu.matmul %144, %131, %cst_50 {dimension_numbers = #tpu.dot_dimension_numbers<[2], [1], [1], [2], [0, 0, 0, 1, 1, 2], [0], [0]>} : vector<2x8x8xf32>, vector<2x8x8xf32>, vector<2x8x8xf32> -> vector<2x8x8xf32>
    "tpu.trace_stop"() : () -> ()
    %146 = vector.extract_strided_slice %79 {offsets = [0, 24], sizes = [16, 8], strides = [1, 1]} : vector<16x96xf32> to vector<16x8xf32>
    %cst_51 = arith.constant 0.353553385 : f32
    %147 = vector.broadcast %cst_51 : f32 to vector<16x8xf32>
    %148 = arith.mulf %146, %147 : vector<16x8xf32>
    %149 = vector.shape_cast %148 : vector<16x8xf32> to vector<2x8x8xf32>
    %150 = vector.extract_strided_slice %79 {offsets = [0, 56], sizes = [16, 8], strides = [1, 1]} : vector<16x96xf32> to vector<16x8xf32>
    %151 = vector.shape_cast %150 : vector<16x8xf32> to vector<2x8x8xf32>
    %152 = vector.extract_strided_slice %79 {offsets = [0, 88], sizes = [16, 8], strides = [1, 1]} : vector<16x96xf32> to vector<16x8xf32>
    %153 = vector.shape_cast %152 : vector<16x8xf32> to vector<2x8x8xf32>
    "tpu.trace_start"() <{level = 10 : i32, message = "bqd,bkd->bqk"}> : () -> ()
    %cst_52 = arith.constant dense<0.000000e+00> : vector<2x8x8xf32>
    %154 = tpu.matmul %149, %151, %cst_52 {dimension_numbers = #tpu.dot_dimension_numbers<[2], [2], [1], [1], [0, 0, 0, 1, 1, 1], [0], [0]>} : vector<2x8x8xf32>, vector<2x8x8xf32>, vector<2x8x8xf32> -> vector<2x8x8xf32>
    "tpu.trace_stop"() : () -> ()
    %155 = vector.broadcast %46 : vector<1x1x8xf32> to vector<2x8x8xf32>
    %156 = arith.addf %154, %155 : vector<2x8x8xf32>
    %cst_53 = arith.constant dense<0xFF800000> : vector<2x8xf32>
    %157 = vector.multi_reduction <maximumf>, %156, %cst_53 [2] : vector<2x8x8xf32> to vector<2x8xf32>
    %158 = vector.shape_cast %157 : vector<2x8xf32> to vector<2x8x1xf32>
    %159 = vector.broadcast %158 : vector<2x8x1xf32> to vector<2x8x8xf32>
    %160 = arith.subf %156, %159 : vector<2x8x8xf32>
    %161 = math.exp %160 : vector<2x8x8xf32>
    %cst_54 = arith.constant dense<0.000000e+00> : vector<2x8xf32>
    %162 = vector.multi_reduction <add>, %161, %cst_54 [2] : vector<2x8x8xf32> to vector<2x8xf32>
    %163 = vector.shape_cast %162 : vector<2x8xf32> to vector<2x8x1xf32>
    %164 = tpu.reciprocal %163 {approx = true} : vector<2x8x1xf32> -> vector<2x8x1xf32>
    %165 = vector.broadcast %164 : vector<2x8x1xf32> to vector<2x8x8xf32>
    %166 = arith.mulf %161, %165 : vector<2x8x8xf32>
    "tpu.trace_start"() <{level = 10 : i32, message = "bqk,bkd->bqd"}> : () -> ()
    %cst_55 = arith.constant dense<0.000000e+00> : vector<2x8x8xf32>
    %167 = tpu.matmul %166, %153, %cst_55 {dimension_numbers = #tpu.dot_dimension_numbers<[2], [1], [1], [2], [0, 0, 0, 1, 1, 2], [0], [0]>} : vector<2x8x8xf32>, vector<2x8x8xf32>, vector<2x8x8xf32> -> vector<2x8x8xf32>
    "tpu.trace_stop"() : () -> ()
    %168 = tpu.concatenate %101, %123, %145, %167 in 2 : vector<2x8x8xf32>, vector<2x8x8xf32>, vector<2x8x8xf32>, vector<2x8x8xf32> -> vector<2x8x32xf32>
    %169 = vector.shape_cast %168 : vector<2x8x32xf32> to vector<16x32xf32>
    %c0_56 = arith.constant 0 : index
    %c0_57 = arith.constant 0 : index
    %c0_58 = arith.constant 0 : index
    %170 = vector.load %arg10[%c0_56, %c0_57, %c0_58] : memref<2x32x32xf32, #tpu.memory_space<vmem>>, vector<1x32x32xf32>
    %171 = vector.shape_cast %170 : vector<1x32x32xf32> to vector<32x32xf32>
    %cst_59 = arith.constant dense<0.000000e+00> : vector<16x32xf32>
    %172 = tpu.matmul %169, %171, %cst_59 {dimension_numbers = #tpu.dot_dimension_numbers<[1], [0], [0], [1], [0, 0, 1, 1], [], []>} : vector<16x32xf32>, vector<32x32xf32>, vector<16x32xf32> -> vector<16x32xf32>
    %173 = arith.addf %40, %172 : vector<16x32xf32>
    %c0_60 = arith.constant 0 : index
    %c0_61 = arith.constant 0 : index
    %c0_62 = arith.constant 0 : index
    %174 = vector.load %arg11[%c0_60, %c0_61, %c0_62] : memref<2x1x32xf32, #tpu.memory_space<vmem>>, vector<1x1x32xf32>
    %175 = vector.shape_cast %174 : vector<1x1x32xf32> to vector<1x32xf32>
    %176 = vector.broadcast %175 : vector<1x32xf32> to vector<16x32xf32>
    %177 = arith.addf %173, %176 : vector<16x32xf32>
    %c0_63 = arith.constant 0 : index
    %c0_64 = arith.constant 0 : index
    %c0_65 = arith.constant 0 : index
    %178 = vector.load %arg12[%c0_63, %c0_64, %c0_65] : memref<2x1x32xf32, #tpu.memory_space<vmem>>, vector<1x1x32xf32>
    %179 = vector.shape_cast %178 : vector<1x1x32xf32> to vector<1x32xf32>
    %c0_66 = arith.constant 0 : index
    %c0_67 = arith.constant 0 : index
    %c0_68 = arith.constant 0 : index
    %180 = vector.load %arg13[%c0_66, %c0_67, %c0_68] : memref<2x1x32xf32, #tpu.memory_space<vmem>>, vector<1x1x32xf32>
    %181 = vector.shape_cast %180 : vector<1x1x32xf32> to vector<1x32xf32>
    %cst_69 = arith.constant dense<0.000000e+00> : vector<16xf32>
    %182 = vector.multi_reduction <add>, %177, %cst_69 [1] : vector<16x32xf32> to vector<16xf32>
    %183 = vector.shape_cast %182 : vector<16xf32> to vector<16x1xf32>
    %cst_70 = arith.constant 3.200000e+01 : f32
    %184 = vector.broadcast %cst_70 : f32 to vector<16x1xf32>
    %185 = arith.divf %183, %184 : vector<16x1xf32>
    %186 = vector.broadcast %185 : vector<16x1xf32> to vector<16x32xf32>
    %187 = arith.subf %177, %186 : vector<16x32xf32>
    %188 = arith.mulf %187, %187 : vector<16x32xf32>
    %cst_71 = arith.constant dense<0.000000e+00> : vector<16xf32>
    %189 = vector.multi_reduction <add>, %188, %cst_71 [1] : vector<16x32xf32> to vector<16xf32>
    %190 = vector.shape_cast %189 : vector<16xf32> to vector<16x1xf32>
    %cst_72 = arith.constant 3.200000e+01 : f32
    %191 = vector.broadcast %cst_72 : f32 to vector<16x1xf32>
    %192 = arith.divf %190, %191 : vector<16x1xf32>
    %193 = vector.broadcast %185 : vector<16x1xf32> to vector<16x32xf32>
    %194 = arith.subf %177, %193 : vector<16x32xf32>
    %cst_73 = arith.constant 9.99999997E-7 : f32
    %195 = vector.broadcast %cst_73 : f32 to vector<16x1xf32>
    %196 = arith.addf %192, %195 : vector<16x1xf32>
    %197 = math.rsqrt %196 : vector<16x1xf32>
    %198 = vector.broadcast %197 : vector<16x1xf32> to vector<16x32xf32>
    %199 = arith.mulf %194, %198 : vector<16x32xf32>
    %200 = vector.broadcast %179 : vector<1x32xf32> to vector<16x32xf32>
    %201 = arith.mulf %199, %200 : vector<16x32xf32>
    %202 = vector.broadcast %181 : vector<1x32xf32> to vector<16x32xf32>
    %203 = arith.addf %201, %202 : vector<16x32xf32>
    %c0_74 = arith.constant 0 : index
    %c0_75 = arith.constant 0 : index
    %c0_76 = arith.constant 0 : index
    %204 = vector.load %arg14[%c0_74, %c0_75, %c0_76] : memref<2x32x128xf32, #tpu.memory_space<vmem>>, vector<1x32x128xf32>
    %205 = vector.shape_cast %204 : vector<1x32x128xf32> to vector<32x128xf32>
    %cst_77 = arith.constant dense<0.000000e+00> : vector<16x128xf32>
    %206 = tpu.matmul %203, %205, %cst_77 {dimension_numbers = #tpu.dot_dimension_numbers<[1], [0], [0], [1], [0, 0, 1, 1], [], []>} : vector<16x32xf32>, vector<32x128xf32>, vector<16x128xf32> -> vector<16x128xf32>
    %c0_78 = arith.constant 0 : index
    %c0_79 = arith.constant 0 : index
    %c0_80 = arith.constant 0 : index
    %207 = vector.load %arg15[%c0_78, %c0_79, %c0_80] : memref<2x1x128xf32, #tpu.memory_space<vmem>>, vector<1x1x128xf32>
    %208 = vector.shape_cast %207 : vector<1x1x128xf32> to vector<1x128xf32>
    %209 = vector.broadcast %208 : vector<1x128xf32> to vector<16x128xf32>
    %210 = arith.addf %206, %209 : vector<16x128xf32>
    %cst_81 = arith.constant 0.707106769 : f32
    %211 = vector.broadcast %cst_81 : f32 to vector<16x128xf32>
    %212 = arith.mulf %210, %211 : vector<16x128xf32>
    %213 = math.absf %212 : vector<16x128xf32>
    %cst_82 = arith.constant 0.327591091 : f32
    %214 = vector.broadcast %cst_82 : f32 to vector<16x128xf32>
    %215 = arith.mulf %214, %213 : vector<16x128xf32>
    %cst_83 = arith.constant 1.000000e+00 : f32
    %216 = vector.broadcast %cst_83 : f32 to vector<16x128xf32>
    %217 = arith.addf %216, %215 : vector<16x128xf32>
    %cst_84 = arith.constant 1.000000e+00 : f32
    %218 = vector.broadcast %cst_84 : f32 to vector<16x128xf32>
    %219 = arith.divf %218, %217 : vector<16x128xf32>
    %cst_85 = arith.constant 1.06140542 : f32
    %220 = vector.broadcast %cst_85 : f32 to vector<16x128xf32>
    %221 = arith.mulf %220, %219 : vector<16x128xf32>
    %cst_86 = arith.constant 1.45315206 : f32
    %222 = vector.broadcast %cst_86 : f32 to vector<16x128xf32>
    %223 = arith.subf %221, %222 : vector<16x128xf32>
    %224 = arith.mulf %223, %219 : vector<16x128xf32>
    %cst_87 = arith.constant 1.42141378 : f32
    %225 = vector.broadcast %cst_87 : f32 to vector<16x128xf32>
    %226 = arith.addf %224, %225 : vector<16x128xf32>
    %227 = arith.mulf %226, %219 : vector<16x128xf32>
    %cst_88 = arith.constant 0.284496725 : f32
    %228 = vector.broadcast %cst_88 : f32 to vector<16x128xf32>
    %229 = arith.subf %227, %228 : vector<16x128xf32>
    %230 = arith.mulf %229, %219 : vector<16x128xf32>
    %cst_89 = arith.constant 0.254829586 : f32
    %231 = vector.broadcast %cst_89 : f32 to vector<16x128xf32>
    %232 = arith.addf %230, %231 : vector<16x128xf32>
    %233 = arith.mulf %232, %219 : vector<16x128xf32>
    %cst_90 = arith.constant 0.000000e+00 : f32
    %234 = vector.broadcast %cst_90 : f32 to vector<16x128xf32>
    %235 = arith.subf %234, %213 : vector<16x128xf32>
    %236 = arith.mulf %235, %213 : vector<16x128xf32>
    %237 = math.exp %236 : vector<16x128xf32>
    %238 = arith.mulf %233, %237 : vector<16x128xf32>
    %cst_91 = arith.constant 1.000000e+00 : f32
    %239 = vector.broadcast %cst_91 : f32 to vector<16x128xf32>
    %240 = arith.subf %239, %238 : vector<16x128xf32>
    %cst_92 = arith.constant 0.000000e+00 : f32
    %241 = vector.broadcast %cst_92 : f32 to vector<16x128xf32>
    %242 = arith.cmpf oge, %212, %241 : vector<16x128xf32>
    %cst_93 = arith.constant 0.000000e+00 : f32
    %243 = vector.broadcast %cst_93 : f32 to vector<16x128xf32>
    %244 = arith.subf %243, %240 : vector<16x128xf32>
    %245 = arith.select %242, %240, %244 : vector<16x128xi1>, vector<16x128xf32>
    %cst_94 = arith.constant 5.000000e-01 : f32
    %246 = vector.broadcast %cst_94 : f32 to vector<16x128xf32>
    %247 = arith.mulf %246, %210 : vector<16x128xf32>
    %cst_95 = arith.constant 1.000000e+00 : f32
    %248 = vector.broadcast %cst_95 : f32 to vector<16x128xf32>
    %249 = arith.addf %248, %245 : vector<16x128xf32>
    %250 = arith.mulf %247, %249 : vector<16x128xf32>
    %c0_96 = arith.constant 0 : index
    %c0_97 = arith.constant 0 : index
    %c0_98 = arith.constant 0 : index
    %251 = vector.load %arg16[%c0_96, %c0_97, %c0_98] : memref<2x128x32xf32, #tpu.memory_space<vmem>>, vector<1x128x32xf32>
    %252 = vector.shape_cast %251 : vector<1x128x32xf32> to vector<128x32xf32>
    %cst_99 = arith.constant dense<0.000000e+00> : vector<16x32xf32>
    %253 = tpu.matmul %250, %252, %cst_99 {dimension_numbers = #tpu.dot_dimension_numbers<[1], [0], [0], [1], [0, 0, 1, 1], [], []>} : vector<16x128xf32>, vector<128x32xf32>, vector<16x32xf32> -> vector<16x32xf32>
    %254 = arith.addf %177, %253 : vector<16x32xf32>
    %c0_100 = arith.constant 0 : index
    %c0_101 = arith.constant 0 : index
    %c0_102 = arith.constant 0 : index
    %255 = vector.load %arg17[%c0_100, %c0_101, %c0_102] : memref<2x1x32xf32, #tpu.memory_space<vmem>>, vector<1x1x32xf32>
    %256 = vector.shape_cast %255 : vector<1x1x32xf32> to vector<1x32xf32>
    %257 = vector.broadcast %256 : vector<1x32xf32> to vector<16x32xf32>
    %258 = arith.addf %254, %257 : vector<16x32xf32>
    %c1 = arith.constant 1 : index
    %c0_103 = arith.constant 0 : index
    %c0_104 = arith.constant 0 : index
    %259 = vector.load %arg6[%c1, %c0_103, %c0_104] : memref<2x1x32xf32, #tpu.memory_space<vmem>>, vector<1x1x32xf32>
    %260 = vector.shape_cast %259 : vector<1x1x32xf32> to vector<1x32xf32>
    %c1_105 = arith.constant 1 : index
    %c0_106 = arith.constant 0 : index
    %c0_107 = arith.constant 0 : index
    %261 = vector.load %arg7[%c1_105, %c0_106, %c0_107] : memref<2x1x32xf32, #tpu.memory_space<vmem>>, vector<1x1x32xf32>
    %262 = vector.shape_cast %261 : vector<1x1x32xf32> to vector<1x32xf32>
    %cst_108 = arith.constant dense<0.000000e+00> : vector<16xf32>
    %263 = vector.multi_reduction <add>, %258, %cst_108 [1] : vector<16x32xf32> to vector<16xf32>
    %264 = vector.shape_cast %263 : vector<16xf32> to vector<16x1xf32>
    %cst_109 = arith.constant 3.200000e+01 : f32
    %265 = vector.broadcast %cst_109 : f32 to vector<16x1xf32>
    %266 = arith.divf %264, %265 : vector<16x1xf32>
    %267 = vector.broadcast %266 : vector<16x1xf32> to vector<16x32xf32>
    %268 = arith.subf %258, %267 : vector<16x32xf32>
    %269 = arith.mulf %268, %268 : vector<16x32xf32>
    %cst_110 = arith.constant dense<0.000000e+00> : vector<16xf32>
    %270 = vector.multi_reduction <add>, %269, %cst_110 [1] : vector<16x32xf32> to vector<16xf32>
    %271 = vector.shape_cast %270 : vector<16xf32> to vector<16x1xf32>
    %cst_111 = arith.constant 3.200000e+01 : f32
    %272 = vector.broadcast %cst_111 : f32 to vector<16x1xf32>
    %273 = arith.divf %271, %272 : vector<16x1xf32>
    %274 = vector.broadcast %266 : vector<16x1xf32> to vector<16x32xf32>
    %275 = arith.subf %258, %274 : vector<16x32xf32>
    %cst_112 = arith.constant 9.99999997E-7 : f32
    %276 = vector.broadcast %cst_112 : f32 to vector<16x1xf32>
    %277 = arith.addf %273, %276 : vector<16x1xf32>
    %278 = math.rsqrt %277 : vector<16x1xf32>
    %279 = vector.broadcast %278 : vector<16x1xf32> to vector<16x32xf32>
    %280 = arith.mulf %275, %279 : vector<16x32xf32>
    %281 = vector.broadcast %260 : vector<1x32xf32> to vector<16x32xf32>
    %282 = arith.mulf %280, %281 : vector<16x32xf32>
    %283 = vector.broadcast %262 : vector<1x32xf32> to vector<16x32xf32>
    %284 = arith.addf %282, %283 : vector<16x32xf32>
    %c1_113 = arith.constant 1 : index
    %c0_114 = arith.constant 0 : index
    %c0_115 = arith.constant 0 : index
    %285 = vector.load %arg8[%c1_113, %c0_114, %c0_115] : memref<2x32x96xf32, #tpu.memory_space<vmem>>, vector<1x32x96xf32>
    %286 = vector.shape_cast %285 : vector<1x32x96xf32> to vector<32x96xf32>
    %cst_116 = arith.constant dense<0.000000e+00> : vector<16x96xf32>
    %287 = tpu.matmul %284, %286, %cst_116 {dimension_numbers = #tpu.dot_dimension_numbers<[1], [0], [0], [1], [0, 0, 1, 1], [], []>} : vector<16x32xf32>, vector<32x96xf32>, vector<16x96xf32> -> vector<16x96xf32>
    %c1_117 = arith.constant 1 : index
    %c0_118 = arith.constant 0 : index
    %c0_119 = arith.constant 0 : index
    %288 = vector.load %arg9[%c1_117, %c0_118, %c0_119] : memref<2x1x96xf32, #tpu.memory_space<vmem>>, vector<1x1x96xf32>
    %289 = vector.shape_cast %288 : vector<1x1x96xf32> to vector<1x96xf32>
    %290 = vector.broadcast %289 : vector<1x96xf32> to vector<16x96xf32>
    %291 = arith.addf %287, %290 : vector<16x96xf32>
    %292 = vector.extract_strided_slice %291 {offsets = [0, 0], sizes = [16, 8], strides = [1, 1]} : vector<16x96xf32> to vector<16x8xf32>
    %cst_120 = arith.constant 0.353553385 : f32
    %293 = vector.broadcast %cst_120 : f32 to vector<16x8xf32>
    %294 = arith.mulf %292, %293 : vector<16x8xf32>
    %295 = vector.shape_cast %294 : vector<16x8xf32> to vector<2x8x8xf32>
    %296 = vector.extract_strided_slice %291 {offsets = [0, 32], sizes = [16, 8], strides = [1, 1]} : vector<16x96xf32> to vector<16x8xf32>
    %297 = vector.shape_cast %296 : vector<16x8xf32> to vector<2x8x8xf32>
    %298 = vector.extract_strided_slice %291 {offsets = [0, 64], sizes = [16, 8], strides = [1, 1]} : vector<16x96xf32> to vector<16x8xf32>
    %299 = vector.shape_cast %298 : vector<16x8xf32> to vector<2x8x8xf32>
    "tpu.trace_start"() <{level = 10 : i32, message = "bqd,bkd->bqk"}> : () -> ()
    %cst_121 = arith.constant dense<0.000000e+00> : vector<2x8x8xf32>
    %300 = tpu.matmul %295, %297, %cst_121 {dimension_numbers = #tpu.dot_dimension_numbers<[2], [2], [1], [1], [0, 0, 0, 1, 1, 1], [0], [0]>} : vector<2x8x8xf32>, vector<2x8x8xf32>, vector<2x8x8xf32> -> vector<2x8x8xf32>
    "tpu.trace_stop"() : () -> ()
    %301 = vector.broadcast %46 : vector<1x1x8xf32> to vector<2x8x8xf32>
    %302 = arith.addf %300, %301 : vector<2x8x8xf32>
    %cst_122 = arith.constant dense<0xFF800000> : vector<2x8xf32>
    %303 = vector.multi_reduction <maximumf>, %302, %cst_122 [2] : vector<2x8x8xf32> to vector<2x8xf32>
    %304 = vector.shape_cast %303 : vector<2x8xf32> to vector<2x8x1xf32>
    %305 = vector.broadcast %304 : vector<2x8x1xf32> to vector<2x8x8xf32>
    %306 = arith.subf %302, %305 : vector<2x8x8xf32>
    %307 = math.exp %306 : vector<2x8x8xf32>
    %cst_123 = arith.constant dense<0.000000e+00> : vector<2x8xf32>
    %308 = vector.multi_reduction <add>, %307, %cst_123 [2] : vector<2x8x8xf32> to vector<2x8xf32>
    %309 = vector.shape_cast %308 : vector<2x8xf32> to vector<2x8x1xf32>
    %310 = tpu.reciprocal %309 {approx = true} : vector<2x8x1xf32> -> vector<2x8x1xf32>
    %311 = vector.broadcast %310 : vector<2x8x1xf32> to vector<2x8x8xf32>
    %312 = arith.mulf %307, %311 : vector<2x8x8xf32>
    "tpu.trace_start"() <{level = 10 : i32, message = "bqk,bkd->bqd"}> : () -> ()
    %cst_124 = arith.constant dense<0.000000e+00> : vector<2x8x8xf32>
    %313 = tpu.matmul %312, %299, %cst_124 {dimension_numbers = #tpu.dot_dimension_numbers<[2], [1], [1], [2], [0, 0, 0, 1, 1, 2], [0], [0]>} : vector<2x8x8xf32>, vector<2x8x8xf32>, vector<2x8x8xf32> -> vector<2x8x8xf32>
    "tpu.trace_stop"() : () -> ()
    %314 = vector.extract_strided_slice %291 {offsets = [0, 8], sizes = [16, 8], strides = [1, 1]} : vector<16x96xf32> to vector<16x8xf32>
    %cst_125 = arith.constant 0.353553385 : f32
    %315 = vector.broadcast %cst_125 : f32 to vector<16x8xf32>
    %316 = arith.mulf %314, %315 : vector<16x8xf32>
    %317 = vector.shape_cast %316 : vector<16x8xf32> to vector<2x8x8xf32>
    %318 = vector.extract_strided_slice %291 {offsets = [0, 40], sizes = [16, 8], strides = [1, 1]} : vector<16x96xf32> to vector<16x8xf32>
    %319 = vector.shape_cast %318 : vector<16x8xf32> to vector<2x8x8xf32>
    %320 = vector.extract_strided_slice %291 {offsets = [0, 72], sizes = [16, 8], strides = [1, 1]} : vector<16x96xf32> to vector<16x8xf32>
    %321 = vector.shape_cast %320 : vector<16x8xf32> to vector<2x8x8xf32>
    "tpu.trace_start"() <{level = 10 : i32, message = "bqd,bkd->bqk"}> : () -> ()
    %cst_126 = arith.constant dense<0.000000e+00> : vector<2x8x8xf32>
    %322 = tpu.matmul %317, %319, %cst_126 {dimension_numbers = #tpu.dot_dimension_numbers<[2], [2], [1], [1], [0, 0, 0, 1, 1, 1], [0], [0]>} : vector<2x8x8xf32>, vector<2x8x8xf32>, vector<2x8x8xf32> -> vector<2x8x8xf32>
    "tpu.trace_stop"() : () -> ()
    %323 = vector.broadcast %46 : vector<1x1x8xf32> to vector<2x8x8xf32>
    %324 = arith.addf %322, %323 : vector<2x8x8xf32>
    %cst_127 = arith.constant dense<0xFF800000> : vector<2x8xf32>
    %325 = vector.multi_reduction <maximumf>, %324, %cst_127 [2] : vector<2x8x8xf32> to vector<2x8xf32>
    %326 = vector.shape_cast %325 : vector<2x8xf32> to vector<2x8x1xf32>
    %327 = vector.broadcast %326 : vector<2x8x1xf32> to vector<2x8x8xf32>
    %328 = arith.subf %324, %327 : vector<2x8x8xf32>
    %329 = math.exp %328 : vector<2x8x8xf32>
    %cst_128 = arith.constant dense<0.000000e+00> : vector<2x8xf32>
    %330 = vector.multi_reduction <add>, %329, %cst_128 [2] : vector<2x8x8xf32> to vector<2x8xf32>
    %331 = vector.shape_cast %330 : vector<2x8xf32> to vector<2x8x1xf32>
    %332 = tpu.reciprocal %331 {approx = true} : vector<2x8x1xf32> -> vector<2x8x1xf32>
    %333 = vector.broadcast %332 : vector<2x8x1xf32> to vector<2x8x8xf32>
    %334 = arith.mulf %329, %333 : vector<2x8x8xf32>
    "tpu.trace_start"() <{level = 10 : i32, message = "bqk,bkd->bqd"}> : () -> ()
    %cst_129 = arith.constant dense<0.000000e+00> : vector<2x8x8xf32>
    %335 = tpu.matmul %334, %321, %cst_129 {dimension_numbers = #tpu.dot_dimension_numbers<[2], [1], [1], [2], [0, 0, 0, 1, 1, 2], [0], [0]>} : vector<2x8x8xf32>, vector<2x8x8xf32>, vector<2x8x8xf32> -> vector<2x8x8xf32>
    "tpu.trace_stop"() : () -> ()
    %336 = vector.extract_strided_slice %291 {offsets = [0, 16], sizes = [16, 8], strides = [1, 1]} : vector<16x96xf32> to vector<16x8xf32>
    %cst_130 = arith.constant 0.353553385 : f32
    %337 = vector.broadcast %cst_130 : f32 to vector<16x8xf32>
    %338 = arith.mulf %336, %337 : vector<16x8xf32>
    %339 = vector.shape_cast %338 : vector<16x8xf32> to vector<2x8x8xf32>
    %340 = vector.extract_strided_slice %291 {offsets = [0, 48], sizes = [16, 8], strides = [1, 1]} : vector<16x96xf32> to vector<16x8xf32>
    %341 = vector.shape_cast %340 : vector<16x8xf32> to vector<2x8x8xf32>
    %342 = vector.extract_strided_slice %291 {offsets = [0, 80], sizes = [16, 8], strides = [1, 1]} : vector<16x96xf32> to vector<16x8xf32>
    %343 = vector.shape_cast %342 : vector<16x8xf32> to vector<2x8x8xf32>
    "tpu.trace_start"() <{level = 10 : i32, message = "bqd,bkd->bqk"}> : () -> ()
    %cst_131 = arith.constant dense<0.000000e+00> : vector<2x8x8xf32>
    %344 = tpu.matmul %339, %341, %cst_131 {dimension_numbers = #tpu.dot_dimension_numbers<[2], [2], [1], [1], [0, 0, 0, 1, 1, 1], [0], [0]>} : vector<2x8x8xf32>, vector<2x8x8xf32>, vector<2x8x8xf32> -> vector<2x8x8xf32>
    "tpu.trace_stop"() : () -> ()
    %345 = vector.broadcast %46 : vector<1x1x8xf32> to vector<2x8x8xf32>
    %346 = arith.addf %344, %345 : vector<2x8x8xf32>
    %cst_132 = arith.constant dense<0xFF800000> : vector<2x8xf32>
    %347 = vector.multi_reduction <maximumf>, %346, %cst_132 [2] : vector<2x8x8xf32> to vector<2x8xf32>
    %348 = vector.shape_cast %347 : vector<2x8xf32> to vector<2x8x1xf32>
    %349 = vector.broadcast %348 : vector<2x8x1xf32> to vector<2x8x8xf32>
    %350 = arith.subf %346, %349 : vector<2x8x8xf32>
    %351 = math.exp %350 : vector<2x8x8xf32>
    %cst_133 = arith.constant dense<0.000000e+00> : vector<2x8xf32>
    %352 = vector.multi_reduction <add>, %351, %cst_133 [2] : vector<2x8x8xf32> to vector<2x8xf32>
    %353 = vector.shape_cast %352 : vector<2x8xf32> to vector<2x8x1xf32>
    %354 = tpu.reciprocal %353 {approx = true} : vector<2x8x1xf32> -> vector<2x8x1xf32>
    %355 = vector.broadcast %354 : vector<2x8x1xf32> to vector<2x8x8xf32>
    %356 = arith.mulf %351, %355 : vector<2x8x8xf32>
    "tpu.trace_start"() <{level = 10 : i32, message = "bqk,bkd->bqd"}> : () -> ()
    %cst_134 = arith.constant dense<0.000000e+00> : vector<2x8x8xf32>
    %357 = tpu.matmul %356, %343, %cst_134 {dimension_numbers = #tpu.dot_dimension_numbers<[2], [1], [1], [2], [0, 0, 0, 1, 1, 2], [0], [0]>} : vector<2x8x8xf32>, vector<2x8x8xf32>, vector<2x8x8xf32> -> vector<2x8x8xf32>
    "tpu.trace_stop"() : () -> ()
    %358 = vector.extract_strided_slice %291 {offsets = [0, 24], sizes = [16, 8], strides = [1, 1]} : vector<16x96xf32> to vector<16x8xf32>
    %cst_135 = arith.constant 0.353553385 : f32
    %359 = vector.broadcast %cst_135 : f32 to vector<16x8xf32>
    %360 = arith.mulf %358, %359 : vector<16x8xf32>
    %361 = vector.shape_cast %360 : vector<16x8xf32> to vector<2x8x8xf32>
    %362 = vector.extract_strided_slice %291 {offsets = [0, 56], sizes = [16, 8], strides = [1, 1]} : vector<16x96xf32> to vector<16x8xf32>
    %363 = vector.shape_cast %362 : vector<16x8xf32> to vector<2x8x8xf32>
    %364 = vector.extract_strided_slice %291 {offsets = [0, 88], sizes = [16, 8], strides = [1, 1]} : vector<16x96xf32> to vector<16x8xf32>
    %365 = vector.shape_cast %364 : vector<16x8xf32> to vector<2x8x8xf32>
    "tpu.trace_start"() <{level = 10 : i32, message = "bqd,bkd->bqk"}> : () -> ()
    %cst_136 = arith.constant dense<0.000000e+00> : vector<2x8x8xf32>
    %366 = tpu.matmul %361, %363, %cst_136 {dimension_numbers = #tpu.dot_dimension_numbers<[2], [2], [1], [1], [0, 0, 0, 1, 1, 1], [0], [0]>} : vector<2x8x8xf32>, vector<2x8x8xf32>, vector<2x8x8xf32> -> vector<2x8x8xf32>
    "tpu.trace_stop"() : () -> ()
    %367 = vector.broadcast %46 : vector<1x1x8xf32> to vector<2x8x8xf32>
    %368 = arith.addf %366, %367 : vector<2x8x8xf32>
    %cst_137 = arith.constant dense<0xFF800000> : vector<2x8xf32>
    %369 = vector.multi_reduction <maximumf>, %368, %cst_137 [2] : vector<2x8x8xf32> to vector<2x8xf32>
    %370 = vector.shape_cast %369 : vector<2x8xf32> to vector<2x8x1xf32>
    %371 = vector.broadcast %370 : vector<2x8x1xf32> to vector<2x8x8xf32>
    %372 = arith.subf %368, %371 : vector<2x8x8xf32>
    %373 = math.exp %372 : vector<2x8x8xf32>
    %cst_138 = arith.constant dense<0.000000e+00> : vector<2x8xf32>
    %374 = vector.multi_reduction <add>, %373, %cst_138 [2] : vector<2x8x8xf32> to vector<2x8xf32>
    %375 = vector.shape_cast %374 : vector<2x8xf32> to vector<2x8x1xf32>
    %376 = tpu.reciprocal %375 {approx = true} : vector<2x8x1xf32> -> vector<2x8x1xf32>
    %377 = vector.broadcast %376 : vector<2x8x1xf32> to vector<2x8x8xf32>
    %378 = arith.mulf %373, %377 : vector<2x8x8xf32>
    "tpu.trace_start"() <{level = 10 : i32, message = "bqk,bkd->bqd"}> : () -> ()
    %cst_139 = arith.constant dense<0.000000e+00> : vector<2x8x8xf32>
    %379 = tpu.matmul %378, %365, %cst_139 {dimension_numbers = #tpu.dot_dimension_numbers<[2], [1], [1], [2], [0, 0, 0, 1, 1, 2], [0], [0]>} : vector<2x8x8xf32>, vector<2x8x8xf32>, vector<2x8x8xf32> -> vector<2x8x8xf32>
    "tpu.trace_stop"() : () -> ()
    %380 = tpu.concatenate %313, %335, %357, %379 in 2 : vector<2x8x8xf32>, vector<2x8x8xf32>, vector<2x8x8xf32>, vector<2x8x8xf32> -> vector<2x8x32xf32>
    %381 = vector.shape_cast %380 : vector<2x8x32xf32> to vector<16x32xf32>
    %c1_140 = arith.constant 1 : index
    %c0_141 = arith.constant 0 : index
    %c0_142 = arith.constant 0 : index
    %382 = vector.load %arg10[%c1_140, %c0_141, %c0_142] : memref<2x32x32xf32, #tpu.memory_space<vmem>>, vector<1x32x32xf32>
    %383 = vector.shape_cast %382 : vector<1x32x32xf32> to vector<32x32xf32>
    %cst_143 = arith.constant dense<0.000000e+00> : vector<16x32xf32>
    %384 = tpu.matmul %381, %383, %cst_143 {dimension_numbers = #tpu.dot_dimension_numbers<[1], [0], [0], [1], [0, 0, 1, 1], [], []>} : vector<16x32xf32>, vector<32x32xf32>, vector<16x32xf32> -> vector<16x32xf32>
    %385 = arith.addf %258, %384 : vector<16x32xf32>
    %c1_144 = arith.constant 1 : index
    %c0_145 = arith.constant 0 : index
    %c0_146 = arith.constant 0 : index
    %386 = vector.load %arg11[%c1_144, %c0_145, %c0_146] : memref<2x1x32xf32, #tpu.memory_space<vmem>>, vector<1x1x32xf32>
    %387 = vector.shape_cast %386 : vector<1x1x32xf32> to vector<1x32xf32>
    %388 = vector.broadcast %387 : vector<1x32xf32> to vector<16x32xf32>
    %389 = arith.addf %385, %388 : vector<16x32xf32>
    %c1_147 = arith.constant 1 : index
    %c0_148 = arith.constant 0 : index
    %c0_149 = arith.constant 0 : index
    %390 = vector.load %arg12[%c1_147, %c0_148, %c0_149] : memref<2x1x32xf32, #tpu.memory_space<vmem>>, vector<1x1x32xf32>
    %391 = vector.shape_cast %390 : vector<1x1x32xf32> to vector<1x32xf32>
    %c1_150 = arith.constant 1 : index
    %c0_151 = arith.constant 0 : index
    %c0_152 = arith.constant 0 : index
    %392 = vector.load %arg13[%c1_150, %c0_151, %c0_152] : memref<2x1x32xf32, #tpu.memory_space<vmem>>, vector<1x1x32xf32>
    %393 = vector.shape_cast %392 : vector<1x1x32xf32> to vector<1x32xf32>
    %cst_153 = arith.constant dense<0.000000e+00> : vector<16xf32>
    %394 = vector.multi_reduction <add>, %389, %cst_153 [1] : vector<16x32xf32> to vector<16xf32>
    %395 = vector.shape_cast %394 : vector<16xf32> to vector<16x1xf32>
    %cst_154 = arith.constant 3.200000e+01 : f32
    %396 = vector.broadcast %cst_154 : f32 to vector<16x1xf32>
    %397 = arith.divf %395, %396 : vector<16x1xf32>
    %398 = vector.broadcast %397 : vector<16x1xf32> to vector<16x32xf32>
    %399 = arith.subf %389, %398 : vector<16x32xf32>
    %400 = arith.mulf %399, %399 : vector<16x32xf32>
    %cst_155 = arith.constant dense<0.000000e+00> : vector<16xf32>
    %401 = vector.multi_reduction <add>, %400, %cst_155 [1] : vector<16x32xf32> to vector<16xf32>
    %402 = vector.shape_cast %401 : vector<16xf32> to vector<16x1xf32>
    %cst_156 = arith.constant 3.200000e+01 : f32
    %403 = vector.broadcast %cst_156 : f32 to vector<16x1xf32>
    %404 = arith.divf %402, %403 : vector<16x1xf32>
    %405 = vector.broadcast %397 : vector<16x1xf32> to vector<16x32xf32>
    %406 = arith.subf %389, %405 : vector<16x32xf32>
    %cst_157 = arith.constant 9.99999997E-7 : f32
    %407 = vector.broadcast %cst_157 : f32 to vector<16x1xf32>
    %408 = arith.addf %404, %407 : vector<16x1xf32>
    %409 = math.rsqrt %408 : vector<16x1xf32>
    %410 = vector.broadcast %409 : vector<16x1xf32> to vector<16x32xf32>
    %411 = arith.mulf %406, %410 : vector<16x32xf32>
    %412 = vector.broadcast %391 : vector<1x32xf32> to vector<16x32xf32>
    %413 = arith.mulf %411, %412 : vector<16x32xf32>
    %414 = vector.broadcast %393 : vector<1x32xf32> to vector<16x32xf32>
    %415 = arith.addf %413, %414 : vector<16x32xf32>
    %c1_158 = arith.constant 1 : index
    %c0_159 = arith.constant 0 : index
    %c0_160 = arith.constant 0 : index
    %416 = vector.load %arg14[%c1_158, %c0_159, %c0_160] : memref<2x32x128xf32, #tpu.memory_space<vmem>>, vector<1x32x128xf32>
    %417 = vector.shape_cast %416 : vector<1x32x128xf32> to vector<32x128xf32>
    %cst_161 = arith.constant dense<0.000000e+00> : vector<16x128xf32>
    %418 = tpu.matmul %415, %417, %cst_161 {dimension_numbers = #tpu.dot_dimension_numbers<[1], [0], [0], [1], [0, 0, 1, 1], [], []>} : vector<16x32xf32>, vector<32x128xf32>, vector<16x128xf32> -> vector<16x128xf32>
    %c1_162 = arith.constant 1 : index
    %c0_163 = arith.constant 0 : index
    %c0_164 = arith.constant 0 : index
    %419 = vector.load %arg15[%c1_162, %c0_163, %c0_164] : memref<2x1x128xf32, #tpu.memory_space<vmem>>, vector<1x1x128xf32>
    %420 = vector.shape_cast %419 : vector<1x1x128xf32> to vector<1x128xf32>
    %421 = vector.broadcast %420 : vector<1x128xf32> to vector<16x128xf32>
    %422 = arith.addf %418, %421 : vector<16x128xf32>
    %cst_165 = arith.constant 0.707106769 : f32
    %423 = vector.broadcast %cst_165 : f32 to vector<16x128xf32>
    %424 = arith.mulf %422, %423 : vector<16x128xf32>
    %425 = math.absf %424 : vector<16x128xf32>
    %cst_166 = arith.constant 0.327591091 : f32
    %426 = vector.broadcast %cst_166 : f32 to vector<16x128xf32>
    %427 = arith.mulf %426, %425 : vector<16x128xf32>
    %cst_167 = arith.constant 1.000000e+00 : f32
    %428 = vector.broadcast %cst_167 : f32 to vector<16x128xf32>
    %429 = arith.addf %428, %427 : vector<16x128xf32>
    %cst_168 = arith.constant 1.000000e+00 : f32
    %430 = vector.broadcast %cst_168 : f32 to vector<16x128xf32>
    %431 = arith.divf %430, %429 : vector<16x128xf32>
    %cst_169 = arith.constant 1.06140542 : f32
    %432 = vector.broadcast %cst_169 : f32 to vector<16x128xf32>
    %433 = arith.mulf %432, %431 : vector<16x128xf32>
    %cst_170 = arith.constant 1.45315206 : f32
    %434 = vector.broadcast %cst_170 : f32 to vector<16x128xf32>
    %435 = arith.subf %433, %434 : vector<16x128xf32>
    %436 = arith.mulf %435, %431 : vector<16x128xf32>
    %cst_171 = arith.constant 1.42141378 : f32
    %437 = vector.broadcast %cst_171 : f32 to vector<16x128xf32>
    %438 = arith.addf %436, %437 : vector<16x128xf32>
    %439 = arith.mulf %438, %431 : vector<16x128xf32>
    %cst_172 = arith.constant 0.284496725 : f32
    %440 = vector.broadcast %cst_172 : f32 to vector<16x128xf32>
    %441 = arith.subf %439, %440 : vector<16x128xf32>
    %442 = arith.mulf %441, %431 : vector<16x128xf32>
    %cst_173 = arith.constant 0.254829586 : f32
    %443 = vector.broadcast %cst_173 : f32 to vector<16x128xf32>
    %444 = arith.addf %442, %443 : vector<16x128xf32>
    %445 = arith.mulf %444, %431 : vector<16x128xf32>
    %cst_174 = arith.constant 0.000000e+00 : f32
    %446 = vector.broadcast %cst_174 : f32 to vector<16x128xf32>
    %447 = arith.subf %446, %425 : vector<16x128xf32>
    %448 = arith.mulf %447, %425 : vector<16x128xf32>
    %449 = math.exp %448 : vector<16x128xf32>
    %450 = arith.mulf %445, %449 : vector<16x128xf32>
    %cst_175 = arith.constant 1.000000e+00 : f32
    %451 = vector.broadcast %cst_175 : f32 to vector<16x128xf32>
    %452 = arith.subf %451, %450 : vector<16x128xf32>
    %cst_176 = arith.constant 0.000000e+00 : f32
    %453 = vector.broadcast %cst_176 : f32 to vector<16x128xf32>
    %454 = arith.cmpf oge, %424, %453 : vector<16x128xf32>
    %cst_177 = arith.constant 0.000000e+00 : f32
    %455 = vector.broadcast %cst_177 : f32 to vector<16x128xf32>
    %456 = arith.subf %455, %452 : vector<16x128xf32>
    %457 = arith.select %454, %452, %456 : vector<16x128xi1>, vector<16x128xf32>
    %cst_178 = arith.constant 5.000000e-01 : f32
    %458 = vector.broadcast %cst_178 : f32 to vector<16x128xf32>
    %459 = arith.mulf %458, %422 : vector<16x128xf32>
    %cst_179 = arith.constant 1.000000e+00 : f32
    %460 = vector.broadcast %cst_179 : f32 to vector<16x128xf32>
    %461 = arith.addf %460, %457 : vector<16x128xf32>
    %462 = arith.mulf %459, %461 : vector<16x128xf32>
    %c1_180 = arith.constant 1 : index
    %c0_181 = arith.constant 0 : index
    %c0_182 = arith.constant 0 : index
    %463 = vector.load %arg16[%c1_180, %c0_181, %c0_182] : memref<2x128x32xf32, #tpu.memory_space<vmem>>, vector<1x128x32xf32>
    %464 = vector.shape_cast %463 : vector<1x128x32xf32> to vector<128x32xf32>
    %cst_183 = arith.constant dense<0.000000e+00> : vector<16x32xf32>
    %465 = tpu.matmul %462, %464, %cst_183 {dimension_numbers = #tpu.dot_dimension_numbers<[1], [0], [0], [1], [0, 0, 1, 1], [], []>} : vector<16x128xf32>, vector<128x32xf32>, vector<16x32xf32> -> vector<16x32xf32>
    %466 = arith.addf %389, %465 : vector<16x32xf32>
    %c1_184 = arith.constant 1 : index
    %c0_185 = arith.constant 0 : index
    %c0_186 = arith.constant 0 : index
    %467 = vector.load %arg17[%c1_184, %c0_185, %c0_186] : memref<2x1x32xf32, #tpu.memory_space<vmem>>, vector<1x1x32xf32>
    %468 = vector.shape_cast %467 : vector<1x1x32xf32> to vector<1x32xf32>
    %469 = vector.broadcast %468 : vector<1x32xf32> to vector<16x32xf32>
    %470 = arith.addf %466, %469 : vector<16x32xf32>
    %471 = vector.shape_cast %470 : vector<16x32xf32> to vector<2x8x32xf32>
    %472 = vector.extract_strided_slice %471 {offsets = [0, 0, 0], sizes = [2, 1, 32], strides = [1, 1, 1]} : vector<2x8x32xf32> to vector<2x1x32xf32>
    %473 = vector.shape_cast %472 : vector<2x1x32xf32> to vector<2x32xf32>
    %c0_187 = arith.constant 0 : index
    %c0_188 = arith.constant 0 : index
    %474 = vector.load %arg18[%c0_187, %c0_188] : memref<1x32xf32, #tpu.memory_space<vmem>>, vector<1x32xf32>
    %c0_189 = arith.constant 0 : index
    %c0_190 = arith.constant 0 : index
    %475 = vector.load %arg19[%c0_189, %c0_190] : memref<1x32xf32, #tpu.memory_space<vmem>>, vector<1x32xf32>
    %cst_191 = arith.constant dense<0.000000e+00> : vector<2xf32>
    %476 = vector.multi_reduction <add>, %473, %cst_191 [1] : vector<2x32xf32> to vector<2xf32>
    %477 = vector.shape_cast %476 : vector<2xf32> to vector<2x1xf32>
    %cst_192 = arith.constant 3.200000e+01 : f32
    %478 = vector.broadcast %cst_192 : f32 to vector<2x1xf32>
    %479 = arith.divf %477, %478 : vector<2x1xf32>
    %480 = vector.broadcast %479 : vector<2x1xf32> to vector<2x32xf32>
    %481 = arith.subf %473, %480 : vector<2x32xf32>
    %482 = arith.mulf %481, %481 : vector<2x32xf32>
    %cst_193 = arith.constant dense<0.000000e+00> : vector<2xf32>
    %483 = vector.multi_reduction <add>, %482, %cst_193 [1] : vector<2x32xf32> to vector<2xf32>
    %484 = vector.shape_cast %483 : vector<2xf32> to vector<2x1xf32>
    %cst_194 = arith.constant 3.200000e+01 : f32
    %485 = vector.broadcast %cst_194 : f32 to vector<2x1xf32>
    %486 = arith.divf %484, %485 : vector<2x1xf32>
    %487 = vector.broadcast %479 : vector<2x1xf32> to vector<2x32xf32>
    %488 = arith.subf %473, %487 : vector<2x32xf32>
    %cst_195 = arith.constant 9.99999997E-7 : f32
    %489 = vector.broadcast %cst_195 : f32 to vector<2x1xf32>
    %490 = arith.addf %486, %489 : vector<2x1xf32>
    %491 = math.rsqrt %490 : vector<2x1xf32>
    %492 = vector.broadcast %491 : vector<2x1xf32> to vector<2x32xf32>
    %493 = arith.mulf %488, %492 : vector<2x32xf32>
    %494 = vector.broadcast %474 : vector<1x32xf32> to vector<2x32xf32>
    %495 = arith.mulf %493, %494 : vector<2x32xf32>
    %496 = vector.broadcast %475 : vector<1x32xf32> to vector<2x32xf32>
    %497 = arith.addf %495, %496 : vector<2x32xf32>
    %c0_196 = arith.constant 0 : index
    %c0_197 = arith.constant 0 : index
    %498 = vector.load %arg24[%c0_196, %c0_197] : memref<2x32xf32, #tpu.memory_space<vmem>>, vector<2x32xf32>
    tpu.vector_store %arg24[%c0_196, %c0_197], %497 {strides = array<i32>} : memref<2x32xf32, #tpu.memory_space<vmem>>, vector<2x32xf32>,
    %cst_198 = arith.constant dense<0.000000e+00> : vector<32xf32>
    %499 = vector.multi_reduction <add>, %497, %cst_198 [0] : vector<2x32xf32> to vector<32xf32>
    %500 = vector.shape_cast %499 : vector<32xf32> to vector<1x32xf32>
    %cst_199 = arith.constant 2.000000e+00 : f32
    %501 = vector.broadcast %cst_199 : f32 to vector<1x32xf32>
    %502 = arith.divf %500, %501 : vector<1x32xf32>
    %503 = vector.broadcast %502 : vector<1x32xf32> to vector<2x32xf32>
    %504 = arith.subf %497, %503 : vector<2x32xf32>
    %505 = arith.mulf %504, %504 : vector<2x32xf32>
    %cst_200 = arith.constant dense<0.000000e+00> : vector<32xf32>
    %506 = vector.multi_reduction <add>, %505, %cst_200 [0] : vector<2x32xf32> to vector<32xf32>
    %507 = vector.shape_cast %506 : vector<32xf32> to vector<1x32xf32>
    %cst_201 = arith.constant 2.000000e+00 : f32
    %508 = vector.broadcast %cst_201 : f32 to vector<1x32xf32>
    %509 = arith.divf %507, %508 : vector<1x32xf32>
    %510 = vector.broadcast %502 : vector<1x32xf32> to vector<2x32xf32>
    %511 = arith.subf %497, %510 : vector<2x32xf32>
    %cst_202 = arith.constant 9.99999974E-6 : f32
    %512 = vector.broadcast %cst_202 : f32 to vector<1x32xf32>
    %513 = arith.addf %509, %512 : vector<1x32xf32>
    %514 = math.rsqrt %513 : vector<1x32xf32>
    %515 = vector.broadcast %514 : vector<1x32xf32> to vector<2x32xf32>
    %516 = arith.mulf %511, %515 : vector<2x32xf32>
    %c0_203 = arith.constant 0 : index
    %c0_204 = arith.constant 0 : index
    %517 = vector.load %arg20[%c0_203, %c0_204] : memref<1x32xf32, #tpu.memory_space<vmem>>, vector<1x32xf32>
    %518 = vector.broadcast %517 : vector<1x32xf32> to vector<2x32xf32>
    %519 = arith.mulf %516, %518 : vector<2x32xf32>
    %c0_205 = arith.constant 0 : index
    %c0_206 = arith.constant 0 : index
    %520 = vector.load %arg21[%c0_205, %c0_206] : memref<1x32xf32, #tpu.memory_space<vmem>>, vector<1x32xf32>
    %521 = vector.broadcast %520 : vector<1x32xf32> to vector<2x32xf32>
    %522 = arith.addf %519, %521 : vector<2x32xf32>
    %c0_207 = arith.constant 0 : index
    %c0_208 = arith.constant 0 : index
    %523 = vector.load %arg22[%c0_207, %c0_208] : memref<32x8xf32, #tpu.memory_space<vmem>>, vector<32x8xf32>
    %cst_209 = arith.constant dense<0.000000e+00> : vector<2x8xf32>
    %524 = tpu.matmul %522, %523, %cst_209 {dimension_numbers = #tpu.dot_dimension_numbers<[1], [0], [0], [1], [0, 0, 1, 1], [], []>} : vector<2x32xf32>, vector<32x8xf32>, vector<2x8xf32> -> vector<2x8xf32>
    %c0_210 = arith.constant 0 : index
    %c0_211 = arith.constant 0 : index
    %525 = vector.load %arg23[%c0_210, %c0_211] : memref<2x8xf32, #tpu.memory_space<vmem>>, vector<2x8xf32>
    tpu.vector_store %arg23[%c0_210, %c0_211], %524 {strides = array<i32>} : memref<2x8xf32, #tpu.memory_space<vmem>>, vector<2x8xf32>,
    return
  }
}

</mosaic_0001>

<bundles_post_ra>
// kernel: forward.1
= control target key start
LH: loop header
LB: loop body
LE: loop exit
PB: predicated region body
PF: predicated region fallthrough
CT: control target
= control target key end

     0   :  { %s3434_s0 = inlined_call_operand.vmem [shape: f32[16,256], index: 0, kind: input, shape index: {}]   ;;  %s3435_s1 = inlined_call_operand.vmem [shape: f32[1,32], index: 1, kind: input, shape index: {}]   ;;  %s3436_s2 = inlined_call_operand.vmem [shape: f32[8,32], index: 2, kind: input, shape index: {}]   ;;  %s3437_s3 = inlined_call_operand.vmem [shape: f32[2,32], index: 3, kind: input, shape index: {}]   ;;  %s3438_s4 = inlined_call_operand.vmem [shape: f32[256,32], index: 4, kind: input, shape index: {}]   ;;  %s3439_s5 = inlined_call_operand.vmem [shape: f32[1,32], index: 5, kind: input, shape index: {}]   ;;  %s3440_s6 = inlined_call_operand.vmem [shape: f32[2,1,32], index: 6, kind: input, shape index: {}]   ;;  %s3441_s7 = inlined_call_operand.vmem [shape: f32[2,1,32], index: 7, kind: input, shape index: {}]   ;;  %s3442_s8 = inlined_call_operand.vmem [shape: f32[2,32,96], index: 8, kind: input, shape index: {}]   ;;  %s3443_s9 = inlined_call_operand.vmem [shape: f32[2,1,96], index: 9, kind: input, shape index: {}]   ;;  %s3444_s10 = inlined_call_operand.vmem [shape: f32[2,32,32], index: 10, kind: input, shape index: {}]   ;;  %s3445_s11 = inlined_call_operand.vmem [shape: f32[2,1,32], index: 11, kind: input, shape index: {}]   ;;  %s3446_s12 = inlined_call_operand.vmem [shape: f32[2,1,32], index: 12, kind: input, shape index: {}]   ;;  %s3447_s13 = inlined_call_operand.vmem [shape: f32[2,1,32], index: 13, kind: input, shape index: {}]   ;;  %s3448_s14 = inlined_call_operand.vmem [shape: f32[2,32,128], index: 14, kind: input, shape index: {}]   ;;  %s3449_s15 = inlined_call_operand.vmem [shape: f32[2,1,128], index: 15, kind: input, shape index: {}]   ;;  %s3450_s16 = inlined_call_operand.vmem [shape: f32[2,128,32], index: 16, kind: input, shape index: {}]   ;;  %s3451_s17 = inlined_call_operand.vmem [shape: f32[2,1,32], index: 17, kind: input, shape index: {}]   ;;  %s3452_s18 = inlined_call_operand.vmem [shape: f32[1,32], index: 18, kind: input, shape index: {}]   ;;  %s3453_s19 = inlined_call_operand.vmem [shape: f32[1,32], index: 19, kind: input, shape index: {}]   ;;  %s3454_s20 = inlined_call_operand.vmem [shape: f32[1,32], index: 20, kind: input, shape index: {}]   ;;  %s3455_s21 = inlined_call_operand.vmem [shape: f32[1,32], index: 21, kind: input, shape index: {}]   ;;  %s3456_s22 = inlined_call_operand.vmem [shape: f32[32,8], index: 22, kind: input, shape index: {}]   ;;  %s3457_s23 = inlined_call_operand.hbm [shape: f32[2,8], index: 23, kind: output, shape index: {0}]   ;;  %s3458_s24 = inlined_call_operand.hbm [shape: f32[2,32], index: 24, kind: output, shape index: {1}]  }
   0x1   :  { %3482 = sst [smem:[#allocation8_spill]] %s3434_s0 }
   0x2   :  { %3483 = sst [smem:[#allocation9_spill]] %s3435_s1 }
   0x3   :  { %3484 = sst [smem:[#allocation10_spill]] %s3436_s2 }
   0x4   :  { %3485 = sst [smem:[#allocation11_spill]] %s3437_s3 }
   0x5   :  { %3486 = sst [smem:[#allocation12_spill]] %s3438_s4 }
   0x6   :  { %3487 = sst [smem:[#allocation13_spill]] %s3439_s5 }
   0x7   :  { %3488 = sst [smem:[#allocation14_spill]] %s3440_s6 }
   0x8   :  { %3489 = sst [smem:[#allocation15_spill]] %s3441_s7 }
   0x9   :  { %3490 = sst [smem:[#allocation16_spill]] %s3442_s8 }
   0xa   :  { %30 = vsyncpa [#allocation3], 0  ;;  %s3491_s27 = sld [smem:[#allocation12_spill]] }
  0x10   :  { %v97_v0 = vld [vmem:[%s3491_s27 + $0x78] sm:$0xff]  ;;  %v96_v1 = vld [vmem:[%s3491_s27 + $0x70] sm:$0xff]  ;;  %v95_v4 = vld [vmem:[%s3491_s27 + $0x68] sm:$0xff] }
  0x11   :  { %v113_v2 = vld [vmem:[%s3491_s27 + $0xf8] sm:$0xff]  ;;  %133 = vmatpush.msra.mxu0 %v97_v0  ;;  %v112_v3 = vld [vmem:[%s3491_s27 + $0xf0] sm:$0xff]  ;;  %v111_v5 = vld [vmem:[%s3491_s27 + $0xe8] sm:$0xff] }
  0x12   :  { %156 = vmatpush.msra.mxu1 %v113_v2  ;;  %v94_v6 = vld [vmem:[%s3491_s27 + $0x60] sm:$0xff]  ;;  %v93_v8 = vld [vmem:[%s3491_s27 + $0x58] sm:$0xff]  ;;  %v92_v10 = vld [vmem:[%s3491_s27 + $0x50] sm:$0xff] }
  0x13   :  { %134 = vmatpush.msra.mxu0 %v96_v1  ;;  %v110_v7 = vld [vmem:[%s3491_s27 + $0xe0] sm:$0xff]  ;;  %v109_v9 = vld [vmem:[%s3491_s27 + $0xd8] sm:$0xff]  ;;  %v108_v11 = vld [vmem:[%s3491_s27 + $0xd0] sm:$0xff] }
  0x14   :  { %157 = vmatpush.msra.mxu1 %v112_v3  ;;  %v91_v12 = vld [vmem:[%s3491_s27 + $0x48] sm:$0xff]  ;;  %v90_v14 = vld [vmem:[%s3491_s27 + $0x40] sm:$0xff]  ;;  %v89_v15 = vld [vmem:[%s3491_s27 + $0x38] sm:$0xff] }
  0x15   :  { %135 = vmatpush.msra.mxu0 %v95_v4  ;;  %v107_v13 = vld [vmem:[%s3491_s27 + $0xc8] sm:$0xff]  ;;  %v106_v16 = vld [vmem:[%s3491_s27 + $0xc0] sm:$0xff]  ;;  %v88_v17 = vld [vmem:[%s3491_s27 + $0x30] sm:$0xff] }
  0x16   :  { %158 = vmatpush.msra.mxu1 %v111_v5  ;;  %v105_v18 = vld [vmem:[%s3491_s27 + $0xb8] sm:$0xff]  ;;  %v104_v19 = vld [vmem:[%s3491_s27 + $0xb0] sm:$0xff]  ;;  %v87_v20 = vld [vmem:[%s3491_s27 + $0x28] sm:$0xff] }
  0x17   :  { %136 = vmatpush.msra.mxu0 %v94_v6  ;;  %v103_v21 = vld [vmem:[%s3491_s27 + $0xa8] sm:$0xff]  ;;  %v86_v22 = vld [vmem:[%s3491_s27 + $0x20] sm:$0xff] }
  0x18   :  { %159 = vmatpush.msra.mxu1 %v110_v7  ;;  %v102_v23 = vld [vmem:[%s3491_s27 + $0xa0] sm:$0xff] }
  0x19   :  { %137 = vmatpush.msra.mxu0 %v93_v8 }
  0x1a   :  { %160 = vmatpush.msra.mxu1 %v109_v9 }
  0x1b   :  { %138 = vmatpush.msra.mxu0 %v92_v10 }
  0x1c   :  { %161 = vmatpush.msra.mxu1 %v108_v11 }
  0x1d   :  { %139 = vmatpush.msra.mxu0 %v91_v12 }
  0x1e   :  { %162 = vmatpush.msra.mxu1 %v107_v13 }
  0x1f   :  { %140 = vmatpush.msra.mxu0 %v90_v14 }
  0x20   :  { %163 = vmatpush.msra.mxu1 %v106_v16 }
  0x21   :  { %141 = vmatpush.msra.mxu0 %v89_v15 }
  0x22   :  { %164 = vmatpush.msra.mxu1 %v105_v18 }
  0x23   :  { %142 = vmatpush.msra.mxu0 %v88_v17 }
  0x24   :  { %165 = vmatpush.msra.mxu1 %v104_v19 }
  0x25   :  { %143 = vmatpush.msra.mxu0 %v87_v20 }
  0x26   :  { %166 = vmatpush.msra.mxu1 %v103_v21 }
  0x27   :  { %31 = vsyncpa [#allocation5], 0  ;;  %v85_v24 = vld [vmem:[%s3491_s27 + $0x18] sm:$0xff]  ;;  %144 = vmatpush.msra.mxu0 %v86_v22  ;;  %v84_v26 = vld [vmem:[%s3491_s27 + $0x10] sm:$0xff]  ;;  %s3492_s25 = sld [smem:[#allocation8_spill]]  ;;  %v114_v36 = vlaneseq  ;;  %v2556_v42 = vmov 0.0  }
  0x28   :  { %v101_v25 = vld [vmem:[%s3491_s27 + $0x98] sm:$0xff]  ;;  %167 = vmatpush.msra.mxu1 %v102_v23  ;;  %v100_v27 = vld [vmem:[%s3491_s27 + $0x90] sm:$0xff]  ;;  %v83_v28 = vld [vmem:[%s3491_s27 + $0x8] sm:$0xff]  ;;  %s3493_s2 = sld [smem:[#allocation13_spill]]  ;;  %vm214_vm8 = vcmask 261120   ;;  %v2557_v11 = vmov 32.0  }
  0x29   :  { %145 = vmatpush.msra.mxu0 %v85_v24  ;;  %v99_v29 = vld [vmem:[%s3491_s27 + $0x88] sm:$0xff]  ;;  %v82_v30 = vld [vmem:[%s3491_s27] sm:$0xff]  ;;  %v115_v37 = vshrl.u32 %v114_v36, 7  ;;  %s3494_s7 = sld [smem:[#allocation9_spill]]  ;;  %2400 = vrcp.f32 %v2557_v11  ;;  %s2558_s28 = smov 96  }
  0x2a   :  { %168 = vmatpush.msra.mxu1 %v101_v25  ;;  %v98_v31 = vld [vmem:[%s3491_s27 + $0x80] sm:$0xff]  ;;  %s3496_s1 = sld [smem:[#allocation10_spill]]  ;;  %s2560_s6 = smov 88  }
  0x2b   :  { %146 = vmatpush.msra.mxu0 %v84_v26  ;;  %v117_v38 = vand.u32 7, %v115_v37  ;;  %v116_v39 = vadd.s32 8, %v115_v37  ;;  %s3497_s27 = sld [smem:[#allocation16_spill]]  ;;  %s2562_s29 = smov 120  }
  0x2c   :  { %169 = vmatpush.msra.mxu1 %v100_v27  ;;  %s3480_s0 = smov 112   ;;  %s3475_s30 = smov 56  }
  0x2d   :  { %147 = vmatpush.msra.mxu0 %v83_v28  ;;  %v78_v32 = vld [vmem:[%s3492_s25] sm:$0xff]  ;;  %v79_v33 = vld [vmem:[%s3492_s25 + $0x8] sm:$0xff]  ;;  %v80_v34 = vld [vmem:[%s3492_s25 + $0x10] sm:$0xff]  ;;  %vm119_vm0 = vcmp.ge.s32.totalorder %v117_v38, 1  ;;  %vm121_vm1 = vcmp.le.s32.totalorder %v117_v38, 4  ;;  %v118_v40 = vand.u32 7, %v116_v39 }
  0x2e   :  { %170 = vmatpush.msra.mxu1 %v99_v29  ;;  %v81_v35 = vld [vmem:[%s3492_s25 + $0x18] sm:$0xff]  ;;  %vm123_vm2 = vmand %vm119_vm0, %vm121_vm1  ;;  %v2378_v41 = vld [vmem:[%s3493_s2] ss:$0 sm:$0xff]  ;;  %vm179_vm3 = vcmp.eq.s32.totalorder %v117_v38, 0  ;;  %s3495_s25 = sld [smem:[#allocation11_spill]]  ;;  %vm318_vm0 = vcmask 64512  }
  0x2f   :  { %148 = vmatpush.msra.mxu0 %v82_v30  ;;  %v125_v43 = vsel %vm123_vm2, 1.0, %v2556_v42  ;;  %vm120_vm4 = vcmp.ge.s32.totalorder %v118_v40, 1  ;;  %vm122_vm5 = vcmp.le.s32.totalorder %v118_v40, 4  ;;  %v2379_v45 = vld [vmem:[%s3494_s7] ss:$0 sm:$0xff]  ;;  %v181_v46 = vsel %vm179_vm3, 1.0, %v2556_v42  ;;  %v2401_v12 = vpop.eup %2400 }
  0x30   :  { %171 = vmatpush.msra.mxu1 %v98_v31  ;;  %149 = vmatmul.f32.vlgmr.msra.gmra.mxu0 %v78_v32  ;;  %v131_v44 = vmul.f32 %v2378_v41, %v125_v43  ;;  %vm124_vm6 = vmand %vm120_vm4, %vm122_vm5  ;;  %v187_v51 = vmul.f32 %v2379_v45, %v181_v46  ;;  %vm180_vm7 = vcmp.eq.s32.totalorder %v118_v40, 0  ;;  %v191_v55 = vld [vmem:[%s3496_s1] sm:$0xff]  ;;  %v222_v13 = vmul.f32 32.0, %v2401_v12  ;;  %s3499_s1 = sld [smem:[#allocation15_spill]]  ;;  %s3477_s2 = smov 64  }
  0x31   :  { %172 = vmatmul.f32.vlgmr.msra.gmra.mxu1 %v79_v33  ;;  %v126_v53 = vsel %vm124_vm6, 1.0, %v2556_v42  ;;  %v182_v60 = vsel %vm180_vm7, 1.0, %v2556_v42  ;;  %vm226_vm9 = vweird.f32 %v2401_v12  ;;  %v279_v28 = vld [vmem:[%s3497_s27 + $0x18] sm:$0xff]  ;;  %v278_v29 = vld [vmem:[%s3497_s27 + $0x10] sm:$0xff]  ;;  %v277_v30 = vld [vmem:[%s3497_s27 + $0x8] sm:$0xff]  ;;  %s3473_s7 = smov 80  }
  0x32   :  { %v132_v57 = vmul.f32 %v2378_v41, %v126_v53  ;;  %v188_v1 = vmul.f32 %v2379_v45, %v182_v60  ;;  %v223_v14 = vsub.f32 1.0, %v222_v13  ;;  %302 = vmatpush.msra.mxu2 %v279_v28  ;;  %v276_v31 = vld [vmem:[%s3497_s27] sm:$0xff]  ;;  %s3471_s3 = smov 72   ;;  %s3469_s8 = smov 104   ;;  %vm862_vm2 = vcmask 130048  }
  0x33   :  { %s3464_s4 = smov 48   ;;  %s3465_s5 = smov 8   ;;  %vm865_vm3 = vcmask 195584  }
  0x34   :  { %v194_v47 = vld [vmem:[%s3495_s25] sm:$0x3]  ;;  %v224_v15 = vmul.f32 %v2401_v12, %v223_v14  ;;  %303 = vmatpush.msra.mxu2 %v278_v29  ;;  %s3498_s25 = sld [smem:[#allocation14_spill]]  ;;  %s3467_s26 = smov 40  }
  0x35   :  { %v198_v52 = vmul.f32 3.0, %v194_v47  ;;  %v196_v59 = vrot.slane %v194_v47, 1 }
  0x36   :  { %v225_v16 = vadd.f32 %v2401_v12, %v224_v15  ;;  %304 = vmatpush.msra.mxu2 %v277_v30 }
  0x37   :  { %v202_v58 = vperm.slane %v198_v52, 0  ;;  %v199_v3 = vmul.f32 3.0, %v196_v59 }
  0x38   :  { %152 = vmatmul.f32.gmra.mxu0 %v80_v34  ;;  %v2830_v17 = vsel %vm226_vm9, %v2401_v12, %v225_v16  ;;  %305 = vmatpush.msra.mxu2 %v276_v31 }
  0x39   :  { %175 = vmatmul.f32.gmra.mxu1 %v81_v35  ;;  %v203_v7 = vperm.slane %v199_v3, 0 }
  0x3a   :  { %v2380_v47 = vld [vmem:[%s3498_s25] ss:$0 sm:$0xff] }
  0xad   :  { %v150_v48 = vpop.f32.mrf.mxu0 }
  0xae   :  { %v173_v49 = vpop.f32.mrf.mxu1  ;;  %v151_v50 = vadd.f32 %v150_v48, %v131_v44 }
  0xb0   :  { %v174_v54 = vadd.f32 %v173_v49, %v151_v50 }
  0xb2   :  { %v189_v56 = vadd.f32 %v187_v51, %v174_v54  ;;  %v2381_v51 = vld [vmem:[%s3499_s1] ss:$0 sm:$0xff] }
  0xb4   :  { %v192_v61 = vadd.f32 %v191_v55, %v189_v56 }
  0xb5   :  { %v153_v62 = vpop.f32.mrf.mxu0 }
  0xb6   :  { %v176_v63 = vpop.f32.mrf.mxu1  ;;  %v154_v0 = vadd.f32 %v153_v62, %v132_v57  ;;  %v2822_v2 = vadd.f32 %v202_v58, %v192_v61  ;;  %v2382_v61 = vld [vmem:[%s3443_s9] ss:$0 sm:$0xff] }
  0xb8   :  { %v177_v4 = vadd.f32 %v176_v63, %v154_v0  ;;  %v215_v5 = vsel %vm214_vm8, %v2822_v2, 0.0 }
  0xb9   :  { %216 = vadd.xlane.f32.xlu0 %v215_v5 }
  0xba   :  { %v190_v6 = vadd.f32 %v188_v1, %v177_v4 }
  0xbc   :  { %v193_v8 = vadd.f32 %v191_v55, %v190_v6 }
  0xbe   :  { %v2826_v9 = vadd.f32 %v203_v7, %v193_v8  ;;  %v209_v7 = vand.u32 127, %v114_v36  ;;  %v2559_v8 = vmov -1e+30  }
  0xc0   :  { %v218_v10 = vsel %vm214_vm8, %v2826_v9, 0.0  ;;  %vm210_vm1 = vcmp.lt.s32.totalorder %v209_v7, 5 }
  0xc1   :  { %219 = vadd.xlane.f32.xlu0 %v218_v10  ;;  %v2884_v10 = vsel %vm210_vm1, 0.0, %v2559_v8 }
 0x12c   :  { %v217_v18 = vpop.xlane.xlu0 %216 }
 0x12d   :  { %v228_v19 = vmul.f32 %v2830_v17, %v217_v18 }
 0x12f   :  { %v230_v20 = vsub.f32 %v2822_v2, %v228_v19 }
 0x131   :  { %v232_v21 = vmul.f32 %v230_v20, %v230_v20 }
 0x133   :  { %v234_v22 = vsel %vm214_vm8, %v232_v21, 0.0 }
 0x134   :  { %235 = vadd.xlane.f32.xlu1 %v234_v22  ;;  %v220_v23 = vpop.xlane.xlu0 %219 }
 0x135   :  { %v229_v24 = vmul.f32 %v2830_v17, %v220_v23 }
 0x137   :  { %v231_v25 = vsub.f32 %v2826_v9, %v229_v24 }
 0x139   :  { %v233_v26 = vmul.f32 %v231_v25, %v231_v25 }
 0x13b   :  { %v237_v27 = vsel %vm214_vm8, %v233_v26, 0.0 }
 0x13c   :  { %238 = vadd.xlane.f32.xlu1 %v237_v27 }
 0x1a7   :  { %v236_v32 = vpop.xlane.xlu1 %235 }
 0x1a8   :  { %v240_v33 = vmul.f32 %v236_v32, %v2830_v17 }
 0x1aa   :  { %v242_v34 = vadd.f32 1e-06, %v240_v33 }
 0x1ac   :  { %2402 = vrsqrt.f32 %v242_v34  ;;  %vm250_vm11 = vweird.f32 %v242_v34 }
 0x1af   :  { %v239_v35 = vpop.xlane.xlu1 %238 }
 0x1b0   :  { %v241_v37 = vmul.f32 %v239_v35, %v2830_v17 }
 0x1b2   :  { %v2403_v38 = vpop.eup %2402  ;;  %v243_v39 = vadd.f32 1e-06, %v241_v37 }
 0x1b3   :  { %v245_v40 = vmul.f32 %v2403_v38, %v242_v34  ;;  %vm251_vm10 = vweird.f32 %v2403_v38 }
 0x1b4   :  { %2404 = vrsqrt.f32 %v243_v39  ;;  %vm252_vm12 = vmor %vm250_vm11, %vm251_vm10  ;;  %vm260_vm14 = vweird.f32 %v243_v39 }
 0x1b5   :  { %v246_v41 = vmul.f32 %v2403_v38, %v245_v40 }
 0x1b7   :  { %v247_v42 = vmul.f32 0.5, %v246_v41 }
 0x1b9   :  { %v248_v43 = vsub.f32 1.5, %v247_v42 }
 0x1ba   :  { %v2405_v44 = vpop.eup %2404 }
 0x1bb   :  { %v249_v45 = vmul.f32 %v2403_v38, %v248_v43  ;;  %v255_v46 = vmul.f32 %v2405_v44, %v243_v39  ;;  %vm261_vm13 = vweird.f32 %v2405_v44 }
 0x1bc   :  { %vm262_vm15 = vmor %vm260_vm14, %vm261_vm13 }
 0x1bd   :  { %v253_v48 = vsel %vm252_vm12, %v2403_v38, %v249_v45  ;;  %v256_v49 = vmul.f32 %v2405_v44, %v255_v46 }
 0x1be   :  { %v264_v50 = vmul.f32 %v253_v48, %v230_v20 }
 0x1bf   :  { %v257_v52 = vmul.f32 0.5, %v256_v49 }
 0x1c0   :  { %v269_v53 = vmul.f32 %v2380_v47, %v264_v50 }
 0x1c1   :  { %v258_v54 = vsub.f32 1.5, %v257_v52 }
 0x1c2   :  { %v274_v55 = vadd.f32 %v2381_v51, %v269_v53 }
 0x1c3   :  { %v259_v56 = vmul.f32 %v2405_v44, %v258_v54 }
 0x1c4   :  { %2233 = vmatmul.msk.f32.vlgmr.msra.gmra.mxu2 %vm214_vm8, %v274_v55 }
 0x1c5   :  { %v263_v57 = vsel %vm262_vm15, %v2405_v44, %v259_v56 }
 0x1c6   :  { %v265_v58 = vmul.f32 %v263_v57, %v231_v25 }
 0x1c8   :  { %v270_v59 = vmul.f32 %v2380_v47, %v265_v58 }
 0x1ca   :  { %v275_v60 = vadd.f32 %v2381_v51, %v270_v59 }
 0x1cc   :  { %2234 = vmatmul.msk.f32.gmra.mxu2 %vm214_vm8, %v275_v60 }
 0x247   :  { %v307_v62 = vpop.f32.mrf.mxu2 }
 0x248   :  { %v2863_v63 = vadd.f32 %v2382_v61, %v307_v62 }
 0x24a   :  { %316 = vrot.lane.b32.xlu2 %v2863_v63, %s2558_s28  ;;  %v2873_v4 = vmul.f32 0.35355338, %v2863_v63 }
 0x24f   :  { %v310_v0 = vpop.f32.mrf.mxu2 }
 0x250   :  { %v2867_v1 = vadd.f32 %v2382_v61, %v310_v0 }
 0x252   :  { %345 = vrot.lane.b32.xlu2 %v2867_v1, %s2558_s28  ;;  %v2879_v6 = vmul.f32 0.35355338, %v2867_v1  ;;  %v2924_v48 = vpack.i.bf16 %v2867_v1, %v2863_v63 }
 0x2a4   :  { %v317_v3 = vpop.permute.xlu2 %316 }
 0x2a5   :  { %2235 = vmatpush.xpose.msk.msra.mxu3 %vm318_vm0, %v317_v3 }
 0x2a8   :  { %2236 = vmatmul.msk.f32.vlgmr.msra.gmra.mxu3 %vm318_vm0, %v2873_v4 }
 0x2ac   :  { %v346_v5 = vpop.permute.xlu2 %345 }
 0x2ad   :  { %2237 = vmatpush.xpose.msk.msrb.mxu3 %vm318_vm0, %v346_v5 }
 0x2b0   :  { %2238 = vmatmul.msk.f32.vlgmr.msrb.gmra.mxu3 %vm318_vm0, %v2879_v6 }
 0x32b   :  { %v341_v11 = vpop.f32.mrf.mxu3 }
 0x32c   :  { %v342_v12 = vadd.f32 %v341_v11, %v2884_v10 }
 0x32e   :  { %v372_v13 = vsel %vm318_vm0, %v342_v12, -inf }
 0x32f   :  { %373 = vmax.xlane.f32.xlu0 %v372_v13 }
 0x333   :  { %v369_v14 = vpop.f32.mrf.mxu3 }
 0x334   :  { %v370_v15 = vadd.f32 %v369_v14, %v2884_v10 }
 0x336   :  { %v375_v16 = vsel %vm318_vm0, %v370_v15, -inf }
 0x337   :  { %376 = vmax.xlane.f32.xlu1 %v375_v16 }
 0x343   :  { %448 = vrot.lane.b32.xlu0 %v2863_v63, %s2560_s6 }
 0x350   :  { %394 = vrot.lane.b32.xlu1 %v2863_v63, %s3477_s2 }
 0x358   :  { %420 = vrot.lane.b32.xlu1 %v2867_v1, %s3477_s2  ;;  %s3507_s2 = smov 8  }
 0x360   :  { %476 = vrot.lane.b32.xlu1 %v2867_v1, %s2560_s6 }
 0x3a2   :  { %v374_v36 = vpop.xlane.xlu0 %373 }
 0x3a3   :  { %v378_v18 = vsub.f32 %v342_v12, %v374_v36 }
 0x3a5   :  { %v380_v19 = vmul.f32 1.442695, %v378_v18 }
 0x3a7   :  { %2406 = vpow2.f32 %v380_v19 }
 0x3aa   :  { %v377_v20 = vpop.xlane.xlu1 %376 }
 0x3ab   :  { %v379_v21 = vsub.f32 %v370_v15, %v377_v20 }
 0x3ad   :  { %v2407_v22 = vpop.eup %2406  ;;  %v382_v23 = vmul.f32 1.442695, %v379_v21 }
 0x3ae   :  { %v384_v24 = vsel %vm318_vm0, %v2407_v22, 0.0 }
 0x3af   :  { %2408 = vpow2.f32 %v382_v23  ;;  %385 = vadd.xlane.f32.xlu2 %v384_v24 }
 0x3b5   :  { %v2409_v25 = vpop.eup %2408  ;;  %v449_v28 = vpop.permute.xlu0 %448 }
 0x3b6   :  { %v387_v26 = vsel %vm318_vm0, %v2409_v25, 0.0 }
 0x3b7   :  { %388 = vadd.xlane.f32.xlu0 %v387_v26 }
 0x3c2   :  { %v395_v27 = vpop.permute.xlu1 %394 }
 0x3c3   :  { %415 = vmatpush.msra.mxu3 %v395_v27 }
 0x3c5   :  { %2241 = vmatpush.xpose.msk.msrb.mxu3 %vm318_vm0, %v449_v28 }
 0x3c7   :  { %474 = vrot.lane.b32.xlu2 %v2879_v6, %s2562_s29 }
 0x3ca   :  { %v421_v29 = vpop.permute.xlu1 %420 }
 0x3cb   :  { %446 = vrot.lane.b32.xlu0 %v2873_v4, %s2562_s29  ;;  %441 = vmatpush.msrb.mxu2 %v421_v29 }
 0x3cf   :  { %576 = vrot.lane.b32.xlu2 %v2873_v4, %s3480_s0 }
 0x3d2   :  { %v477_v30 = vpop.permute.xlu1 %476 }
 0x3d3   :  { %2243 = vmatpush.xpose.msk.msra.mxu2 %vm318_vm0, %v477_v30 }
 0x422   :  { %v386_v31 = vpop.xlane.xlu2 %385 }
 0x423   :  { %2410 = vrcp.f32 %v386_v31 }
 0x429   :  { %v2411_v32 = vpop.eup %2410 }
 0x42a   :  { %v392_v33 = vmul.f32 %v2411_v32, %v2407_v22  ;;  %v389_v34 = vpop.xlane.xlu0 %388  ;;  %v475_v38 = vpop.permute.xlu2 %474 }
 0x42b   :  { %2412 = vrcp.f32 %v389_v34 }
 0x42c   :  { %2239 = vmatmul.msk.f32.vlgmr.msra.gmra.mxu3 %vm318_vm0, %v392_v33 }
 0x431   :  { %v2413_v35 = vpop.eup %2412 }
 0x432   :  { %v393_v37 = vmul.f32 %v2413_v35, %v2409_v25 }
 0x434   :  { %2240 = vmatmul.msk.f32.vlgmr.msrb.gmra.mxu2 %vm318_vm0, %v393_v37 }
 0x43c   :  { %2244 = vmatmul.msk.f32.vlgmr.msra.gmra.mxu2 %vm318_vm0, %v475_v38 }
 0x43d   :  { %v447_v39 = vpop.permute.xlu0 %446 }
 0x43e   :  { %2242 = vmatmul.msk.f32.vlgmr.msrb.gmra.mxu3 %vm318_vm0, %v447_v39 }
 0x4af   :  { %v2914_v41 = vpop.f32.mrf.mxu3 }
 0x4b7   :  { %v2912_v40 = vpop.f32.mrf.mxu2 }
 0x4bf   :  { %v499_v42 = vpop.f32.mrf.mxu2 }
 0x4c0   :  { %v500_v43 = vadd.f32 %v499_v42, %v2884_v10 }
 0x4c1   :  { %v471_v44 = vpop.f32.mrf.mxu3 }
 0x4c2   :  { %v472_v45 = vadd.f32 %v471_v44, %v2884_v10  ;;  %v505_v46 = vsel %vm318_vm0, %v500_v43, -inf }
 0x4c3   :  { %506 = vmax.xlane.f32.xlu1 %v505_v46 }
 0x4c4   :  { %v502_v47 = vsel %vm318_vm0, %v472_v45, -inf }
 0x4c5   :  { %503 = vmax.xlane.f32.xlu0 %v502_v47 }
 0x4d9   :  { %578 = vrot.lane.b32.xlu0 %v2863_v63, %s3473_s7 }
 0x4dc   :  { %2359 = vrot.lane.b32.xlu1 %v2924_v48, %s3475_s30 }
 0x4e1   :  { %606 = vrot.lane.b32.xlu0 %v2867_v1, %s3473_s7 }
 0x4e4   :  { %708 = vrot.lane.b32.xlu1 %v2863_v63, %s3471_s3 }
 0x4e9   :  { %604 = vrot.lane.b32.xlu0 %v2879_v6, %s3480_s0  ;;  %s3508_s0 = smov 48  }
 0x4ec   :  { %706 = vrot.lane.b32.xlu1 %v2873_v4, %s3469_s8  ;;  %v577_v4 = vpop.permute.xlu2 %576 }
 0x536   :  { %v507_v49 = vpop.xlane.xlu1 %506 }
 0x537   :  { %v509_v50 = vsub.f32 %v500_v43, %v507_v49 }
 0x538   :  { %v504_v51 = vpop.xlane.xlu0 %503 }
 0x539   :  { %v512_v52 = vmul.f32 1.442695, %v509_v50  ;;  %v508_v53 = vsub.f32 %v472_v45, %v504_v51 }
 0x53b   :  { %2414 = vpow2.f32 %v512_v52  ;;  %v510_v54 = vmul.f32 1.442695, %v508_v53 }
 0x53d   :  { %2416 = vpow2.f32 %v510_v54 }
 0x541   :  { %v2415_v55 = vpop.eup %2414 }
 0x542   :  { %v517_v56 = vsel %vm318_vm0, %v2415_v55, 0.0 }
 0x543   :  { %v2417_v57 = vpop.eup %2416  ;;  %518 = vadd.xlane.f32.xlu0 %v517_v56 }
 0x544   :  { %v514_v58 = vsel %vm318_vm0, %v2417_v57, 0.0 }
 0x545   :  { %515 = vadd.xlane.f32.xlu2 %v514_v58 }
 0x54b   :  { %v579_v59 = vpop.permute.xlu0 %578 }
 0x54e   :  { %v2360_v60 = vpop.permute.xlu1 %2359 }
 0x54f   :  { %v2362_v61 = vunpack.i.h.bf16 %v2360_v60  ;;  %v2361_v62 = vunpack.i.l.bf16 %v2360_v60 }
 0x551   :  { %545 = vmatpush.msra.mxu3 %v2361_v62  ;;  %571 = vmatpush.msrb.mxu2 %v2362_v61 }
 0x553   :  { %2247 = vmatpush.xpose.msk.msrb.mxu3 %vm318_vm0, %v579_v59  ;;  %v607_v0 = vpop.permute.xlu0 %606 }
 0x554   :  { %2249 = vmatpush.xpose.msk.msra.mxu2 %vm318_vm0, %v607_v0 }
 0x556   :  { %v709_v14 = vpop.permute.xlu1 %708 }
 0x557   :  { %736 = vrot.lane.b32.xlu0 %v2867_v1, %s3471_s3 }
 0x55b   :  { %v605_v3 = vpop.permute.xlu0 %604 }
 0x55d   :  { %734 = vrot.lane.b32.xlu2 %v2879_v6, %s3469_s8  ;;  %s2574_s8 = smov [#allocation4]  }
 0x55e   :  { %v707_v16 = vpop.permute.xlu1 %706 }
 0x5b6   :  { %v519_v5 = vpop.xlane.xlu0 %518 }
 0x5b7   :  { %2418 = vrcp.f32 %v519_v5 }
 0x5b8   :  { %v516_v7 = vpop.xlane.xlu2 %515 }
 0x5b9   :  { %2420 = vrcp.f32 %v516_v7 }
 0x5bd   :  { %v2419_v8 = vpop.eup %2418 }
 0x5be   :  { %v523_v11 = vmul.f32 %v2419_v8, %v2415_v55 }
 0x5bf   :  { %v2421_v12 = vpop.eup %2420 }
 0x5c0   :  { %v522_v13 = vmul.f32 %v2421_v12, %v2417_v57  ;;  %2246 = vmatmul.msk.f32.vlgmr.msrb.gmra.mxu2 %vm318_vm0, %v523_v11  ;;  %v735_v15 = vpop.permute.xlu2 %734 }
 0x5c2   :  { %2245 = vmatmul.msk.f32.vlgmr.msra.gmra.mxu3 %vm318_vm0, %v522_v13 }
 0x5c3   :  { %2253 = vmatpush.xpose.msk.msra.mxu3 %vm318_vm0, %v709_v14 }
 0x5c8   :  { %2250 = vmatmul.msk.f32.vlgmr.msra.gmra.mxu2 %vm318_vm0, %v605_v3 }
 0x5c9   :  { %v737_v6 = vpop.permute.xlu0 %736 }
 0x5ca   :  { %2248 = vmatmul.msk.f32.vlgmr.msrb.gmra.mxu3 %vm318_vm0, %v577_v4  ;;  %2255 = vmatpush.xpose.msk.msrb.mxu0 %vm318_vm0, %v737_v6  ;;  %v871_v6 = vld [vmem:[%s3444_s10 + $0x18] sm:$0xff] }
 0x5cb   :  { %890 = vmatpush.msrb.mxu3 %v871_v6 }
 0x5cd   :  { %2256 = vmatmul.msk.f32.vlgmr.msrb.gmra.mxu0 %vm318_vm0, %v735_v15  ;;  %v870_v15 = vld [vmem:[%s3444_s10 + $0x10] sm:$0xff] }
 0x5ce   :  { %891 = vmatpush.msrb.mxu3 %v870_v15 }
 0x5d2   :  { %2254 = vmatmul.msk.f32.vlgmr.msra.gmra.mxu3 %vm318_vm0, %v707_v16  ;;  %v869_v16 = vld [vmem:[%s3444_s10 + $0x8] sm:$0xff] }
 0x5d3   :  { %892 = vmatpush.msrb.mxu3 %v869_v16 }
 0x643   :  { %v573_v36 = vpop.f32.mrf.mxu2 }
 0x645   :  { %v547_v18 = vpop.f32.mrf.mxu3 }
 0x64a   :  { %v759_v25 = vpop.f32.mrf.mxu0 }
 0x64b   :  { %v629_v19 = vpop.f32.mrf.mxu2  ;;  %v760_v26 = vadd.f32 %v759_v25, %v2884_v10 }
 0x64c   :  { %v630_v20 = vadd.f32 %v629_v19, %v2884_v10 }
 0x64d   :  { %v601_v21 = vpop.f32.mrf.mxu3  ;;  %v765_v30 = vsel %vm318_vm0, %v760_v26, -inf }
 0x64e   :  { %v602_v22 = vadd.f32 %v601_v21, %v2884_v10  ;;  %v635_v23 = vsel %vm318_vm0, %v630_v20, -inf }
 0x64f   :  { %636 = vmax.xlane.f32.xlu0 %v635_v23 }
 0x650   :  { %v632_v24 = vsel %vm318_vm0, %v602_v22, -inf }
 0x651   :  { %633 = vmax.xlane.f32.xlu1 %v632_v24 }
 0x655   :  { %v731_v27 = vpop.f32.mrf.mxu3 }
 0x656   :  { %v732_v28 = vadd.f32 %v731_v27, %v2884_v10 }
 0x658   :  { %v762_v29 = vsel %vm318_vm0, %v732_v28, -inf }
 0x659   :  { %763 = vmax.xlane.f32.xlu2 %v762_v29  ;;  %766 = vmax.xlane.f32.xlu1 %v765_v30 }
 0x6c2   :  { %v637_v37 = vpop.xlane.xlu0 %636 }
 0x6c3   :  { %v639_v45 = vsub.f32 %v630_v20, %v637_v37 }
 0x6c4   :  { %v634_v31 = vpop.xlane.xlu1 %633 }
 0x6c5   :  { %v638_v32 = vsub.f32 %v602_v22, %v634_v31  ;;  %v642_v47 = vmul.f32 1.442695, %v639_v45 }
 0x6c7   :  { %v640_v33 = vmul.f32 1.442695, %v638_v32 }
 0x6c9   :  { %2422 = vpow2.f32 %v640_v33 }
 0x6cc   :  { %v764_v34 = vpop.xlane.xlu2 %763  ;;  %v767_v35 = vpop.xlane.xlu1 %766 }
 0x6cd   :  { %v768_v38 = vsub.f32 %v732_v28, %v764_v34  ;;  %v769_v39 = vsub.f32 %v760_v26, %v767_v35 }
 0x6cf   :  { %v2423_v42 = vpop.eup %2422  ;;  %v770_v43 = vmul.f32 1.442695, %v768_v38  ;;  %v772_v44 = vmul.f32 1.442695, %v769_v39 }
 0x6d0   :  { %v644_v46 = vsel %vm318_vm0, %v2423_v42, 0.0 }
 0x6d1   :  { %2424 = vpow2.f32 %v770_v43  ;;  %645 = vadd.xlane.f32.xlu2 %v644_v46 }
 0x6d2   :  { %2426 = vpow2.f32 %v772_v44 }
 0x6d3   :  { %2428 = vpow2.f32 %v642_v47 }
 0x6d7   :  { %v2425_v49 = vpop.eup %2424 }
 0x6d8   :  { %v2427_v50 = vpop.eup %2426  ;;  %v774_v51 = vsel %vm318_vm0, %v2425_v49, 0.0 }
 0x6d9   :  { %775 = vadd.xlane.f32.xlu1 %v774_v51  ;;  %v777_v52 = vsel %vm318_vm0, %v2427_v50, 0.0  ;;  %v2429_v53 = vpop.eup %2428  ;;  %v966_v51 = vld [vmem:[%s3448_s14 + $0x8] sm:$0xff] }
 0x6da   :  { %778 = vadd.xlane.f32.xlu0 %v777_v52  ;;  %v647_v54 = vsel %vm318_vm0, %v2429_v53, 0.0  ;;  %v965_v52 = vld [vmem:[%s3448_s14] sm:$0xff] }
 0x6e2   :  { %648 = vadd.xlane.f32.xlu0 %v647_v54 }
 0x6e9   :  { %2364 = vrot.lane.b32.xlu2 %v2924_v48, %s3464_s4  ;;  %s3478_s4 = smov 16  }
 0x6f1   :  { %838 = vrot.lane.b32.xlu2 %v547_v18, %s3465_s5 }
 0x6f2   :  { %784 = vrot.lane.b32.xlu1 %v2863_v63, %s3467_s26 }
 0x6f6   :  { %810 = vrot.lane.b32.xlu0 %v2867_v1, %s3467_s26  ;;  %s3505_s26 = smov 104  }
 0x6f9   :  { %840 = vrot.lane.b32.xlu2 %v573_v36, %s3465_s5  ;;  %s2572_s5 = smov 24   ;;  %v868_v36 = vld [vmem:[%s3444_s10] sm:$0xff] }
 0x6fa   :  { %893 = vmatpush.msrb.mxu3 %v868_v36 }
 0x744   :  { %v646_v55 = vpop.xlane.xlu2 %645 }
 0x745   :  { %2430 = vrcp.f32 %v646_v55 }
 0x74b   :  { %v2431_v56 = vpop.eup %2430 }
 0x74c   :  { %v2365_v57 = vpop.permute.xlu2 %2364  ;;  %v652_v48 = vmul.f32 %v2431_v56, %v2423_v42  ;;  %v776_v63 = vpop.xlane.xlu1 %775 }
 0x74d   :  { %v2367_v58 = vunpack.i.h.bf16 %v2365_v57  ;;  %v779_v59 = vpop.xlane.xlu0 %778  ;;  %v2366_v60 = vunpack.i.l.bf16 %v2365_v57 }
 0x74f   :  { %675 = vmatpush.msrb.mxu1 %v2366_v60  ;;  %701 = vmatpush.msrb.mxu2 %v2367_v58 }
 0x750   :  { %2251 = vmatmul.msk.f32.vlgmr.msrb.gmra.mxu1 %vm318_vm0, %v652_v48 }
 0x754   :  { %v839_v18 = vpop.permute.xlu2 %838 }
 0x755   :  { %v649_v61 = vpop.xlane.xlu0 %648  ;;  %v860_v20 = vsel %vm318_vm0, %v2914_v41, %v839_v18  ;;  %v2383_v41 = vld [vmem:[%s3445_s11] ss:$0 sm:$0xff] }
 0x756   :  { %2432 = vrcp.f32 %v649_v61 }
 0x757   :  { %2434 = vrcp.f32 %v776_v63 }
 0x758   :  { %2436 = vrcp.f32 %v779_v59 }
 0x75c   :  { %v2433_v62 = vpop.eup %2432  ;;  %v841_v24 = vpop.permute.xlu2 %840 }
 0x75d   :  { %v653_v1 = vmul.f32 %v2433_v62, %v2429_v53  ;;  %v2435_v0 = vpop.eup %2434  ;;  %v861_v26 = vsel %vm318_vm0, %v2912_v40, %v841_v24 }
 0x75e   :  { %v782_v3 = vmul.f32 %v2435_v0, %v2425_v49  ;;  %v2437_v5 = vpop.eup %2436  ;;  %v968_v49 = vld [vmem:[%s3448_s14 + $0x18] sm:$0xff]  ;;  %v2384_v0 = vld [vmem:[%s3446_s12] ss:$0 sm:$0xff] }
 0x75f   :  { %2252 = vmatmul.msk.f32.vlgmr.msrb.gmra.mxu2 %vm318_vm0, %v653_v1  ;;  %v783_v7 = vmul.f32 %v2437_v5, %v2427_v50  ;;  %v967_v50 = vld [vmem:[%s3448_s14 + $0x10] sm:$0xff] }
 0x764   :  { %v785_v4 = vpop.permute.xlu1 %784 }
 0x765   :  { %805 = vmatpush.msra.mxu1 %v785_v4 }
 0x766   :  { %2257 = vmatmul.msk.f32.vlgmr.msra.gmra.mxu1 %vm318_vm0, %v782_v3 }
 0x767   :  { %991 = vmatpush.msrb.mxu1 %v968_v49 }
 0x768   :  { %v811_v8 = vpop.permute.xlu0 %810 }
 0x769   :  { %831 = vmatpush.msra.mxu2 %v811_v8  ;;  %992 = vmatpush.msrb.mxu1 %v967_v50 }
 0x76a   :  { %2258 = vmatmul.msk.f32.vlgmr.msra.gmra.mxu2 %vm318_vm0, %v783_v7  ;;  %v2385_v7 = vld [vmem:[%s3447_s13] ss:$0 sm:$0xff] }
 0x76b   :  { %993 = vmatpush.msrb.mxu1 %v966_v51  ;;  %v1084_v51 = vld [vmem:[%s3450_s16 + $0x10] sm:$0xff] }
 0x76d   :  { %994 = vmatpush.msrb.mxu1 %v965_v52 }
 0x7cd   :  { %v677_v11 = vpop.f32.mrf.mxu1 }
 0x7ce   :  { %846 = vrot.lane.b32.xlu1 %v677_v11, %s3478_s4 }
 0x7e2   :  { %v703_v12 = vpop.f32.mrf.mxu2 }
 0x7e3   :  { %848 = vrot.lane.b32.xlu1 %v703_v12, %s3478_s4  ;;  %v807_v13 = vpop.f32.mrf.mxu1  ;;  %s3503_s4 = smov 80  }
 0x7e4   :  { %854 = vrot.lane.b32.xlu0 %v807_v13, %s2572_s5 }
 0x7ed   :  { %v833_v14 = vpop.f32.mrf.mxu2 }
 0x7ee   :  { %856 = vrot.lane.b32.xlu0 %v833_v14, %s2572_s5 }
 0x840   :  { %v847_v19 = vpop.permute.xlu1 %846 }
 0x841   :  { %v863_v21 = vsel %vm862_vm2, %v860_v20, %v847_v19  ;;  %v1097_v19 = vld [vmem:[%s3450_s16 + $0x78] sm:$0xff]  ;;  %v2386_v20 = vld [vmem:[%s3449_s15] ss:$0 sm:$0xff] }
 0x842   :  { %1098 = vmatpush.msra.mxu1 %v1097_v19 }
 0x855   :  { %v849_v25 = vpop.permute.xlu1 %848 }
 0x856   :  { %v855_v22 = vpop.permute.xlu0 %854  ;;  %v864_v27 = vsel %vm862_vm2, %v861_v26, %v849_v25  ;;  %v1094_v25 = vld [vmem:[%s3450_s16 + $0x60] sm:$0xff] }
 0x857   :  { %v866_v23 = vsel %vm865_vm3, %v863_v21, %v855_v22  ;;  %v1096_v21 = vld [vmem:[%s3450_s16 + $0x70] sm:$0xff]  ;;  %v1095_v22 = vld [vmem:[%s3450_s16 + $0x68] sm:$0xff] }
 0x858   :  { %2259 = vmatmul.msk.f32.vlgmr.msrb.gmra.mxu3 %vm214_vm8, %v866_v23  ;;  %1099 = vmatpush.msra.mxu1 %v1096_v21 }
 0x85a   :  { %1100 = vmatpush.msra.mxu1 %v1095_v22 }
 0x85c   :  { %1101 = vmatpush.msra.mxu1 %v1094_v25 }
 0x860   :  { %v857_v28 = vpop.permute.xlu0 %856 }
 0x861   :  { %v867_v29 = vsel %vm865_vm3, %v864_v27, %v857_v28  ;;  %v1093_v27 = vld [vmem:[%s3450_s16 + $0x58] sm:$0xff] }
 0x862   :  { %2260 = vmatmul.msk.f32.gmra.mxu3 %vm214_vm8, %v867_v29  ;;  %1102 = vmatpush.msra.mxu1 %v1093_v27  ;;  %v1092_v29 = vld [vmem:[%s3450_s16 + $0x50] sm:$0xff] }
 0x864   :  { %1103 = vmatpush.msra.mxu1 %v1092_v29 }
 0x8db   :  { %v895_v30 = vpop.f32.mrf.mxu3 }
 0x8dc   :  { %v901_v31 = vadd.f32 %v895_v30, %v2822_v2  ;;  %v1091_v30 = vld [vmem:[%s3450_s16 + $0x48] sm:$0xff] }
 0x8dd   :  { %1104 = vmatpush.msra.mxu1 %v1091_v30 }
 0x8de   :  { %v3006_v32 = vadd.f32 %v2383_v41, %v901_v31 }
 0x8e0   :  { %v911_v33 = vsel %vm214_vm8, %v3006_v32, 0.0 }
 0x8e1   :  { %912 = vadd.xlane.f32.xlu2 %v911_v33  ;;  %v1090_v33 = vld [vmem:[%s3450_s16 + $0x40] sm:$0xff] }
 0x8e2   :  { %1105 = vmatpush.msra.mxu1 %v1090_v33 }
 0x8e5   :  { %v898_v40 = vpop.f32.mrf.mxu3 }
 0x8e6   :  { %v902_v34 = vadd.f32 %v898_v40, %v2826_v9 }
 0x8e8   :  { %v3011_v35 = vadd.f32 %v2383_v41, %v902_v34  ;;  %v1089_v34 = vld [vmem:[%s3450_s16 + $0x38] sm:$0xff] }
 0x8e9   :  { %1106 = vmatpush.msra.mxu1 %v1089_v34 }
 0x8ea   :  { %v914_v37 = vsel %vm214_vm8, %v3011_v35, 0.0 }
 0x8eb   :  { %915 = vadd.xlane.f32.xlu1 %v914_v37 }
 0x954   :  { %v913_v38 = vpop.xlane.xlu2 %912 }
 0x955   :  { %v917_v39 = vmul.f32 %v913_v38, %v2830_v17  ;;  %v1088_v38 = vld [vmem:[%s3450_s16 + $0x30] sm:$0xff] }
 0x956   :  { %1107 = vmatpush.msra.mxu1 %v1088_v38 }
 0x957   :  { %v919_v2 = vsub.f32 %v3006_v32, %v917_v39 }
 0x959   :  { %v921_v42 = vmul.f32 %v919_v2, %v919_v2 }
 0x95b   :  { %v923_v43 = vsel %vm214_vm8, %v921_v42, 0.0 }
 0x95c   :  { %924 = vadd.xlane.f32.xlu0 %v923_v43 }
 0x95e   :  { %v916_v44 = vpop.xlane.xlu1 %915 }
 0x95f   :  { %v918_v45 = vmul.f32 %v916_v44, %v2830_v17  ;;  %v1086_v44 = vld [vmem:[%s3450_s16 + $0x20] sm:$0xff] }
 0x961   :  { %v920_v9 = vsub.f32 %v3011_v35, %v918_v45 }
 0x963   :  { %v922_v46 = vmul.f32 %v920_v9, %v920_v9 }
 0x965   :  { %v926_v47 = vsel %vm214_vm8, %v922_v46, 0.0  ;;  %v1085_v46 = vld [vmem:[%s3450_s16 + $0x18] sm:$0xff] }
 0x966   :  { %927 = vadd.xlane.f32.xlu2 %v926_v47 }
 0x9cf   :  { %v925_v53 = vpop.xlane.xlu0 %924 }
 0x9d0   :  { %v929_v54 = vmul.f32 %v925_v53, %v2830_v17 }
 0x9d2   :  { %v931_v55 = vadd.f32 1e-06, %v929_v54  ;;  %v1083_v54 = vld [vmem:[%s3450_s16 + $0x8] sm:$0xff] }
 0x9d4   :  { %2438 = vrsqrt.f32 %v931_v55  ;;  %vm939_vm5 = vweird.f32 %v931_v55 }
 0x9d9   :  { %v928_v56 = vpop.xlane.xlu2 %927 }
 0x9da   :  { %v2439_v57 = vpop.eup %2438  ;;  %v930_v58 = vmul.f32 %v928_v56, %v2830_v17 }
 0x9db   :  { %v934_v59 = vmul.f32 %v2439_v57, %v931_v55  ;;  %vm940_vm4 = vweird.f32 %v2439_v57  ;;  %v1082_v55 = vld [vmem:[%s3450_s16] sm:$0xff] }
 0x9dc   :  { %v932_v60 = vadd.f32 1e-06, %v930_v58  ;;  %vm941_vm6 = vmor %vm939_vm5, %vm940_vm4 }
 0x9dd   :  { %v935_v48 = vmul.f32 %v2439_v57, %v934_v59 }
 0x9de   :  { %2440 = vrsqrt.f32 %v932_v60  ;;  %vm949_vm9 = vweird.f32 %v932_v60 }
 0x9df   :  { %v936_v61 = vmul.f32 0.5, %v935_v48 }
 0x9e1   :  { %v937_v63 = vsub.f32 1.5, %v936_v61 }
 0x9e3   :  { %v938_v62 = vmul.f32 %v2439_v57, %v937_v63 }
 0x9e4   :  { %v2441_v1 = vpop.eup %2440 }
 0x9e5   :  { %v942_v3 = vsel %vm941_vm6, %v2439_v57, %v938_v62  ;;  %v944_v4 = vmul.f32 %v2441_v1, %v932_v60  ;;  %vm950_vm7 = vweird.f32 %v2441_v1 }
 0x9e6   :  { %v953_v5 = vmul.f32 %v942_v3, %v919_v2  ;;  %vm951_vm10 = vmor %vm949_vm9, %vm950_vm7  ;;  %v1087_v2 = vld [vmem:[%s3450_s16 + $0x28] sm:$0xff] }
 0x9e7   :  { %v945_v8 = vmul.f32 %v2441_v1, %v944_v4  ;;  %1108 = vmatpush.msra.mxu1 %v1087_v2 }
 0x9e8   :  { %v958_v11 = vmul.f32 %v2384_v0, %v953_v5 }
 0x9e9   :  { %v946_v12 = vmul.f32 0.5, %v945_v8  ;;  %1109 = vmatpush.msra.mxu1 %v1086_v44 }
 0x9ea   :  { %v963_v13 = vadd.f32 %v2385_v7, %v958_v11 }
 0x9eb   :  { %v947_v14 = vsub.f32 1.5, %v946_v12  ;;  %1110 = vmatpush.msra.mxu1 %v1085_v46 }
 0x9ec   :  { %2261 = vmatmul.msk.f32.vlgmr.msrb.gmra.mxu1 %vm214_vm8, %v963_v13 }
 0x9ed   :  { %v948_v6 = vmul.f32 %v2441_v1, %v947_v14  ;;  %1111 = vmatpush.msra.mxu1 %v1084_v51 }
 0x9ef   :  { %v952_v15 = vsel %vm951_vm10, %v2441_v1, %v948_v6  ;;  %1112 = vmatpush.msra.mxu1 %v1083_v54 }
 0x9f0   :  { %v954_v16 = vmul.f32 %v952_v15, %v920_v9 }
 0x9f1   :  { %1113 = vmatpush.msra.mxu1 %v1082_v55 }
 0x9f2   :  { %v959_v36 = vmul.f32 %v2384_v0, %v954_v16 }
 0x9f4   :  { %v964_v18 = vadd.f32 %v2385_v7, %v959_v36 }
 0x9f6   :  { %2262 = vmatmul.msk.f32.gmra.mxu1 %vm214_vm8, %v964_v18 }
 0xa69   :  { %v996_v23 = vpop.f32.mrf.mxu1 }
 0xa6a   :  { %v3055_v24 = vadd.f32 %v2386_v20, %v996_v23 }
 0xa6c   :  { %v3061_v26 = vmul.f32 0.70710677, %v3055_v24  ;;  %v1076_v2 = vmul.f32 0.5, %v3055_v24  ;;  %v2387_v24 = vld [vmem:[%s3451_s17] ss:$0 sm:$0xff] }
 0xa6e   :  { %v1004_v28 = vand.u32 2147483647, %v3061_v26  ;;  %vm1070_vm6 = vcmp.ge.f32.partialorder %v3061_v26, 0.0 }
 0xa70   :  { %v1006_v41 = vmul.f32 0.3275911, %v1004_v28  ;;  %v1058_v60 = vsub.f32 0.0, %v1004_v28 }
 0xa72   :  { %v1008_v31 = vadd.f32 1.0, %v1006_v41  ;;  %v1060_v1 = vmul.f32 %v1058_v60, %v1004_v28 }
 0xa73   :  { %v999_v40 = vpop.f32.mrf.mxu1 }
 0xa74   :  { %2442 = vrcp.f32 %v1008_v31  ;;  %v3079_v37 = vadd.f32 %v2386_v20, %v999_v40  ;;  %v1021_v50 = vand.u32 2147483648, %v1008_v31  ;;  %v1019_v53 = vand.u32 2147483647, %v1008_v31 }
 0xa75   :  { %vm1015_vm12 = vweird.f32 %v1008_v31  ;;  %v1062_v11 = vmul.f32 1.442695, %v1060_v1 }
 0xa76   :  { %v3085_v39 = vmul.f32 0.70710677, %v3079_v37  ;;  %v1022_v57 = vor.u32 1.1754944e-38, %v1021_v50  ;;  %vm1020_vm14 = vcmp.eq.f32.partialorder %v1019_v53, 8.507059e+37  ;;  %v1077_v51 = vmul.f32 0.5, %v3079_v37 }
 0xa78   :  { %v1005_v42 = vand.u32 2147483647, %v3085_v39  ;;  %vm1071_vm7 = vcmp.ge.f32.partialorder %v3085_v39, 0.0 }
 0xa7a   :  { %v2443_v43 = vpop.eup %2442  ;;  %v1007_v9 = vmul.f32 0.3275911, %v1005_v42  ;;  %v1059_v16 = vsub.f32 0.0, %v1005_v42 }
 0xa7b   :  { %v1011_v45 = vmul.f32 %v2443_v43, %v1008_v31  ;;  %vm1016_vm11 = vweird.f32 %v2443_v43 }
 0xa7c   :  { %v1009_v49 = vadd.f32 1.0, %v1007_v9  ;;  %vm1017_vm13 = vmor %vm1015_vm12, %vm1016_vm11  ;;  %v1061_v22 = vmul.f32 %v1059_v16, %v1005_v42 }
 0xa7d   :  { %v1012_v47 = vsub.f32 1.0, %v1011_v45 }
 0xa7e   :  { %2444 = vrcp.f32 %v1009_v49  ;;  %v1036_v4 = vand.u32 2147483648, %v1009_v49  ;;  %v1034_v7 = vand.u32 2147483647, %v1009_v49  ;;  %vm1030_vm1 = vweird.f32 %v1009_v49 }
 0xa7f   :  { %v1013_v52 = vmul.f32 %v2443_v43, %v1012_v47  ;;  %2446 = vpow2.f32 %v1062_v11  ;;  %v1064_v41 = vmul.f32 1.442695, %v1061_v22 }
 0xa80   :  { %v1037_v14 = vor.u32 1.1754944e-38, %v1036_v4  ;;  %vm1035_vm5 = vcmp.eq.f32.partialorder %v1034_v7, 8.507059e+37  ;;  %v2271_v4 = vld [vmem:[%s3497_s27 + $0x30] sm:$0xff]  ;;  %v2269_v7 = vld [vmem:[%s3497_s27 + $0x20] sm:$0xff] }
 0xa81   :  { %v1014_v56 = vadd.f32 %v2443_v43, %v1013_v52  ;;  %2448 = vpow2.f32 %v1064_v41 }
 0xa83   :  { %v1018_v58 = vsel %vm1017_vm13, %v2443_v43, %v1014_v56 }
 0xa84   :  { %v1023_v59 = vsel %vm1020_vm14, %v1022_v57, %v1018_v58  ;;  %v2445_v48 = vpop.eup %2444 }
 0xa85   :  { %v1040_v61 = vmul.f32 1.0614054, %v1023_v59  ;;  %v1026_v63 = vmul.f32 %v2445_v48, %v1009_v49  ;;  %vm1031_vm15 = vweird.f32 %v2445_v48  ;;  %v2447_v27 = vpop.eup %2446 }
 0xa86   :  { %vm1032_vm4 = vmor %vm1030_vm1, %vm1031_vm15 }
 0xa87   :  { %v2263_v62 = vadd.f32 -1.4531521, %v1040_v61  ;;  %v1027_v0 = vsub.f32 1.0, %v1026_v63  ;;  %v2449_v9 = vpop.eup %2448 }
 0xa89   :  { %v1044_v3 = vmul.f32 %v2263_v62, %v1023_v59  ;;  %v1028_v5 = vmul.f32 %v2445_v48, %v1027_v0 }
 0xa8b   :  { %v1046_v8 = vadd.f32 1.4214138, %v1044_v3  ;;  %v1029_v12 = vadd.f32 %v2445_v48, %v1028_v5  ;;  %v2272_v3 = vld [vmem:[%s3497_s27 + $0x38] sm:$0xff]  ;;  %v2270_v5 = vld [vmem:[%s3497_s27 + $0x28] sm:$0xff]  ;;  %s3509_s27 = smov 16  }
 0xa8c   :  { %1215 = vmatpush.msrb.mxu2 %v2272_v3 }
 0xa8d   :  { %v1048_v13 = vmul.f32 %v1046_v8, %v1023_v59  ;;  %v1033_v6 = vsel %vm1032_vm4, %v2445_v48, %v1029_v12 }
 0xa8e   :  { %v1038_v36 = vsel %vm1035_vm5, %v1037_v14, %v1033_v6  ;;  %1216 = vmatpush.msrb.mxu2 %v2271_v4 }
 0xa8f   :  { %v2265_v15 = vadd.f32 -0.28449672, %v1048_v13  ;;  %v1041_v18 = vmul.f32 1.0614054, %v1038_v36 }
 0xa90   :  { %1217 = vmatpush.msrb.mxu2 %v2270_v5 }
 0xa91   :  { %v1052_v19 = vmul.f32 %v2265_v15, %v1023_v59  ;;  %v2264_v20 = vadd.f32 -1.4531521, %v1041_v18 }
 0xa92   :  { %1218 = vmatpush.msrb.mxu2 %v2269_v7 }
 0xa93   :  { %v1054_v21 = vadd.f32 0.2548296, %v1052_v19  ;;  %v1045_v23 = vmul.f32 %v2264_v20, %v1038_v36 }
 0xa95   :  { %v1056_v25 = vmul.f32 %v1054_v21, %v1023_v59  ;;  %v1047_v28 = vadd.f32 1.4214138, %v1045_v23  ;;  %v2388_v21 = vld [vmem:[%s3498_s25 + $0x1] ss:$0 sm:$0xff] }
 0xa97   :  { %v1066_v29 = vmul.f32 %v2447_v27, %v1056_v25  ;;  %v1049_v30 = vmul.f32 %v1047_v28, %v1038_v36  ;;  %v2389_v28 = vld [vmem:[%s3499_s1 + $0x1] ss:$0 sm:$0xff]  ;;  %s3501_s1 = smov 64  }
 0xa99   :  { %v1068_v31 = vsub.f32 1.0, %v1066_v29  ;;  %v2266_v33 = vadd.f32 -0.28449672, %v1049_v30 }
 0xa9b   :  { %v1072_v40 = vsub.f32 0.0, %v1068_v31  ;;  %v1053_v34 = vmul.f32 %v2266_v33, %v1038_v36 }
 0xa9d   :  { %v1074_v38 = vsel %vm1070_vm6, %v1068_v31, %v1072_v40  ;;  %v1055_v44 = vadd.f32 0.2548296, %v1053_v34 }
 0xa9e   :  { %v1078_v43 = vadd.f32 1.0, %v1074_v38 }
 0xa9f   :  { %v1057_v45 = vmul.f32 %v1055_v44, %v1038_v36  ;;  %v2390_v44 = vld [vmem:[%s3443_s9 + $0x1] ss:$0 sm:$0xff]  ;;  %s3500_s9 = smov 112  }
 0xaa0   :  { %v1080_v42 = vmul.f32 %v1078_v43, %v1076_v2 }
 0xaa1   :  { %v1067_v46 = vmul.f32 %v2449_v9, %v1057_v45 }
 0xaa2   :  { %1114 = vmatmul.f32.vlgmr.msra.gmra.mxu1 %v1080_v42 }
 0xaa3   :  { %v1069_v47 = vsub.f32 1.0, %v1067_v46 }
 0xaa5   :  { %v1073_v49 = vsub.f32 0.0, %v1069_v47 }
 0xaa7   :  { %v1075_v50 = vsel %vm1071_vm7, %v1069_v47, %v1073_v49 }
 0xaa8   :  { %v1079_v52 = vadd.f32 1.0, %v1075_v50 }
 0xaaa   :  { %v1081_v26 = vmul.f32 %v1079_v52, %v1077_v51 }
 0xaac   :  { %1117 = vmatmul.f32.gmra.mxu1 %v1081_v26 }
 0xb1f   :  { %v1115_v53 = vpop.f32.mrf.mxu1 }
 0xb20   :  { %v1121_v54 = vadd.f32 %v1115_v53, %v3006_v32 }
 0xb22   :  { %v3114_v55 = vadd.f32 %v2387_v24, %v1121_v54 }
 0xb24   :  { %v1133_v56 = vsel %vm214_vm8, %v3114_v55, 0.0 }
 0xb25   :  { %1134 = vadd.xlane.f32.xlu1 %v1133_v56 }
 0xb29   :  { %v1118_v39 = vpop.f32.mrf.mxu1 }
 0xb2a   :  { %v1122_v57 = vadd.f32 %v1118_v39, %v3011_v35 }
 0xb2c   :  { %v3119_v37 = vadd.f32 %v2387_v24, %v1122_v57 }
 0xb2e   :  { %v1136_v58 = vsel %vm214_vm8, %v3119_v37, 0.0 }
 0xb2f   :  { %1137 = vadd.xlane.f32.xlu0 %v1136_v58 }
 0xb98   :  { %v1135_v59 = vpop.xlane.xlu1 %1134 }
 0xb99   :  { %v1139_v60 = vmul.f32 %v1135_v59, %v2830_v17 }
 0xb9b   :  { %v1141_v32 = vsub.f32 %v3114_v55, %v1139_v60 }
 0xb9d   :  { %v1143_v48 = vmul.f32 %v1141_v32, %v1141_v32 }
 0xb9f   :  { %v1145_v61 = vsel %vm214_vm8, %v1143_v48, 0.0 }
 0xba0   :  { %1146 = vadd.xlane.f32.xlu2 %v1145_v61 }
 0xba2   :  { %v1138_v63 = vpop.xlane.xlu0 %1137 }
 0xba3   :  { %v1140_v62 = vmul.f32 %v1138_v63, %v2830_v17 }
 0xba5   :  { %v1142_v35 = vsub.f32 %v3119_v37, %v1140_v62 }
 0xba7   :  { %v1144_v1 = vmul.f32 %v1142_v35, %v1142_v35 }
 0xba9   :  { %v1148_v0 = vsel %vm214_vm8, %v1144_v1, 0.0 }
 0xbaa   :  { %1149 = vadd.xlane.f32.xlu1 %v1148_v0 }
 0xc13   :  { %v1147_v8 = vpop.xlane.xlu2 %1146 }
 0xc14   :  { %v1151_v11 = vmul.f32 %v1147_v8, %v2830_v17 }
 0xc16   :  { %v1153_v12 = vadd.f32 1e-06, %v1151_v11 }
 0xc18   :  { %2450 = vrsqrt.f32 %v1153_v12  ;;  %vm1161_vm10 = vweird.f32 %v1153_v12 }
 0xc1d   :  { %v1150_v14 = vpop.xlane.xlu1 %1149 }
 0xc1e   :  { %v2451_v13 = vpop.eup %2450  ;;  %v1152_v15 = vmul.f32 %v1150_v14, %v2830_v17 }
 0xc1f   :  { %v1156_v6 = vmul.f32 %v2451_v13, %v1153_v12  ;;  %vm1162_vm9 = vweird.f32 %v2451_v13 }
 0xc20   :  { %v1154_v36 = vadd.f32 1e-06, %v1152_v15  ;;  %vm1163_vm11 = vmor %vm1161_vm10, %vm1162_vm9 }
 0xc21   :  { %v1157_v16 = vmul.f32 %v2451_v13, %v1156_v6 }
 0xc22   :  { %2452 = vrsqrt.f32 %v1154_v36  ;;  %vm1171_vm13 = vweird.f32 %v1154_v36 }
 0xc23   :  { %v1158_v18 = vmul.f32 0.5, %v1157_v16 }
 0xc25   :  { %v1159_v19 = vsub.f32 1.5, %v1158_v18 }
 0xc27   :  { %v1160_v20 = vmul.f32 %v2451_v13, %v1159_v19 }
 0xc28   :  { %v2453_v22 = vpop.eup %2452 }
 0xc29   :  { %v1164_v23 = vsel %vm1163_vm11, %v2451_v13, %v1160_v20  ;;  %v1166_v27 = vmul.f32 %v2453_v22, %v1154_v36  ;;  %vm1172_vm12 = vweird.f32 %v2453_v22 }
 0xc2a   :  { %v1175_v25 = vmul.f32 %v1164_v23, %v1141_v32  ;;  %vm1173_vm14 = vmor %vm1171_vm13, %vm1172_vm12 }
 0xc2b   :  { %v1167_v41 = vmul.f32 %v2453_v22, %v1166_v27 }
 0xc2c   :  { %v1180_v29 = vmul.f32 %v2388_v21, %v1175_v25 }
 0xc2d   :  { %v1168_v30 = vmul.f32 0.5, %v1167_v41 }
 0xc2e   :  { %v1185_v31 = vadd.f32 %v2389_v28, %v1180_v29 }
 0xc2f   :  { %v1169_v33 = vsub.f32 1.5, %v1168_v30 }
 0xc30   :  { %2274 = vmatmul.msk.f32.vlgmr.msrb.gmra.mxu2 %vm214_vm8, %v1185_v31 }
 0xc31   :  { %v1170_v40 = vmul.f32 %v2453_v22, %v1169_v33 }
 0xc33   :  { %v1174_v34 = vsel %vm1173_vm14, %v2453_v22, %v1170_v40 }
 0xc34   :  { %v1176_v38 = vmul.f32 %v1174_v34, %v1142_v35 }
 0xc36   :  { %v1181_v2 = vmul.f32 %v2388_v21, %v1176_v38 }
 0xc38   :  { %v1186_v43 = vadd.f32 %v2389_v28, %v1181_v2 }
 0xc3a   :  { %2275 = vmatmul.msk.f32.gmra.mxu2 %vm214_vm8, %v1186_v43 }
 0xcb3   :  { %v1220_v42 = vpop.f32.mrf.mxu2 }
 0xcb4   :  { %v3154_v45 = vadd.f32 %v2390_v44, %v1220_v42 }
 0xcb6   :  { %1229 = vrot.lane.b32.xlu0 %v3154_v45, %s2558_s28  ;;  %1360 = vrot.lane.b32.xlu1 %v3154_v45, %s2560_s6  ;;  %v1226_v9 = vmul.f32 0.35355338, %v3154_v45 }
 0xcbd   :  { %v1223_v46 = vpop.f32.mrf.mxu2 }
 0xcbe   :  { %1358 = vrot.lane.b32.xlu0 %v1226_v9, %s2562_s29  ;;  %v3162_v47 = vadd.f32 %v2390_v44, %v1223_v46 }
 0xcc0   :  { %1257 = vrot.lane.b32.xlu2 %v3162_v47, %s2558_s28  ;;  %v1227_v50 = vmul.f32 0.35355338, %v3162_v47  ;;  %v3184_v32 = vpack.i.bf16 %v3162_v47, %v3154_v45  ;;  %s3502_s28 = smov 56  }
 0xd1a   :  { %v1258_v49 = vpop.permute.xlu2 %1257 }
 0xd1b   :  { %2278 = vmatpush.xpose.msk.msra.mxu0 %vm318_vm0, %v1258_v49 }
 0xd1e   :  { %2279 = vmatmul.msk.f32.vlgmr.msra.gmra.mxu0 %vm318_vm0, %v1227_v50 }
 0xd28   :  { %v1361_v51 = vpop.permute.xlu1 %1360  ;;  %v1230_v52 = vpop.permute.xlu0 %1229 }
 0xd29   :  { %2276 = vmatpush.xpose.msk.msra.mxu3 %vm318_vm0, %v1230_v52  ;;  %2282 = vmatpush.xpose.msk.msrb.mxu0 %vm318_vm0, %v1361_v51 }
 0xd2c   :  { %2277 = vmatmul.msk.f32.vlgmr.msra.gmra.mxu3 %vm318_vm0, %v1226_v9 }
 0xd30   :  { %v1359_v26 = vpop.permute.xlu0 %1358 }
 0xd31   :  { %2283 = vmatmul.msk.f32.vlgmr.msrb.gmra.mxu0 %vm318_vm0, %v1359_v26 }
 0xd9b   :  { %v1281_v24 = vpop.f32.mrf.mxu0 }
 0xd9c   :  { %v1282_v53 = vadd.f32 %v1281_v24, %v2884_v10 }
 0xd9e   :  { %v1287_v54 = vsel %vm318_vm0, %v1282_v53, -inf }
 0xd9f   :  { %1288 = vmax.xlane.f32.xlu0 %v1287_v54 }
 0xdae   :  { %v1383_v56 = vpop.f32.mrf.mxu0 }
 0xdaf   :  { %v1384_v39 = vadd.f32 %v1383_v56, %v2884_v10  ;;  %v1253_v57 = vpop.f32.mrf.mxu3 }
 0xdb0   :  { %v1254_v58 = vadd.f32 %v1253_v57, %v2884_v10 }
 0xdb1   :  { %v1414_v59 = vsel %vm318_vm0, %v1384_v39, -inf }
 0xdb2   :  { %1415 = vmax.xlane.f32.xlu1 %v1414_v59  ;;  %v1284_v60 = vsel %vm318_vm0, %v1254_v58, -inf }
 0xdb3   :  { %1285 = vmax.xlane.f32.xlu2 %v1284_v60  ;;  %1386 = vrot.lane.b32.xlu0 %v1227_v50, %s2562_s29  ;;  %s3504_s29 = smov 72  }
 0xdbb   :  { %1488 = vrot.lane.b32.xlu0 %v1226_v9, %s3500_s9 }
 0xdc3   :  { %1516 = vrot.lane.b32.xlu0 %v1227_v50, %s3500_s9  ;;  %s2217_s9 = sshll.u32 %s2574_s8, 4  ;;  %s2218_s9 = int_to_ptr.vmem [resolvable:$true] %s2217_s9 }
 0xdcb   :  { %1388 = vrot.lane.b32.xlu2 %v3162_v47, %s2560_s6  ;;  %2369 = vrot.lane.b32.xlu1 %v3184_v32, %s3501_s1  ;;  %s3506_s6 = smov 40  }
 0xdd3   :  { %1436 = vrot.lane.b32.xlu2 %v3154_v45, %s3502_s28  ;;  %1490 = vrot.lane.b32.xlu1 %v3154_v45, %s3503_s4 }
 0xddb   :  { %1620 = vrot.lane.b32.xlu2 %v3154_v45, %s3504_s29  ;;  %1518 = vrot.lane.b32.xlu1 %v3162_v47, %s3503_s4 }
 0xde3   :  { %1618 = vrot.lane.b32.xlu1 %v1226_v9, %s3505_s26 }
 0xe12   :  { %v1289_v48 = vpop.xlane.xlu0 %1288 }
 0xe13   :  { %v1291_v61 = vsub.f32 %v1282_v53, %v1289_v48 }
 0xe15   :  { %v1294_v63 = vmul.f32 1.442695, %v1291_v61 }
 0xe17   :  { %2454 = vpow2.f32 %v1294_v63 }
 0xe1d   :  { %v2455_v62 = vpop.eup %2454 }
 0xe1e   :  { %v1299_v35 = vsel %vm318_vm0, %v2455_v62, 0.0 }
 0xe1f   :  { %1300 = vadd.xlane.f32.xlu0 %v1299_v35 }
 0xe25   :  { %v1416_v1 = vpop.xlane.xlu1 %1415  ;;  %v1387_v18 = vpop.permute.xlu0 %1386 }
 0xe26   :  { %v1420_v0 = vsub.f32 %v1384_v39, %v1416_v1  ;;  %v1286_v3 = vpop.xlane.xlu2 %1285 }
 0xe27   :  { %v1290_v4 = vsub.f32 %v1254_v58, %v1286_v3 }
 0xe28   :  { %v1422_v5 = vmul.f32 1.442695, %v1420_v0 }
 0xe29   :  { %v1292_v7 = vmul.f32 1.442695, %v1290_v4 }
 0xe2a   :  { %2456 = vpow2.f32 %v1422_v5 }
 0xe2b   :  { %2458 = vpow2.f32 %v1292_v7 }
 0xe2d   :  { %v1489_v19 = vpop.permute.xlu0 %1488 }
 0xe2e   :  { %v1389_v14 = vpop.permute.xlu2 %1388 }
 0xe30   :  { %v2457_v8 = vpop.eup %2456 }
 0xe31   :  { %v2459_v11 = vpop.eup %2458  ;;  %v1426_v12 = vsel %vm318_vm0, %v2457_v8, 0.0 }
 0xe32   :  { %1427 = vadd.xlane.f32.xlu0 %v1426_v12  ;;  %v1296_v13 = vsel %vm318_vm0, %v2459_v11, 0.0 }
 0xe33   :  { %1297 = vadd.xlane.f32.xlu2 %v1296_v13 }
 0xe35   :  { %v1517_v20 = vpop.permute.xlu0 %1516 }
 0xe36   :  { %v1437_v36 = vpop.permute.xlu2 %1436 }
 0xe3d   :  { %v2370_v6 = vpop.permute.xlu1 %2369 }
 0xe3e   :  { %v2372_v15 = vunpack.i.h.bf16 %v2370_v6  ;;  %v2371_v16 = vunpack.i.l.bf16 %v2370_v6  ;;  %v1621_v28 = vpop.permute.xlu2 %1620 }
 0xe40   :  { %1327 = vmatpush.msra.mxu2 %v2371_v16  ;;  %1353 = vmatpush.msrb.mxu3 %v2372_v15 }
 0xe42   :  { %2284 = vmatpush.xpose.msk.msrb.mxu2 %vm318_vm0, %v1389_v14  ;;  %1457 = vmatpush.msra.mxu3 %v1437_v36 }
 0xe45   :  { %v1491_v21 = vpop.permute.xlu1 %1490 }
 0xe46   :  { %1646 = vrot.lane.b32.xlu0 %v1227_v50, %s3505_s26 }
 0xe4b   :  { %1648 = vrot.lane.b32.xlu2 %v3162_v47, %s3504_s29 }
 0xe4d   :  { %v1519_v27 = vpop.permute.xlu1 %1518 }
 0xe55   :  { %v1619_v2 = vpop.permute.xlu1 %1618 }
 0xe92   :  { %v1301_v22 = vpop.xlane.xlu0 %1300 }
 0xe93   :  { %2460 = vrcp.f32 %v1301_v22 }
 0xe99   :  { %v2461_v23 = vpop.eup %2460 }
 0xe9a   :  { %v1305_v25 = vmul.f32 %v2461_v23, %v2455_v62 }
 0xe9c   :  { %2281 = vmatmul.msk.f32.vlgmr.msrb.gmra.mxu3 %vm318_vm0, %v1305_v25 }
 0xe9d   :  { %2290 = vmatpush.xpose.msk.msrb.mxu3 %vm318_vm0, %v1519_v27 }
 0xea5   :  { %v1428_v29 = vpop.xlane.xlu0 %1427 }
 0xea6   :  { %2462 = vrcp.f32 %v1428_v29  ;;  %v1298_v41 = vpop.xlane.xlu2 %1297 }
 0xea7   :  { %2464 = vrcp.f32 %v1298_v41 }
 0xeac   :  { %v2463_v30 = vpop.eup %2462 }
 0xead   :  { %v2465_v31 = vpop.eup %2464  ;;  %v1434_v33 = vmul.f32 %v2463_v30, %v2457_v8 }
 0xeae   :  { %v1304_v40 = vmul.f32 %v2465_v31, %v2459_v11  ;;  %v1649_v34 = vpop.permute.xlu2 %1648 }
 0xeaf   :  { %2286 = vmatmul.msk.f32.vlgmr.msra.gmra.mxu3 %vm318_vm0, %v1434_v33 }
 0xeb0   :  { %2296 = vmatpush.xpose.msk.msra.mxu3 %vm318_vm0, %v1649_v34  ;;  %2280 = vmatmul.msk.f32.vlgmr.msra.gmra.mxu2 %vm318_vm0, %v1304_v40 }
 0xeb1   :  { %2288 = vmatpush.xpose.msk.msra.mxu2 %vm318_vm0, %v1491_v21 }
 0xeb7   :  { %2291 = vmatmul.msk.f32.vlgmr.msrb.gmra.mxu3 %vm318_vm0, %v1517_v20 }
 0xeb8   :  { %2285 = vmatmul.msk.f32.vlgmr.msrb.gmra.mxu2 %vm318_vm0, %v1387_v18  ;;  %v1647_v38 = vpop.permute.xlu0 %1646 }
 0xeb9   :  { %2294 = vmatpush.xpose.msk.msrb.mxu2 %vm318_vm0, %v1621_v28 }
 0xebf   :  { %2297 = vmatmul.msk.f32.vlgmr.msra.gmra.mxu3 %vm318_vm0, %v1647_v38 }
 0xec0   :  { %2289 = vmatmul.msk.f32.vlgmr.msra.gmra.mxu2 %vm318_vm0, %v1489_v19 }
 0xec8   :  { %2295 = vmatmul.msk.f32.vlgmr.msrb.gmra.mxu2 %vm318_vm0, %v1619_v2 }
 0xf1f   :  { %v3218_v43 = vpop.f32.mrf.mxu3 }
 0xf32   :  { %v1459_v44 = vpop.f32.mrf.mxu3 }
 0xf33   :  { %v3220_v42 = vpop.f32.mrf.mxu2 }
 0xf3a   :  { %v1541_v9 = vpop.f32.mrf.mxu3 }
 0xf3b   :  { %v1542_v46 = vadd.f32 %v1541_v9, %v2884_v10  ;;  %v1411_v49 = vpop.f32.mrf.mxu2 }
 0xf3c   :  { %v1412_v50 = vadd.f32 %v1411_v49, %v2884_v10 }
 0xf3d   :  { %v1547_v51 = vsel %vm318_vm0, %v1542_v46, -inf }
 0xf3e   :  { %1548 = vmax.xlane.f32.xlu0 %v1547_v51  ;;  %v1417_v52 = vsel %vm318_vm0, %v1412_v50, -inf }
 0xf3f   :  { %1418 = vmax.xlane.f32.xlu1 %v1417_v52 }
 0xf42   :  { %v1671_v26 = vpop.f32.mrf.mxu3 }
 0xf43   :  { %v1672_v24 = vadd.f32 %v1671_v26, %v2884_v10  ;;  %v1513_v53 = vpop.f32.mrf.mxu2 }
 0xf44   :  { %v1514_v54 = vadd.f32 %v1513_v53, %v2884_v10  ;;  %v2302_v53 = vld [vmem:[%s3444_s10 + $0x30] sm:$0xff] }
 0xf45   :  { %v1677_v56 = vsel %vm318_vm0, %v1672_v24, -inf }
 0xf46   :  { %v1544_v39 = vsel %vm318_vm0, %v1514_v54, -inf }
 0xf47   :  { %1545 = vmax.xlane.f32.xlu2 %v1544_v39  ;;  %1678 = vmax.xlane.f32.xlu1 %v1677_v56  ;;  %v2300_v56 = vld [vmem:[%s3444_s10 + $0x20] sm:$0xff] }
 0xf4b   :  { %v1643_v57 = vpop.f32.mrf.mxu2 }
 0xf4c   :  { %v1644_v58 = vadd.f32 %v1643_v57, %v2884_v10 }
 0xf4e   :  { %v1674_v59 = vsel %vm318_vm0, %v1644_v58, -inf }
 0xf4f   :  { %1675 = vmax.xlane.f32.xlu2 %v1674_v59 }
 0xf60   :  { %1462 = vrot.lane.b32.xlu1 %v3162_v47, %s3502_s28 }
 0xf68   :  { %1722 = vrot.lane.b32.xlu1 %v3162_v47, %s3506_s6 }
 0xf70   :  { %1750 = vrot.lane.b32.xlu1 %v1459_v44, %s3507_s2 }
 0xfb1   :  { %v1549_v60 = vpop.xlane.xlu0 %1548 }
 0xfb2   :  { %v1419_v48 = vpop.xlane.xlu1 %1418  ;;  %v1551_v63 = vsub.f32 %v1542_v46, %v1549_v60 }
 0xfb3   :  { %v1421_v61 = vsub.f32 %v1412_v50, %v1419_v48 }
 0xfb4   :  { %v1554_v35 = vmul.f32 1.442695, %v1551_v63 }
 0xfb5   :  { %v1424_v62 = vmul.f32 1.442695, %v1421_v61 }
 0xfb7   :  { %2466 = vpow2.f32 %v1424_v62 }
 0xfb8   :  { %2468 = vpow2.f32 %v1554_v35 }
 0xfba   :  { %v1546_v1 = vpop.xlane.xlu2 %1545  ;;  %v1679_v5 = vpop.xlane.xlu1 %1678 }
 0xfbb   :  { %v1550_v10 = vsub.f32 %v1514_v54, %v1546_v1  ;;  %v1681_v12 = vsub.f32 %v1672_v24, %v1679_v5  ;;  %v2303_v24 = vld [vmem:[%s3444_s10 + $0x38] sm:$0xff]  ;;  %v2301_v54 = vld [vmem:[%s3444_s10 + $0x28] sm:$0xff]  ;;  %s2575_s10 = smov [#allocation2]  }
 0xfbc   :  { %1801 = vmatpush.msra.mxu2 %v2303_v24 }
 0xfbd   :  { %v2467_v0 = vpop.eup %2466  ;;  %v1552_v3 = vmul.f32 1.442695, %v1550_v10  ;;  %v1684_v15 = vmul.f32 1.442695, %v1681_v12 }
 0xfbe   :  { %v1429_v4 = vsel %vm318_vm0, %v2467_v0, 0.0  ;;  %v2469_v7 = vpop.eup %2468  ;;  %1802 = vmatpush.msra.mxu2 %v2302_v53 }
 0xfbf   :  { %2470 = vpow2.f32 %v1552_v3  ;;  %1430 = vadd.xlane.f32.xlu0 %v1429_v4  ;;  %v1559_v6 = vsel %vm318_vm0, %v2469_v7, 0.0 }
 0xfc0   :  { %1803 = vmatpush.msra.mxu2 %v2301_v54 }
 0xfc2   :  { %v1676_v47 = vpop.xlane.xlu2 %1675  ;;  %1804 = vmatpush.msra.mxu2 %v2300_v56 }
 0xfc3   :  { %v1680_v8 = vsub.f32 %v1644_v58, %v1676_v47 }
 0xfc5   :  { %v2471_v11 = vpop.eup %2470  ;;  %v1682_v13 = vmul.f32 1.442695, %v1680_v8 }
 0xfc6   :  { %v1556_v14 = vsel %vm318_vm0, %v2471_v11, 0.0 }
 0xfc7   :  { %2472 = vpow2.f32 %v1682_v13  ;;  %1557 = vadd.xlane.f32.xlu2 %v1556_v14  ;;  %1560 = vadd.xlane.f32.xlu0 %v1559_v6 }
 0xfc8   :  { %2474 = vpow2.f32 %v1684_v15 }
 0xfcd   :  { %v2473_v16 = vpop.eup %2472 }
 0xfce   :  { %v1686_v36 = vsel %vm318_vm0, %v2473_v16, 0.0  ;;  %v2475_v19 = vpop.eup %2474 }
 0xfcf   :  { %1687 = vadd.xlane.f32.xlu2 %v1686_v36  ;;  %v1689_v20 = vsel %vm318_vm0, %v2475_v19, 0.0 }
 0xfd2   :  { %v1463_v18 = vpop.permute.xlu1 %1462 }
 0xfd3   :  { %1483 = vmatpush.msra.mxu0 %v1463_v18  ;;  %v2312_v18 = vld [vmem:[%s3448_s14 + $0x38] sm:$0xff] }
 0xfd4   :  { %1907 = vmatpush.msrb.mxu3 %v2312_v18 }
 0xfd7   :  { %1690 = vadd.xlane.f32.xlu2 %v1689_v20  ;;  %v2310_v20 = vld [vmem:[%s3448_s14 + $0x28] sm:$0xff] }
 0xfda   :  { %v1723_v34 = vpop.permute.xlu1 %1722 }
 0xfdb   :  { %2374 = vrot.lane.b32.xlu0 %v3184_v32, %s3508_s0 }
 0xfe2   :  { %v1751_v39 = vpop.permute.xlu1 %1750 }
 0xfe3   :  { %v1772_v58 = vsel %vm318_vm0, %v3220_v42, %v1751_v39  ;;  %v2391_v42 = vld [vmem:[%s3445_s11 + $0x1] ss:$0 sm:$0xff]  ;;  %v2335_v39 = vld [vmem:[%s3450_s16 + $0xf8] sm:$0xff] }
 0xfef   :  { %1696 = vrot.lane.b32.xlu2 %v3154_v45, %s3506_s6 }
0x1032   :  { %v1431_v21 = vpop.xlane.xlu0 %1430 }
0x1033   :  { %2476 = vrcp.f32 %v1431_v21  ;;  %v2309_v21 = vld [vmem:[%s3448_s14 + $0x20] sm:$0xff] }
0x1039   :  { %v2477_v22 = vpop.eup %2476 }
0x103a   :  { %v1435_v23 = vmul.f32 %v2477_v22, %v2467_v0  ;;  %v1558_v25 = vpop.xlane.xlu2 %1557  ;;  %v1561_v28 = vpop.xlane.xlu0 %1560 }
0x103b   :  { %2478 = vrcp.f32 %v1558_v25 }
0x103c   :  { %2287 = vmatmul.msk.f32.vlgmr.msra.gmra.mxu0 %vm318_vm0, %v1435_v23  ;;  %2480 = vrcp.f32 %v1561_v28 }
0x1041   :  { %v2479_v41 = vpop.eup %2478 }
0x1042   :  { %v1688_v27 = vpop.xlane.xlu2 %1687  ;;  %v2481_v30 = vpop.eup %2480  ;;  %v1564_v45 = vmul.f32 %v2479_v41, %v2471_v11 }
0x1043   :  { %2482 = vrcp.f32 %v1688_v27  ;;  %v1565_v40 = vmul.f32 %v2481_v30, %v2469_v7 }
0x1049   :  { %v2483_v2 = vpop.eup %2482 }
0x104a   :  { %v1691_v29 = vpop.xlane.xlu2 %1690  ;;  %v1694_v9 = vmul.f32 %v2483_v2, %v2473_v16 }
0x104b   :  { %2484 = vrcp.f32 %v1691_v29 }
0x104d   :  { %v2375_v31 = vpop.permute.xlu0 %2374 }
0x104e   :  { %v2377_v32 = vunpack.i.h.bf16 %v2375_v31  ;;  %v2376_v33 = vunpack.i.l.bf16 %v2375_v31 }
0x1050   :  { %1587 = vmatpush.msrb.mxu0 %v2376_v33  ;;  %1613 = vmatpush.msrb.mxu1 %v2377_v32 }
0x1051   :  { %2292 = vmatmul.msk.f32.vlgmr.msrb.gmra.mxu0 %vm318_vm0, %v1564_v45  ;;  %2293 = vmatmul.msk.f32.vlgmr.msrb.gmra.mxu1 %vm318_vm0, %v1565_v40  ;;  %v2485_v44 = vpop.eup %2484 }
0x1052   :  { %1743 = vmatpush.msra.mxu1 %v1723_v34  ;;  %v1697_v38 = vpop.permute.xlu2 %1696  ;;  %v1695_v46 = vmul.f32 %v2485_v44, %v2475_v19  ;;  %v2311_v19 = vld [vmem:[%s3448_s14 + $0x30] sm:$0xff] }
0x1053   :  { %1717 = vmatpush.msra.mxu0 %v1697_v38  ;;  %1908 = vmatpush.msrb.mxu3 %v2311_v19  ;;  %v2392_v38 = vld [vmem:[%s3446_s12 + $0x1] ss:$0 sm:$0xff] }
0x1055   :  { %1909 = vmatpush.msrb.mxu3 %v2310_v20  ;;  %2015 = vmatpush.msrb.mxu0 %v2335_v39 }
0x1057   :  { %1910 = vmatpush.msrb.mxu3 %v2309_v21  ;;  %v2322_v21 = vld [vmem:[%s3450_s16 + $0x90] sm:$0xff] }
0x1059   :  { %2298 = vmatmul.msk.f32.vlgmr.msra.gmra.mxu0 %vm318_vm0, %v1694_v9  ;;  %2299 = vmatmul.msk.f32.vlgmr.msra.gmra.mxu1 %vm318_vm0, %v1695_v46  ;;  %v2393_v46 = vld [vmem:[%s3447_s13 + $0x1] ss:$0 sm:$0xff] }
0x10b9   :  { %v1485_v49 = vpop.f32.mrf.mxu0 }
0x10ce   :  { %v1589_v50 = vpop.f32.mrf.mxu0  ;;  %v1615_v51 = vpop.f32.mrf.mxu1 }
0x10cf   :  { %1760 = vrot.lane.b32.xlu2 %v1615_v51, %s3509_s27  ;;  %1758 = vrot.lane.b32.xlu0 %v1589_v50, %s3509_s27 }
0x10d6   :  { %v1719_v52 = vpop.f32.mrf.mxu0  ;;  %v1745_v26 = vpop.f32.mrf.mxu1 }
0x10d7   :  { %1752 = vrot.lane.b32.xlu0 %v1485_v49, %s3507_s2  ;;  %1766 = vrot.lane.b32.xlu1 %v1719_v52, %s2572_s5 }
0x10df   :  { %1768 = vrot.lane.b32.xlu1 %v1745_v26, %s2572_s5 }
0x1129   :  { %v1761_v62 = vpop.permute.xlu2 %1760 }
0x1141   :  { %v1759_v57 = vpop.permute.xlu0 %1758 }
0x1142   :  { %v1774_v59 = vsel %vm862_vm2, %v1772_v58, %v1759_v57  ;;  %v2394_v57 = vld [vmem:[%s3449_s15 + $0x1] ss:$0 sm:$0xff]  ;;  %v2334_v58 = vld [vmem:[%s3450_s16 + $0xf0] sm:$0xff]  ;;  %s2208_s15 = sshll.u32 %s3457_s23, 4  ;;  %s2209_s15 = int_to_ptr.hbm [resolvable:$true] %s2208_s15 }
0x1143   :  { %2016 = vmatpush.msrb.mxu0 %v2334_v58 }
0x1149   :  { %v1767_v60 = vpop.permute.xlu1 %1766  ;;  %v1753_v61 = vpop.permute.xlu0 %1752 }
0x114a   :  { %v1776_v48 = vsel %vm865_vm3, %v1774_v59, %v1767_v60  ;;  %v1773_v63 = vsel %vm318_vm0, %v3218_v43, %v1753_v61  ;;  %v2333_v60 = vld [vmem:[%s3450_s16 + $0xe8] sm:$0xff]  ;;  %v2332_v61 = vld [vmem:[%s3450_s16 + $0xe0] sm:$0xff] }
0x114b   :  { %2304 = vmatmul.msk.f32.vlgmr.msra.gmra.mxu2 %vm214_vm8, %v1776_v48  ;;  %v1775_v1 = vsel %vm862_vm2, %v1773_v63, %v1761_v62  ;;  %2017 = vmatpush.msrb.mxu0 %v2333_v60  ;;  %v2331_v62 = vld [vmem:[%s3450_s16 + $0xd8] sm:$0xff] }
0x114d   :  { %2018 = vmatpush.msrb.mxu0 %v2332_v61 }
0x114f   :  { %2019 = vmatpush.msrb.mxu0 %v2331_v62 }
0x1151   :  { %v1769_v35 = vpop.permute.xlu1 %1768 }
0x1152   :  { %v1777_v10 = vsel %vm865_vm3, %v1775_v1, %v1769_v35  ;;  %v2330_v1 = vld [vmem:[%s3450_s16 + $0xd0] sm:$0xff] }
0x1153   :  { %2305 = vmatmul.msk.f32.gmra.mxu2 %vm214_vm8, %v1777_v10  ;;  %2020 = vmatpush.msrb.mxu0 %v2330_v1 }
0x11ce   :  { %v1806_v0 = vpop.f32.mrf.mxu2 }
0x11cf   :  { %v1812_v3 = vadd.f32 %v1806_v0, %v3114_v55  ;;  %v2329_v0 = vld [vmem:[%s3450_s16 + $0xc8] sm:$0xff] }
0x11d0   :  { %2021 = vmatpush.msrb.mxu0 %v2329_v0 }
0x11d1   :  { %v3282_v4 = vadd.f32 %v2391_v42, %v1812_v3 }
0x11d3   :  { %v1825_v43 = vsel %vm214_vm8, %v3282_v4, 0.0 }
0x11d4   :  { %1826 = vadd.xlane.f32.xlu0 %v1825_v43 }
0x11d6   :  { %v1809_v5 = vpop.f32.mrf.mxu2 }
0x11d7   :  { %v1813_v47 = vadd.f32 %v1809_v5, %v3119_v37  ;;  %v2328_v5 = vld [vmem:[%s3450_s16 + $0xc0] sm:$0xff] }
0x11d8   :  { %2022 = vmatpush.msrb.mxu0 %v2328_v5 }
0x11d9   :  { %v3287_v7 = vadd.f32 %v2391_v42, %v1813_v47 }
0x11db   :  { %v1828_v8 = vsel %vm214_vm8, %v3287_v7, 0.0 }
0x11dc   :  { %1829 = vadd.xlane.f32.xlu2 %v1828_v8  ;;  %v2327_v8 = vld [vmem:[%s3450_s16 + $0xb8] sm:$0xff] }
0x11dd   :  { %2023 = vmatpush.msrb.mxu0 %v2327_v8 }
0x1247   :  { %v1827_v11 = vpop.xlane.xlu0 %1826 }
0x1248   :  { %v1831_v12 = vmul.f32 %v1827_v11, %v2830_v17 }
0x124a   :  { %v1833_v55 = vsub.f32 %v3282_v4, %v1831_v12  ;;  %v2326_v12 = vld [vmem:[%s3450_s16 + $0xb0] sm:$0xff] }
0x124b   :  { %2024 = vmatpush.msrb.mxu0 %v2326_v12 }
0x124c   :  { %v1835_v13 = vmul.f32 %v1833_v55, %v1833_v55 }
0x124e   :  { %v1837_v14 = vsel %vm214_vm8, %v1835_v13, 0.0  ;;  %v2325_v13 = vld [vmem:[%s3450_s16 + $0xa8] sm:$0xff] }
0x124f   :  { %1838 = vadd.xlane.f32.xlu1 %v1837_v14  ;;  %v1830_v6 = vpop.xlane.xlu2 %1829  ;;  %2025 = vmatpush.msrb.mxu0 %v2325_v13 }
0x1250   :  { %v1832_v15 = vmul.f32 %v1830_v6, %v2830_v17 }
0x1252   :  { %v1834_v37 = vsub.f32 %v3287_v7, %v1832_v15 }
0x1254   :  { %v1836_v16 = vmul.f32 %v1834_v37, %v1834_v37 }
0x1256   :  { %v1840_v36 = vsel %vm214_vm8, %v1836_v16, 0.0 }
0x1257   :  { %1841 = vadd.xlane.f32.xlu0 %v1840_v36  ;;  %v2323_v36 = vld [vmem:[%s3450_s16 + $0x98] sm:$0xff] }
0x12c2   :  { %v1839_v22 = vpop.xlane.xlu1 %1838 }
0x12c3   :  { %v1843_v23 = vmul.f32 %v1839_v22, %v2830_v17  ;;  %v2321_v22 = vld [vmem:[%s3450_s16 + $0x88] sm:$0xff] }
0x12c5   :  { %v1845_v25 = vadd.f32 1e-06, %v1843_v23 }
0x12c7   :  { %2486 = vrsqrt.f32 %v1845_v25  ;;  %vm1853_vm2 = vweird.f32 %v1845_v25 }
0x12ca   :  { %v1842_v27 = vpop.xlane.xlu0 %1841 }
0x12cb   :  { %v1844_v28 = vmul.f32 %v1842_v27, %v2830_v17 }
0x12cd   :  { %v2487_v29 = vpop.eup %2486  ;;  %v1846_v41 = vadd.f32 1e-06, %v1844_v28 }
0x12ce   :  { %v1848_v30 = vmul.f32 %v2487_v29, %v1845_v25  ;;  %vm1854_vm0 = vweird.f32 %v2487_v29  ;;  %v2320_v25 = vld [vmem:[%s3450_s16 + $0x80] sm:$0xff] }
0x12cf   :  { %2488 = vrsqrt.f32 %v1846_v41  ;;  %vm1855_vm3 = vmor %vm1853_vm2, %vm1854_vm0  ;;  %vm1863_vm1 = vweird.f32 %v1846_v41  ;;  %vm2052_vm2 = vcmask 1041409  }
0x12d0   :  { %v1849_v31 = vmul.f32 %v2487_v29, %v1848_v30 }
0x12d2   :  { %v1850_v32 = vmul.f32 0.5, %v1849_v31 }
0x12d4   :  { %v1851_v33 = vsub.f32 1.5, %v1850_v32 }
0x12d5   :  { %v2489_v45 = vpop.eup %2488 }
0x12d6   :  { %v1852_v40 = vmul.f32 %v2487_v29, %v1851_v33  ;;  %v1858_v34 = vmul.f32 %v2489_v45, %v1846_v41  ;;  %vm1864_vm15 = vweird.f32 %v2489_v45 }
0x12d7   :  { %vm1865_vm4 = vmor %vm1863_vm1, %vm1864_vm15 }
0x12d8   :  { %v1856_v2 = vsel %vm1855_vm3, %v2487_v29, %v1852_v40  ;;  %v1859_v44 = vmul.f32 %v2489_v45, %v1858_v34  ;;  %vm2055_vm3 = vcmask 254976  }
0x12d9   :  { %v1867_v9 = vmul.f32 %v1856_v2, %v1833_v55 }
0x12da   :  { %v1860_v49 = vmul.f32 0.5, %v1859_v44 }
0x12db   :  { %v1872_v50 = vmul.f32 %v2392_v38, %v1867_v9 }
0x12dc   :  { %v1861_v51 = vsub.f32 1.5, %v1860_v49 }
0x12dd   :  { %v1877_v52 = vadd.f32 %v2393_v46, %v1872_v50 }
0x12de   :  { %v1862_v26 = vmul.f32 %v2489_v45, %v1861_v51 }
0x12df   :  { %2314 = vmatmul.msk.f32.vlgmr.msrb.gmra.mxu3 %vm214_vm8, %v1877_v52 }
0x12e0   :  { %v1866_v24 = vsel %vm1865_vm4, %v2489_v45, %v1862_v26 }
0x12e1   :  { %v1868_v53 = vmul.f32 %v1866_v24, %v1834_v37  ;;  %v2324_v37 = vld [vmem:[%s3450_s16 + $0xa0] sm:$0xff] }
0x12e2   :  { %2026 = vmatpush.msrb.mxu0 %v2324_v37 }
0x12e3   :  { %v1873_v54 = vmul.f32 %v2392_v38, %v1868_v53 }
0x12e4   :  { %2027 = vmatpush.msrb.mxu0 %v2323_v36 }
0x12e5   :  { %v1878_v56 = vadd.f32 %v2393_v46, %v1873_v54 }
0x12e6   :  { %2028 = vmatpush.msrb.mxu0 %v2322_v21 }
0x12e7   :  { %2315 = vmatmul.msk.f32.gmra.mxu3 %vm214_vm8, %v1878_v56 }
0x12e8   :  { %2029 = vmatpush.msrb.mxu0 %v2321_v22  ;;  %v2395_v22 = vld [vmem:[%s3451_s17 + $0x1] ss:$0 sm:$0xff] }
0x12ea   :  { %2030 = vmatpush.msrb.mxu0 %v2320_v25 }
0x1362   :  { %v1912_v59 = vpop.f32.mrf.mxu3 }
0x1363   :  { %v3331_v48 = vadd.f32 %v2394_v57, %v1912_v59 }
0x1365   :  { %v3337_v63 = vmul.f32 0.70710677, %v3331_v48 }
0x1367   :  { %v1920_v35 = vand.u32 2147483647, %v3337_v63  ;;  %vm1986_vm14 = vcmp.ge.f32.partialorder %v3337_v63, 0.0 }
0x1369   :  { %v1922_v10 = vmul.f32 0.3275911, %v1920_v35  ;;  %v1974_v30 = vsub.f32 0.0, %v1920_v35 }
0x136a   :  { %v1915_v42 = vpop.f32.mrf.mxu3 }
0x136b   :  { %v1924_v3 = vadd.f32 1.0, %v1922_v10  ;;  %v3349_v43 = vadd.f32 %v2394_v57, %v1915_v42  ;;  %v1976_v34 = vmul.f32 %v1974_v30, %v1920_v35 }
0x136d   :  { %2490 = vrcp.f32 %v1924_v3  ;;  %v3355_v47 = vmul.f32 0.70710677, %v3349_v43  ;;  %v1937_v18 = vand.u32 2147483648, %v1924_v3  ;;  %v1935_v20 = vand.u32 2147483647, %v1924_v3 }
0x136e   :  { %vm1931_vm6 = vweird.f32 %v1924_v3  ;;  %v1978_v50 = vmul.f32 1.442695, %v1976_v34 }
0x136f   :  { %v1921_v11 = vand.u32 2147483647, %v3355_v47  ;;  %v1938_v27 = vor.u32 1.1754944e-38, %v1937_v18  ;;  %vm1936_vm9 = vcmp.eq.f32.partialorder %v1935_v20, 8.507059e+37  ;;  %vm1987_vm0 = vcmp.ge.f32.partialorder %v3355_v47, 0.0 }
0x1370   :  { %v1993_v18 = vmul.f32 0.5, %v3349_v43 }
0x1371   :  { %v1923_v55 = vmul.f32 0.3275911, %v1921_v11  ;;  %v1975_v26 = vsub.f32 0.0, %v1921_v11 }
0x1373   :  { %v2491_v14 = vpop.eup %2490  ;;  %v1925_v15 = vadd.f32 1.0, %v1923_v55  ;;  %v1977_v57 = vmul.f32 %v1975_v26, %v1921_v11  ;;  %v1992_v55 = vmul.f32 0.5, %v3331_v48  ;;  %v2172_v26 = vld [vmem:[%s3456_s22 + $0x18] sm:$0xff] }
0x1374   :  { %v1927_v6 = vmul.f32 %v2491_v14, %v1924_v3  ;;  %vm1932_vm5 = vweird.f32 %v2491_v14  ;;  %2191 = vmatpush.msrb.mxu1 %v2172_v26 }
0x1375   :  { %2492 = vrcp.f32 %v1925_v15  ;;  %vm1933_vm7 = vmor %vm1931_vm6, %vm1932_vm5  ;;  %v1952_v40 = vand.u32 2147483648, %v1925_v15  ;;  %v1950_v2 = vand.u32 2147483647, %v1925_v15  ;;  %vm1946_vm11 = vweird.f32 %v1925_v15 }
0x1376   :  { %v1928_v16 = vsub.f32 1.0, %v1927_v6  ;;  %2494 = vpow2.f32 %v1978_v50  ;;  %v1980_v62 = vmul.f32 1.442695, %v1977_v57 }
0x1377   :  { %v1953_v49 = vor.u32 1.1754944e-38, %v1952_v40  ;;  %vm1951_vm13 = vcmp.eq.f32.partialorder %v1950_v2, 8.507059e+37 }
0x1378   :  { %v1929_v19 = vmul.f32 %v2491_v14, %v1928_v16  ;;  %2496 = vpow2.f32 %v1980_v62 }
0x137a   :  { %v1930_v23 = vadd.f32 %v2491_v14, %v1929_v19 }
0x137b   :  { %v2493_v28 = vpop.eup %2492 }
0x137c   :  { %v1934_v29 = vsel %vm1933_vm7, %v2491_v14, %v1930_v23  ;;  %v1942_v31 = vmul.f32 %v2493_v28, %v1925_v15  ;;  %vm1947_vm10 = vweird.f32 %v2493_v28  ;;  %v2495_v35 = vpop.eup %2494 }
0x137d   :  { %v1939_v41 = vsel %vm1936_vm9, %v1938_v27, %v1934_v29  ;;  %vm1948_vm12 = vmor %vm1946_vm11, %vm1947_vm10  ;;  %vm2199_vm10 = vcmask 58368  }
0x137e   :  { %v1956_v32 = vmul.f32 1.0614054, %v1939_v41  ;;  %v1943_v33 = vsub.f32 1.0, %v1942_v31  ;;  %v2497_v14 = vpop.eup %2496 }
0x1380   :  { %v2316_v45 = vadd.f32 -1.4531521, %v1956_v32  ;;  %v1944_v38 = vmul.f32 %v2493_v28, %v1943_v33 }
0x1382   :  { %v1960_v44 = vmul.f32 %v2316_v45, %v1939_v41  ;;  %v1945_v9 = vadd.f32 %v2493_v28, %v1944_v38 }
0x1384   :  { %v1962_v46 = vadd.f32 1.4214138, %v1960_v44  ;;  %v1949_v51 = vsel %vm1948_vm12, %v2493_v28, %v1945_v9 }
0x1385   :  { %v1954_v24 = vsel %vm1951_vm13, %v1953_v49, %v1949_v51  ;;  %v2573_v51 = vmov 2.0  }
0x1386   :  { %v1964_v52 = vmul.f32 %v1962_v46, %v1939_v41  ;;  %v1957_v53 = vmul.f32 1.0614054, %v1954_v24 }
0x1388   :  { %v2318_v54 = vadd.f32 -0.28449672, %v1964_v52  ;;  %v2317_v56 = vadd.f32 -1.4531521, %v1957_v53  ;;  %v2396_v53 = vld [vmem:[%s3452_s18] ss:$0 sm:$0xff] }
0x138a   :  { %v1968_v39 = vmul.f32 %v2318_v54, %v1939_v41  ;;  %v1961_v58 = vmul.f32 %v2317_v56, %v1954_v24 }
0x138c   :  { %v1970_v59 = vadd.f32 0.2548296, %v1968_v39  ;;  %v1963_v60 = vadd.f32 1.4214138, %v1961_v58  ;;  %v2170_v39 = vld [vmem:[%s3456_s22 + $0x8] sm:$0xff] }
0x138e   :  { %v1972_v61 = vmul.f32 %v1970_v59, %v1939_v41  ;;  %v1965_v1 = vmul.f32 %v1963_v60, %v1954_v24  ;;  %v2169_v59 = vld [vmem:[%s3456_s22] sm:$0xff] }
0x138f   :  { %v2397_v60 = vld [vmem:[%s3453_s19] ss:$0 sm:$0xff] }
0x1390   :  { %v1982_v10 = vmul.f32 %v2495_v35, %v1972_v61  ;;  %v2319_v42 = vadd.f32 -0.28449672, %v1965_v1 }
0x1392   :  { %v1984_v0 = vsub.f32 1.0, %v1982_v10  ;;  %v1969_v3 = vmul.f32 %v2319_v42, %v1954_v24 }
0x1394   :  { %v1988_v5 = vsub.f32 0.0, %v1984_v0  ;;  %v1971_v8 = vadd.f32 0.2548296, %v1969_v3 }
0x1396   :  { %v1990_v12 = vsel %vm1986_vm14, %v1984_v0, %v1988_v5  ;;  %v1973_v13 = vmul.f32 %v1971_v8, %v1954_v24 }
0x1397   :  { %v1994_v11 = vadd.f32 1.0, %v1990_v12 }
0x1398   :  { %v1983_v15 = vmul.f32 %v2497_v14, %v1973_v13 }
0x1399   :  { %v1996_v6 = vmul.f32 %v1994_v11, %v1992_v55 }
0x139a   :  { %v1985_v37 = vsub.f32 1.0, %v1983_v15 }
0x139b   :  { %2031 = vmatmul.f32.vlgmr.msrb.gmra.mxu0 %v1996_v6 }
0x139c   :  { %v1989_v16 = vsub.f32 0.0, %v1985_v37 }
0x139e   :  { %v1991_v36 = vsel %vm1987_vm0, %v1985_v37, %v1989_v16 }
0x139f   :  { %v1995_v19 = vadd.f32 1.0, %v1991_v36 }
0x13a1   :  { %v1997_v20 = vmul.f32 %v1995_v19, %v1993_v18 }
0x13a3   :  { %2034 = vmatmul.f32.gmra.mxu0 %v1997_v20 }
0x1418   :  { %v2032_v63 = vpop.f32.mrf.mxu0 }
0x1419   :  { %v2038_v48 = vadd.f32 %v2032_v63, %v3282_v4 }
0x141b   :  { %v2045_v27 = vadd.f32 %v2395_v22, %v2038_v48 }
0x1420   :  { %v2035_v21 = vpop.f32.mrf.mxu0 }
0x1421   :  { %v2039_v23 = vadd.f32 %v2035_v21, %v3287_v7 }
0x1423   :  { %v2046_v25 = vadd.f32 %v2395_v22, %v2039_v23 }
0x1425   :  { %v2051_v47 = vrot.slane %v2046_v25, 7 }
0x1427   :  { %v2053_v43 = vsel %vm2052_vm2, %v2051_v47, %v2045_v27 }
0x1428   :  { %v2056_v28 = vsel %vm2055_vm3, %v2053_v43, 0.0 }
0x1429   :  { %2057 = vadd.xlane.f32.xlu2 %v2056_v28 }
0x149c   :  { %v2058_v29 = vpop.xlane.xlu2 %2057 }
0x149d   :  { %v2059_v41 = vmul.f32 %v2058_v29, %v2830_v17 }
0x149f   :  { %v2061_v4 = vrot.slane %v2059_v41, 1  ;;  %v2064_v30 = vsub.f32 %v2045_v27, %v2059_v41 }
0x14a1   :  { %v2065_v31 = vsub.f32 %v2046_v25, %v2061_v4  ;;  %v2066_v33 = vmul.f32 %v2064_v30, %v2064_v30 }
0x14a3   :  { %v2067_v32 = vmul.f32 %v2065_v31, %v2065_v31 }
0x14a5   :  { %v2070_v45 = vrot.slane %v2067_v32, 7 }
0x14a7   :  { %v2071_v7 = vsel %vm2052_vm2, %v2070_v45, %v2066_v33 }
0x14a8   :  { %v2073_v40 = vsel %vm2055_vm3, %v2071_v7, 0.0 }
0x14a9   :  { %2074 = vadd.xlane.f32.xlu1 %v2073_v40 }
0x151c   :  { %v2075_v34 = vpop.xlane.xlu1 %2074 }
0x151d   :  { %v2076_v38 = vmul.f32 %v2075_v34, %v2830_v17  ;;  %v2171_v17 = vld [vmem:[%s3456_s22 + $0x10] sm:$0xff]  ;;  %v2398_v34 = vld [vmem:[%s3454_s20] ss:$0 sm:$0xff]  ;;  %s2219_s20 = sshll.u32 %s3458_s24, 4  ;;  %s2220_s20 = int_to_ptr.hbm [resolvable:$true] %s2219_s20 }
0x151e   :  { %2192 = vmatpush.msrb.mxu1 %v2171_v17 }
0x151f   :  { %v2077_v2 = vadd.f32 1e-06, %v2076_v38 }
0x1520   :  { %2193 = vmatpush.msrb.mxu1 %v2170_v39 }
0x1521   :  { %2498 = vrsqrt.f32 %v2077_v2  ;;  %vm2084_vm1 = vweird.f32 %v2077_v2 }
0x1522   :  { %2500 = vrcp.f32 %v2573_v51  ;;  %2194 = vmatpush.msrb.mxu1 %v2169_v59 }
0x1527   :  { %v2499_v44 = vpop.eup %2498 }
0x1528   :  { %v2079_v9 = vmul.f32 %v2499_v44, %v2077_v2  ;;  %vm2085_vm15 = vweird.f32 %v2499_v44  ;;  %v2501_v57 = vpop.eup %2500 }
0x1529   :  { %vm2086_vm4 = vmor %vm2084_vm1, %vm2085_vm15  ;;  %v2118_v35 = vmul.f32 2.0, %v2501_v57  ;;  %vm2122_vm5 = vweird.f32 %v2501_v57 }
0x152a   :  { %v2080_v46 = vmul.f32 %v2499_v44, %v2079_v9 }
0x152b   :  { %v2119_v0 = vsub.f32 1.0, %v2118_v35 }
0x152c   :  { %v2081_v49 = vmul.f32 0.5, %v2080_v46 }
0x152d   :  { %v2120_v12 = vmul.f32 %v2501_v57, %v2119_v0 }
0x152e   :  { %v2082_v50 = vsub.f32 1.5, %v2081_v49 }
0x152f   :  { %v2121_v13 = vadd.f32 %v2501_v57, %v2120_v12 }
0x1530   :  { %v2083_v52 = vmul.f32 %v2499_v44, %v2082_v50 }
0x1531   :  { %v2123_v15 = vsel %vm2122_vm5, %v2501_v57, %v2121_v13 }
0x1532   :  { %v2087_v24 = vsel %vm2086_vm4, %v2499_v44, %v2083_v52  ;;  %v2399_v44 = vld [vmem:[%s3455_s21] ss:$0 sm:$0xff]  ;;  %s2206_s21 = sshll.u32 %s2575_s10, 4  ;;  %s2207_s21 = int_to_ptr.vmem [resolvable:$true] %s2206_s21 }
0x1533   :  { %v2089_v54 = vrot.slane %v2087_v24, 1  ;;  %v2092_v56 = vmul.f32 %v2087_v24, %v2064_v30 }
0x1535   :  { %v2093_v58 = vmul.f32 %v2089_v54, %v2065_v31  ;;  %v2097_v61 = vmul.f32 %v2396_v53, %v2092_v56 }
0x1537   :  { %v2098_v62 = vmul.f32 %v2396_v53, %v2093_v58  ;;  %v2102_v10 = vadd.f32 %v2397_v60, %v2097_v61 }
0x1539   :  { %v2103_v1 = vadd.f32 %v2397_v60, %v2098_v62 }
0x153b   :  { %v2106_v42 = vrot.slane %v2103_v1, 7 }
0x153d   :  { %v2107_v3 = vsel %vm2052_vm2, %v2106_v42, %v2102_v10 }
0x153e   :  { %v2110_v5 = vsel %vm2055_vm3, %v2107_v3, 0.0  ;;  %2109 = vst.msk [vmem:[#allocation4] sm:$0x3] %vm2055_vm3, %v2107_v3 }
0x153f   :  { %v2111_v8 = vrot.slane %v2110_v5, 4  ;;  %2222 = dma.vmem_to_hbm [thread:$0]  %s2218_s9, 32, %s2220_s20, [#allocation5]  }
0x1541   :  { %v2112_v55 = vadd.f32 %v2111_v8, %v2110_v5 }
0x1543   :  { %v2113_v11 = vrot.slane %v2112_v55, 2 }
0x1545   :  { %v2114_v14 = vadd.f32 %v2113_v11, %v2112_v55 }
0x1547   :  { %v2115_v6 = vrot.slane %v2114_v14, 1 }
0x1549   :  { %v2116_v37 = vadd.f32 %v2115_v6, %v2114_v14 }
0x154b   :  { %v2124_v16 = vmul.f32 %v2123_v15, %v2116_v37 }
0x154d   :  { %v2125_v36 = vperm.slane %v2124_v16, 0 }
0x154f   :  { %v2126_v18 = vsub.f32 %v2102_v10, %v2125_v36  ;;  %v2127_v19 = vsub.f32 %v2103_v1, %v2125_v36 }
0x1551   :  { %v2129_v20 = vmul.f32 %v2127_v19, %v2127_v19  ;;  %v2128_v63 = vmul.f32 %v2126_v18, %v2126_v18 }
0x1553   :  { %v2132_v21 = vrot.slane %v2129_v20, 7 }
0x1555   :  { %v2133_v48 = vsel %vm2052_vm2, %v2132_v21, %v2128_v63 }
0x1556   :  { %v2135_v22 = vsel %vm2055_vm3, %v2133_v48, 0.0 }
0x1557   :  { %v2136_v23 = vrot.slane %v2135_v22, 4 }
0x1559   :  { %v2137_v25 = vadd.f32 %v2136_v23, %v2135_v22 }
0x155b   :  { %v2138_v27 = vrot.slane %v2137_v25, 2 }
0x155d   :  { %v2139_v47 = vadd.f32 %v2138_v27, %v2137_v25 }
0x155f   :  { %v2140_v43 = vrot.slane %v2139_v47, 1 }
0x1561   :  { %v2141_v28 = vadd.f32 %v2140_v43, %v2139_v47 }
0x1563   :  { %v2142_v29 = vmul.f32 %v2141_v28, %v2123_v15 }
0x1565   :  { %v2143_v41 = vadd.f32 1e-05, %v2142_v29 }
0x1567   :  { %2502 = vrsqrt.f32 %v2143_v41  ;;  %vm2150_vm7 = vweird.f32 %v2143_v41 }
0x156d   :  { %v2503_v4 = vpop.eup %2502 }
0x156e   :  { %v2145_v30 = vmul.f32 %v2503_v4, %v2143_v41  ;;  %vm2151_vm6 = vweird.f32 %v2503_v4 }
0x156f   :  { %vm2152_vm9 = vmor %vm2150_vm7, %vm2151_vm6 }
0x1570   :  { %v2146_v31 = vmul.f32 %v2503_v4, %v2145_v30 }
0x1572   :  { %v2147_v32 = vmul.f32 0.5, %v2146_v31 }
0x1574   :  { %v2148_v33 = vsub.f32 1.5, %v2147_v32 }
0x1576   :  { %v2149_v45 = vmul.f32 %v2503_v4, %v2148_v33 }
0x1578   :  { %v2153_v7 = vsel %vm2152_vm9, %v2503_v4, %v2149_v45 }
0x1579   :  { %v2154_v40 = vperm.slane %v2153_v7, 0 }
0x157b   :  { %v2155_v38 = vmul.f32 %v2154_v40, %v2126_v18  ;;  %v2156_v2 = vmul.f32 %v2154_v40, %v2127_v19 }
0x157d   :  { %v2161_v9 = vmul.f32 %v2398_v34, %v2155_v38  ;;  %v2162_v46 = vmul.f32 %v2398_v34, %v2156_v2 }
0x157f   :  { %v2168_v49 = vadd.f32 %v2399_v44, %v2162_v46  ;;  %v2167_v50 = vadd.f32 %v2399_v44, %v2161_v9 }
0x1581   :  { %v2175_v51 = vrot.slane %v2168_v49, 7 }
0x1583   :  { %v2176_v52 = vsel %vm2052_vm2, %v2175_v51, %v2167_v50 }
0x1584   :  { %2337 = vmatmul.msk.f32.vlgmr.msrb.gmra.mxu1 %vm214_vm8, %v2176_v52 }
0x1601   :  { %v2196_v26 = vpop.f32.mrf.mxu1 }
0x1602   :  { %2200 = vst.msk [vmem:[#allocation2] sm:$0x3] %vm2199_vm10, %v2196_v26 }
0x1603   :  { %2211 = dma.vmem_to_hbm [thread:$0]  %s2207_s21, 32, %s2209_s15, [#allocation3]  }
0x1604   :  { %2552 = dma.done.wait [#allocation3], 32  }
0x1605   :  { %2553 = vsyncadd [#allocation3], 4294967264 }
0x1606   :  { %2554 = dma.done.wait [#allocation5], 32  }
0x1607   :  { %2555 = vsyncadd [#allocation5], 4294967264 }
0x1608   :  { %2231 = vsyncpa [#allocation3], 1 }
0x1609   :  { %2232 = vsyncpa [#allocation5], 1 }

</bundles_post_ra>
